<compile_context>
chip_gen: v7x
topology: tpu7x:2x2x1
jax: 0.10.0
libtpu: 0.0.40
codegen_flags: <defaults>
</compile_context>

<pallas_src>
import functools

import jax
import jax.numpy as jnp
from jax.experimental import pallas as pl
from jax.experimental.pallas import tpu as pltpu

_BN_EPS = 1e-5


def _round_up(x, m):
    return (x + m - 1) // m * m


def _choose_tm(M):
    """Largest tile (<=512, multiple of 16) dividing M with >=2 grid steps."""
    for tm in (512, 256, 128, 64, 32, 16):
        if tm < M and M % tm == 0:
            return tm
    return M


# ---------------------------------------------------------------------------
# Pallas kernels
# ---------------------------------------------------------------------------
def _matmul_stats_kernel(a_ref, b_ref, o_ref, stats_ref):
    """bf16 matmul (f32 accumulate) + per-tile channel sum / sum-of-squares."""
    acc = jnp.dot(a_ref[...], b_ref[...], preferred_element_type=jnp.float32)
    o_ref[...] = acc.astype(o_ref.dtype)
    s = jnp.sum(acc, axis=0, keepdims=True)                  # (1, Np)
    ss = jnp.sum(acc * acc, axis=0, keepdims=True)           # (1, Np)
    pad = jnp.zeros((6, acc.shape[1]), jnp.float32)
    stats_ref[...] = jnp.concatenate([s, ss, pad], axis=0).reshape(
        1, 8, acc.shape[1])


def _matmul_epilogue_kernel(a_ref, b_ref, scale_ref, shift_ref, o_ref, *, act):
    """bf16 matmul (f32 accumulate) with fused per-channel affine + activation."""
    acc = jnp.dot(a_ref[...], b_ref[...], preferred_element_type=jnp.float32)
    y = acc * scale_ref[...] + shift_ref[...]
    if act == "relu":
        y = jnp.maximum(y, 0.0)
    elif act == "tanh":
        y = jnp.tanh(y)
    o_ref[...] = y.astype(o_ref.dtype)


def _affine_act_kernel(x_ref, scale_ref, shift_ref, o_ref, *, act):
    y = x_ref[...].astype(jnp.float32) * scale_ref[...] + shift_ref[...]
    if act == "relu":
        y = jnp.maximum(y, 0.0)
    elif act == "tanh":
        y = jnp.tanh(y)
    o_ref[...] = y.astype(o_ref.dtype)


# ---------------------------------------------------------------------------
# Pallas wrappers
# ---------------------------------------------------------------------------
def pallas_matmul_stats(a, b):
    """(M,K)bf16 @ (K,Np)bf16 -> (M,Np)bf16 raw activation + (T,8,Np)f32 stats."""
    M, K = a.shape
    _, Np = b.shape
    tm = _choose_tm(M)
    T = M // tm
    return pl.pallas_call(
        _matmul_stats_kernel,
        out_shape=(jax.ShapeDtypeStruct((M, Np), jnp.bfloat16),
                   jax.ShapeDtypeStruct((T, 8, Np), jnp.float32)),
        grid=(T,),
        in_specs=[pl.BlockSpec((tm, K), lambda i: (i, 0)),
                  pl.BlockSpec((K, Np), lambda i: (0, 0))],
        out_specs=(pl.BlockSpec((tm, Np), lambda i: (i, 0)),
                   pl.BlockSpec((1, 8, Np), lambda i: (i, 0, 0))),
        compiler_params=pltpu.CompilerParams(
            dimension_semantics=("parallel",)),
    )(a, b)


def pallas_matmul_epilogue(a, b, scale, shift, act, out_dtype=jnp.bfloat16):
    """(M,K)bf16 @ (K,Np)bf16 with fused (x*scale+shift) + activation."""
    M, K = a.shape
    _, Np = b.shape
    tm = _choose_tm(M)
    return pl.pallas_call(
        functools.partial(_matmul_epilogue_kernel, act=act),
        out_shape=jax.ShapeDtypeStruct((M, Np), out_dtype),
        grid=(M // tm,),
        in_specs=[pl.BlockSpec((tm, K), lambda i: (i, 0)),
                  pl.BlockSpec((K, Np), lambda i: (0, 0)),
                  pl.BlockSpec((1, Np), lambda i: (0, 0)),
                  pl.BlockSpec((1, Np), lambda i: (0, 0))],
        out_specs=pl.BlockSpec((tm, Np), lambda i: (i, 0)),
        compiler_params=pltpu.CompilerParams(
            dimension_semantics=("parallel",)),
    )(a, b, scale, shift)


def pallas_affine_act(x, scale, shift, act="relu"):
    """Per-channel affine + activation on an already-aligned (M, Np) matrix."""
    M, Np = x.shape
    tm = _choose_tm(M)
    return pl.pallas_call(
        functools.partial(_affine_act_kernel, act=act),
        out_shape=jax.ShapeDtypeStruct((M, Np), x.dtype),
        grid=(M // tm,),
        in_specs=[pl.BlockSpec((tm, Np), lambda i: (i, 0)),
                  pl.BlockSpec((1, Np), lambda i: (0, 0)),
                  pl.BlockSpec((1, Np), lambda i: (0, 0))],
        out_specs=pl.BlockSpec((tm, Np), lambda i: (i, 0)),
        compiler_params=pltpu.CompilerParams(
            dimension_semantics=("parallel",)),
    )(x, scale, shift)


# ---------------------------------------------------------------------------
# ConvTranspose2d -> GEMM operand construction (JAX glue, fused under jit)
# ---------------------------------------------------------------------------
def conv_transpose_gemm_inputs(x_nhwc, weight, stride, padding):
    """x: (N,H,W,Cin) bf16, weight: (Cin,Cout,K,K) torch-style ConvTranspose2d.

    Returns bf16 patch matrix (M, Kp), bf16 padded weight matrix (Kp, Np),
    and the output NHWC shape (N, OH, OW, Cout).
    """
    N, H, W, Cin = x_nhwc.shape
    _, Cout, K, _ = weight.shape

    # zero-insertion upsample (stride) + pad by K-1-padding => regular conv
    if stride > 1:
        Hu, Wu = (H - 1) * stride + 1, (W - 1) * stride + 1
        up = jnp.zeros((N, Hu, Wu, Cin), x_nhwc.dtype)
        up = up.at[:, ::stride, ::stride, :].set(x_nhwc)
    else:
        up = x_nhwc
    q = K - 1 - padding
    up = jnp.pad(up, ((0, 0), (q, q), (q, q), (0, 0)))
    Hp, Wp = up.shape[1], up.shape[2]
    OH, OW = Hp - K + 1, Wp - K + 1

    # im2col patches, flattened column order (kh, kw, ci)
    pats = jnp.concatenate(
        [up[:, kh:kh + OH, kw:kw + OW, :] for kh in range(K) for kw in range(K)],
        axis=-1)                                           # (N, OH, OW, K*K*Cin)
    Kdim = K * K * Cin
    P = pats.reshape(N * OH * OW, Kdim)

    # equivalent conv kernel: spatial flip, layout (kh, kw, ci) x Cout
    Wf = weight[:, :, ::-1, ::-1]
    Wmat = jnp.transpose(Wf, (2, 3, 0, 1)).reshape(Kdim, Cout)

    # pad K to a multiple of 128 (no-op for these channel counts) and
    # Cout to 128 lanes for lane-dense MXU output stores.
    Kp = _round_up(Kdim, 128)
    if Kp != Kdim:
        P = jnp.pad(P, ((0, 0), (0, Kp - Kdim)))
        Wmat = jnp.pad(Wmat, ((0, Kp - Kdim), (0, 0)))
    Np = _round_up(Cout, 128)
    if Np != Cout:
        Wmat = jnp.pad(Wmat, ((0, 0), (0, Np - Cout)))

    return P.astype(jnp.bfloat16), Wmat.astype(jnp.bfloat16), (N, OH, OW, Cout)


# ---------------------------------------------------------------------------
# Generator forward (PyTorch NCHW I/O; internal NHWC / (M, C) matrices)
# ---------------------------------------------------------------------------
def generator_forward(params, x_nchw):
    x = jnp.transpose(x_nchw, (0, 2, 3, 1)).astype(jnp.bfloat16)   # -> NHWC

    strides = [1, 2, 2, 2]
    paddings = [0, 1, 1, 1]
    for (w, gamma, beta), s, p in zip(params["blocks"], strides, paddings):
        P, Wmat, (N, OH, OW, C) = conv_transpose_gemm_inputs(x, w, s, p)
        raw, stats = pallas_matmul_stats(P, Wmat)        # (M,Np) bf16, (T,8,Np)
        M = N * OH * OW
        Np = raw.shape[1]

        # finalize BatchNorm batch statistics from tiny per-tile partials
        ch_sum = jnp.sum(stats[:, 0, :], axis=0)
        ch_sumsq = jnp.sum(stats[:, 1, :], axis=0)
        mean = ch_sum / M
        var = jnp.maximum(ch_sumsq / M - mean * mean, 0.0)   # biased (training)
        gamma_p = jnp.pad(gamma, (0, Np - C))
        beta_p = jnp.pad(beta, (0, Np - C))
        scale = gamma_p * jax.lax.rsqrt(var + _BN_EPS)
        shift = beta_p - mean * scale

        act = pallas_affine_act(raw,
                                scale.reshape(1, Np).astype(jnp.float32),
                                shift.reshape(1, Np).astype(jnp.float32),
                                act="relu")
        x = act[:, :C].reshape(N, OH, OW, C)

    # final ConvTranspose2d with fused bias + Tanh epilogue (single pass)
    P, Wmat, (N, OH, OW, C) = conv_transpose_gemm_inputs(
        x, params["final_w"], stride=2, padding=1)
    Np = Wmat.shape[1]
    scale = jnp.pad(jnp.ones((C,), jnp.float32), (0, Np - C)).reshape(1, Np)
    shift = jnp.pad(params["final_b"].astype(jnp.float32),
                    (0, Np - C)).reshape(1, Np)
    out = pallas_matmul_epilogue(P, Wmat, scale, shift, act="tanh",
                                 out_dtype=jnp.float32)
    out_nhwc = out[:, :C].reshape(N, OH, OW, C)
    return jnp.transpose(out_nhwc, (0, 3, 1, 2))          # back to NCHW


def init_params(key, z_dim, channel_images, features_g):
    ch = [z_dim, features_g * 16, features_g * 8, features_g * 4, features_g * 2]
    keys = jax.random.split(key, 6)
    blocks = []
    for i in range(4):
        w = 0.02 * jax.random.normal(keys[i], (ch[i], ch[i + 1], 4, 4),
                                     jnp.float32)
        gamma = jnp.ones((ch[i + 1],), jnp.float32)
        beta = jnp.zeros((ch[i + 1],), jnp.float32)
        blocks.append((w, gamma, beta))
    final_w = 0.02 * jax.random.normal(keys[4], (ch[4], channel_images, 4, 4),
                                       jnp.float32)
    final_b = 0.02 * jax.random.normal(keys[5], (channel_images,), jnp.float32)
    return {"blocks": blocks, "final_w": final_w, "final_b": final_b}


if __name__ == "__main__":
    Z_DIM, C_IMG, FEAT_G, BATCH = 32, 3, 4, 2

    key = jax.random.PRNGKey(0)
    k_param, k_x = jax.random.split(key)
    params = init_params(k_param, Z_DIM, C_IMG, FEAT_G)
    x = jax.random.normal(k_x, (BATCH, Z_DIM, 1, 1), jnp.float32)

    fwd = jax.jit(generator_forward)
    out = fwd(params, x)
    out = jax.block_until_ready(out)
    assert out.shape == (BATCH, C_IMG, 64, 64), out.shape
    assert bool(jnp.all(jnp.isfinite(out)))
    print("KERNEL_OK")
</pallas_src>

<mosaic_0001>
module attributes {stable_mosaic.version = 11 : i64} {
  func.func @_affine_act_kernel(%arg0: i32, %arg1: memref<16x128xbf16, #tpu.memory_space<vmem>>, %arg2: memref<1x128xf32, #tpu.memory_space<vmem>>, %arg3: memref<1x128xf32, #tpu.memory_space<vmem>>, %arg4: memref<16x128xbf16, #tpu.memory_space<vmem>>) attributes {dimension_semantics = [#tpu.dimension_semantics<parallel>], iteration_bounds = array<i64: 2>, scalar_prefetch = 0 : i64, scratch_operands = 0 : i64, tpu.core_type = #tpu.core_type<tc>, window_params = [{transform_indices = @transform_0, window_bounds = array<i64: 16, 128>}, {pipeline_mode = #tpu.pipeline_mode<synchronous>, transform_indices = @transform_1, window_bounds = array<i64: 1, 128>}, {pipeline_mode = #tpu.pipeline_mode<synchronous>, transform_indices = @transform_2, window_bounds = array<i64: 1, 128>}, {transform_indices = @transform_3, window_bounds = array<i64: 16, 128>}]} {
    %c0 = arith.constant 0 : index
    %c0_0 = arith.constant 0 : index
    %0 = vector.load %arg1[%c0, %c0_0] : memref<16x128xbf16, #tpu.memory_space<vmem>>, vector<16x128xbf16>
    %1 = arith.extf %0 : vector<16x128xbf16> to vector<16x128xf32>
    %c0_1 = arith.constant 0 : index
    %c0_2 = arith.constant 0 : index
    %2 = vector.load %arg2[%c0_1, %c0_2] : memref<1x128xf32, #tpu.memory_space<vmem>>, vector<1x128xf32>
    %3 = vector.broadcast %2 : vector<1x128xf32> to vector<16x128xf32>
    %4 = arith.mulf %1, %3 : vector<16x128xf32>
    %c0_3 = arith.constant 0 : index
    %c0_4 = arith.constant 0 : index
    %5 = vector.load %arg3[%c0_3, %c0_4] : memref<1x128xf32, #tpu.memory_space<vmem>>, vector<1x128xf32>
    %6 = vector.broadcast %5 : vector<1x128xf32> to vector<16x128xf32>
    %7 = arith.addf %4, %6 : vector<16x128xf32>
    %cst = arith.constant 0.000000e+00 : f32
    %8 = vector.broadcast %cst : f32 to vector<16x128xf32>
    %9 = arith.maximumf %7, %8 : vector<16x128xf32>
    %10 = arith.truncf %9 : vector<16x128xf32> to vector<16x128xbf16>
    %c0_5 = arith.constant 0 : index
    %c0_6 = arith.constant 0 : index
    %11 = vector.load %arg4[%c0_5, %c0_6] : memref<16x128xbf16, #tpu.memory_space<vmem>>, vector<16x128xbf16>
    tpu.vector_store %arg4[%c0_5, %c0_6], %10 {strides = array<i32>} : memref<16x128xbf16, #tpu.memory_space<vmem>>, vector<16x128xbf16>,
    return
  }
  func.func @transform_0(%arg0: i32) -> (i32, i32) {
    %c0_i32 = arith.constant 0 : i32
    %c0_i32_0 = arith.constant 0 : i32
    return %arg0, %c0_i32 : i32, i32
  }
  func.func @transform_1(%arg0: i32) -> (i32, i32) {
    %c0_i32 = arith.constant 0 : i32
    %c0_i32_0 = arith.constant 0 : i32
    %c0_i32_1 = arith.constant 0 : i32
    return %c0_i32, %c0_i32_0 : i32, i32
  }
  func.func @transform_2(%arg0: i32) -> (i32, i32) {
    %c0_i32 = arith.constant 0 : i32
    %c0_i32_0 = arith.constant 0 : i32
    %c0_i32_1 = arith.constant 0 : i32
    return %c0_i32, %c0_i32_0 : i32, i32
  }
  func.func @transform_3(%arg0: i32) -> (i32, i32) {
    %c0_i32 = arith.constant 0 : i32
    %c0_i32_0 = arith.constant 0 : i32
    return %arg0, %c0_i32 : i32, i32
  }
}

module attributes {stable_mosaic.version = 11 : i64} {
  func.func @_matmul_stats_kernel(%arg0: i32, %arg1: memref<16x512xbf16, #tpu.memory_space<vmem>>, %arg2: memref<512x128xbf16, #tpu.memory_space<vmem>>, %arg3: memref<16x128xbf16, #tpu.memory_space<vmem>>, %arg4: memref<1x8x128xf32, #tpu.memory_space<vmem>>) attributes {dimension_semantics = [#tpu.dimension_semantics<parallel>], iteration_bounds = array<i64: 2>, scalar_prefetch = 0 : i64, scratch_operands = 0 : i64, tpu.core_type = #tpu.core_type<tc>, window_params = [{transform_indices = @transform_0, window_bounds = array<i64: 16, 512>}, {pipeline_mode = #tpu.pipeline_mode<synchronous>, transform_indices = @transform_1, window_bounds = array<i64: 512, 128>}, {transform_indices = @transform_2, window_bounds = array<i64: 16, 128>}, {transform_indices = @transform_3, window_bounds = array<i64: 1, 8, 128>}]} {
    %c0 = arith.constant 0 : index
    %c0_0 = arith.constant 0 : index
    %0 = vector.load %arg1[%c0, %c0_0] : memref<16x512xbf16, #tpu.memory_space<vmem>>, vector<16x512xbf16>
    %c0_1 = arith.constant 0 : index
    %c0_2 = arith.constant 0 : index
    %1 = vector.load %arg2[%c0_1, %c0_2] : memref<512x128xbf16, #tpu.memory_space<vmem>>, vector<512x128xbf16>
    %cst = arith.constant dense<0.000000e+00> : vector<16x128xf32>
    %2 = tpu.matmul %0, %1, %cst {dimension_numbers = #tpu.dot_dimension_numbers<[1], [0], [0], [1], [0, 0, 1, 1], [], []>} : vector<16x512xbf16>, vector<512x128xbf16>, vector<16x128xf32> -> vector<16x128xf32>
    %3 = arith.truncf %2 : vector<16x128xf32> to vector<16x128xbf16>
    %c0_3 = arith.constant 0 : index
    %c0_4 = arith.constant 0 : index
    %4 = vector.load %arg3[%c0_3, %c0_4] : memref<16x128xbf16, #tpu.memory_space<vmem>>, vector<16x128xbf16>
    tpu.vector_store %arg3[%c0_3, %c0_4], %3 {strides = array<i32>} : memref<16x128xbf16, #tpu.memory_space<vmem>>, vector<16x128xbf16>,
    %cst_5 = arith.constant dense<0.000000e+00> : vector<128xf32>
    %5 = vector.multi_reduction <add>, %2, %cst_5 [0] : vector<16x128xf32> to vector<128xf32>
    %6 = vector.shape_cast %5 : vector<128xf32> to vector<1x128xf32>
    %7 = arith.mulf %2, %2 : vector<16x128xf32>
    %cst_6 = arith.constant dense<0.000000e+00> : vector<128xf32>
    %8 = vector.multi_reduction <add>, %7, %cst_6 [0] : vector<16x128xf32> to vector<128xf32>
    %9 = vector.shape_cast %8 : vector<128xf32> to vector<1x128xf32>
    %cst_7 = arith.constant 0.000000e+00 : f32
    %10 = vector.broadcast %cst_7 : f32 to vector<6x128xf32>
    %11 = tpu.concatenate %6, %9, %10 in 0 : vector<1x128xf32>, vector<1x128xf32>, vector<6x128xf32> -> vector<8x128xf32>
    %12 = vector.shape_cast %11 : vector<8x128xf32> to vector<1x8x128xf32>
    %c0_8 = arith.constant 0 : index
    %c0_9 = arith.constant 0 : index
    %c0_10 = arith.constant 0 : index
    %13 = vector.load %arg4[%c0_8, %c0_9, %c0_10] : memref<1x8x128xf32, #tpu.memory_space<vmem>>, vector<1x8x128xf32>
    tpu.vector_store %arg4[%c0_8, %c0_9, %c0_10], %12 {strides = array<i32>} : memref<1x8x128xf32, #tpu.memory_space<vmem>>, vector<1x8x128xf32>,
    return
  }
  func.func @transform_0(%arg0: i32) -> (i32, i32) {
    %c0_i32 = arith.constant 0 : i32
    %c0_i32_0 = arith.constant 0 : i32
    return %arg0, %c0_i32 : i32, i32
  }
  func.func @transform_1(%arg0: i32) -> (i32, i32) {
    %c0_i32 = arith.constant 0 : i32
    %c0_i32_0 = arith.constant 0 : i32
    %c0_i32_1 = arith.constant 0 : i32
    return %c0_i32, %c0_i32_0 : i32, i32
  }
  func.func @transform_2(%arg0: i32) -> (i32, i32) {
    %c0_i32 = arith.constant 0 : i32
    %c0_i32_0 = arith.constant 0 : i32
    return %arg0, %c0_i32 : i32, i32
  }
  func.func @transform_3(%arg0: i32) -> (i32, i32, i32) {
    %c0_i32 = arith.constant 0 : i32
    %c0_i32_0 = arith.constant 0 : i32
    %c0_i32_1 = arith.constant 0 : i32
    return %arg0, %c0_i32, %c0_i32_0 : i32, i32, i32
  }
}

module attributes {stable_mosaic.version = 11 : i64} {
  func.func @_matmul_stats_kernel(%arg0: i32, %arg1: memref<64x1024xbf16, #tpu.memory_space<vmem>>, %arg2: memref<1024x128xbf16, #tpu.memory_space<vmem>>, %arg3: memref<64x128xbf16, #tpu.memory_space<vmem>>, %arg4: memref<1x8x128xf32, #tpu.memory_space<vmem>>) attributes {dimension_semantics = [#tpu.dimension_semantics<parallel>], iteration_bounds = array<i64: 2>, scalar_prefetch = 0 : i64, scratch_operands = 0 : i64, tpu.core_type = #tpu.core_type<tc>, window_params = [{transform_indices = @transform_0, window_bounds = array<i64: 64, 1024>}, {pipeline_mode = #tpu.pipeline_mode<synchronous>, transform_indices = @transform_1, window_bounds = array<i64: 1024, 128>}, {transform_indices = @transform_2, window_bounds = array<i64: 64, 128>}, {transform_indices = @transform_3, window_bounds = array<i64: 1, 8, 128>}]} {
    %c0 = arith.constant 0 : index
    %c0_0 = arith.constant 0 : index
    %0 = vector.load %arg1[%c0, %c0_0] : memref<64x1024xbf16, #tpu.memory_space<vmem>>, vector<64x1024xbf16>
    %c0_1 = arith.constant 0 : index
    %c0_2 = arith.constant 0 : index
    %1 = vector.load %arg2[%c0_1, %c0_2] : memref<1024x128xbf16, #tpu.memory_space<vmem>>, vector<1024x128xbf16>
    %cst = arith.constant dense<0.000000e+00> : vector<64x128xf32>
    %2 = tpu.matmul %0, %1, %cst {dimension_numbers = #tpu.dot_dimension_numbers<[1], [0], [0], [1], [0, 0, 1, 1], [], []>} : vector<64x1024xbf16>, vector<1024x128xbf16>, vector<64x128xf32> -> vector<64x128xf32>
    %3 = arith.truncf %2 : vector<64x128xf32> to vector<64x128xbf16>
    %c0_3 = arith.constant 0 : index
    %c0_4 = arith.constant 0 : index
    %4 = vector.load %arg3[%c0_3, %c0_4] : memref<64x128xbf16, #tpu.memory_space<vmem>>, vector<64x128xbf16>
    tpu.vector_store %arg3[%c0_3, %c0_4], %3 {strides = array<i32>} : memref<64x128xbf16, #tpu.memory_space<vmem>>, vector<64x128xbf16>,
    %cst_5 = arith.constant dense<0.000000e+00> : vector<128xf32>
    %5 = vector.multi_reduction <add>, %2, %cst_5 [0] : vector<64x128xf32> to vector<128xf32>
    %6 = vector.shape_cast %5 : vector<128xf32> to vector<1x128xf32>
    %7 = arith.mulf %2, %2 : vector<64x128xf32>
    %cst_6 = arith.constant dense<0.000000e+00> : vector<128xf32>
    %8 = vector.multi_reduction <add>, %7, %cst_6 [0] : vector<64x128xf32> to vector<128xf32>
    %9 = vector.shape_cast %8 : vector<128xf32> to vector<1x128xf32>
    %cst_7 = arith.constant 0.000000e+00 : f32
    %10 = vector.broadcast %cst_7 : f32 to vector<6x128xf32>
    %11 = tpu.concatenate %6, %9, %10 in 0 : vector<1x128xf32>, vector<1x128xf32>, vector<6x128xf32> -> vector<8x128xf32>
    %12 = vector.shape_cast %11 : vector<8x128xf32> to vector<1x8x128xf32>
    %c0_8 = arith.constant 0 : index
    %c0_9 = arith.constant 0 : index
    %c0_10 = arith.constant 0 : index
    %13 = vector.load %arg4[%c0_8, %c0_9, %c0_10] : memref<1x8x128xf32, #tpu.memory_space<vmem>>, vector<1x8x128xf32>
    tpu.vector_store %arg4[%c0_8, %c0_9, %c0_10], %12 {strides = array<i32>} : memref<1x8x128xf32, #tpu.memory_space<vmem>>, vector<1x8x128xf32>,
    return
  }
  func.func @transform_0(%arg0: i32) -> (i32, i32) {
    %c0_i32 = arith.constant 0 : i32
    %c0_i32_0 = arith.constant 0 : i32
    return %arg0, %c0_i32 : i32, i32
  }
  func.func @transform_1(%arg0: i32) -> (i32, i32) {
    %c0_i32 = arith.constant 0 : i32
    %c0_i32_0 = arith.constant 0 : i32
    %c0_i32_1 = arith.constant 0 : i32
    return %c0_i32, %c0_i32_0 : i32, i32
  }
  func.func @transform_2(%arg0: i32) -> (i32, i32) {
    %c0_i32 = arith.constant 0 : i32
    %c0_i32_0 = arith.constant 0 : i32
    return %arg0, %c0_i32 : i32, i32
  }
  func.func @transform_3(%arg0: i32) -> (i32, i32, i32) {
    %c0_i32 = arith.constant 0 : i32
    %c0_i32_0 = arith.constant 0 : i32
    %c0_i32_1 = arith.constant 0 : i32
    return %arg0, %c0_i32, %c0_i32_0 : i32, i32, i32
  }
}

module attributes {stable_mosaic.version = 11 : i64} {
  func.func @_affine_act_kernel(%arg0: i32, %arg1: memref<64x128xbf16, #tpu.memory_space<vmem>>, %arg2: memref<1x128xf32, #tpu.memory_space<vmem>>, %arg3: memref<1x128xf32, #tpu.memory_space<vmem>>, %arg4: memref<64x128xbf16, #tpu.memory_space<vmem>>) attributes {dimension_semantics = [#tpu.dimension_semantics<parallel>], iteration_bounds = array<i64: 2>, scalar_prefetch = 0 : i64, scratch_operands = 0 : i64, tpu.core_type = #tpu.core_type<tc>, window_params = [{transform_indices = @transform_0, window_bounds = array<i64: 64, 128>}, {pipeline_mode = #tpu.pipeline_mode<synchronous>, transform_indices = @transform_1, window_bounds = array<i64: 1, 128>}, {pipeline_mode = #tpu.pipeline_mode<synchronous>, transform_indices = @transform_2, window_bounds = array<i64: 1, 128>}, {transform_indices = @transform_3, window_bounds = array<i64: 64, 128>}]} {
    %c0 = arith.constant 0 : index
    %c0_0 = arith.constant 0 : index
    %0 = vector.load %arg1[%c0, %c0_0] : memref<64x128xbf16, #tpu.memory_space<vmem>>, vector<64x128xbf16>
    %1 = arith.extf %0 : vector<64x128xbf16> to vector<64x128xf32>
    %c0_1 = arith.constant 0 : index
    %c0_2 = arith.constant 0 : index
    %2 = vector.load %arg2[%c0_1, %c0_2] : memref<1x128xf32, #tpu.memory_space<vmem>>, vector<1x128xf32>
    %3 = vector.broadcast %2 : vector<1x128xf32> to vector<64x128xf32>
    %4 = arith.mulf %1, %3 : vector<64x128xf32>
    %c0_3 = arith.constant 0 : index
    %c0_4 = arith.constant 0 : index
    %5 = vector.load %arg3[%c0_3, %c0_4] : memref<1x128xf32, #tpu.memory_space<vmem>>, vector<1x128xf32>
    %6 = vector.broadcast %5 : vector<1x128xf32> to vector<64x128xf32>
    %7 = arith.addf %4, %6 : vector<64x128xf32>
    %cst = arith.constant 0.000000e+00 : f32
    %8 = vector.broadcast %cst : f32 to vector<64x128xf32>
    %9 = arith.maximumf %7, %8 : vector<64x128xf32>
    %10 = arith.truncf %9 : vector<64x128xf32> to vector<64x128xbf16>
    %c0_5 = arith.constant 0 : index
    %c0_6 = arith.constant 0 : index
    %11 = vector.load %arg4[%c0_5, %c0_6] : memref<64x128xbf16, #tpu.memory_space<vmem>>, vector<64x128xbf16>
    tpu.vector_store %arg4[%c0_5, %c0_6], %10 {strides = array<i32>} : memref<64x128xbf16, #tpu.memory_space<vmem>>, vector<64x128xbf16>,
    return
  }
  func.func @transform_0(%arg0: i32) -> (i32, i32) {
    %c0_i32 = arith.constant 0 : i32
    %c0_i32_0 = arith.constant 0 : i32
    return %arg0, %c0_i32 : i32, i32
  }
  func.func @transform_1(%arg0: i32) -> (i32, i32) {
    %c0_i32 = arith.constant 0 : i32
    %c0_i32_0 = arith.constant 0 : i32
    %c0_i32_1 = arith.constant 0 : i32
    return %c0_i32, %c0_i32_0 : i32, i32
  }
  func.func @transform_2(%arg0: i32) -> (i32, i32) {
    %c0_i32 = arith.constant 0 : i32
    %c0_i32_0 = arith.constant 0 : i32
    %c0_i32_1 = arith.constant 0 : i32
    return %c0_i32, %c0_i32_0 : i32, i32
  }
  func.func @transform_3(%arg0: i32) -> (i32, i32) {
    %c0_i32 = arith.constant 0 : i32
    %c0_i32_0 = arith.constant 0 : i32
    return %arg0, %c0_i32 : i32, i32
  }
}

module attributes {stable_mosaic.version = 11 : i64} {
  func.func @_matmul_stats_kernel(%arg0: i32, %arg1: memref<256x512xbf16, #tpu.memory_space<vmem>>, %arg2: memref<512x128xbf16, #tpu.memory_space<vmem>>, %arg3: memref<256x128xbf16, #tpu.memory_space<vmem>>, %arg4: memref<1x8x128xf32, #tpu.memory_space<vmem>>) attributes {dimension_semantics = [#tpu.dimension_semantics<parallel>], iteration_bounds = array<i64: 2>, scalar_prefetch = 0 : i64, scratch_operands = 0 : i64, tpu.core_type = #tpu.core_type<tc>, window_params = [{transform_indices = @transform_0, window_bounds = array<i64: 256, 512>}, {pipeline_mode = #tpu.pipeline_mode<synchronous>, transform_indices = @transform_1, window_bounds = array<i64: 512, 128>}, {transform_indices = @transform_2, window_bounds = array<i64: 256, 128>}, {transform_indices = @transform_3, window_bounds = array<i64: 1, 8, 128>}]} {
    %c0 = arith.constant 0 : index
    %c0_0 = arith.constant 0 : index
    %0 = vector.load %arg1[%c0, %c0_0] : memref<256x512xbf16, #tpu.memory_space<vmem>>, vector<256x512xbf16>
    %c0_1 = arith.constant 0 : index
    %c0_2 = arith.constant 0 : index
    %1 = vector.load %arg2[%c0_1, %c0_2] : memref<512x128xbf16, #tpu.memory_space<vmem>>, vector<512x128xbf16>
    %cst = arith.constant dense<0.000000e+00> : vector<256x128xf32>
    %2 = tpu.matmul %0, %1, %cst {dimension_numbers = #tpu.dot_dimension_numbers<[1], [0], [0], [1], [0, 0, 1, 1], [], []>} : vector<256x512xbf16>, vector<512x128xbf16>, vector<256x128xf32> -> vector<256x128xf32>
    %3 = arith.truncf %2 : vector<256x128xf32> to vector<256x128xbf16>
    %c0_3 = arith.constant 0 : index
    %c0_4 = arith.constant 0 : index
    %4 = vector.load %arg3[%c0_3, %c0_4] : memref<256x128xbf16, #tpu.memory_space<vmem>>, vector<256x128xbf16>
    tpu.vector_store %arg3[%c0_3, %c0_4], %3 {strides = array<i32>} : memref<256x128xbf16, #tpu.memory_space<vmem>>, vector<256x128xbf16>,
    %cst_5 = arith.constant dense<0.000000e+00> : vector<128xf32>
    %5 = vector.multi_reduction <add>, %2, %cst_5 [0] : vector<256x128xf32> to vector<128xf32>
    %6 = vector.shape_cast %5 : vector<128xf32> to vector<1x128xf32>
    %7 = arith.mulf %2, %2 : vector<256x128xf32>
    %cst_6 = arith.constant dense<0.000000e+00> : vector<128xf32>
    %8 = vector.multi_reduction <add>, %7, %cst_6 [0] : vector<256x128xf32> to vector<128xf32>
    %9 = vector.shape_cast %8 : vector<128xf32> to vector<1x128xf32>
    %cst_7 = arith.constant 0.000000e+00 : f32
    %10 = vector.broadcast %cst_7 : f32 to vector<6x128xf32>
    %11 = tpu.concatenate %6, %9, %10 in 0 : vector<1x128xf32>, vector<1x128xf32>, vector<6x128xf32> -> vector<8x128xf32>
    %12 = vector.shape_cast %11 : vector<8x128xf32> to vector<1x8x128xf32>
    %c0_8 = arith.constant 0 : index
    %c0_9 = arith.constant 0 : index
    %c0_10 = arith.constant 0 : index
    %13 = vector.load %arg4[%c0_8, %c0_9, %c0_10] : memref<1x8x128xf32, #tpu.memory_space<vmem>>, vector<1x8x128xf32>
    tpu.vector_store %arg4[%c0_8, %c0_9, %c0_10], %12 {strides = array<i32>} : memref<1x8x128xf32, #tpu.memory_space<vmem>>, vector<1x8x128xf32>,
    return
  }
  func.func @transform_0(%arg0: i32) -> (i32, i32) {
    %c0_i32 = arith.constant 0 : i32
    %c0_i32_0 = arith.constant 0 : i32
    return %arg0, %c0_i32 : i32, i32
  }
  func.func @transform_1(%arg0: i32) -> (i32, i32) {
    %c0_i32 = arith.constant 0 : i32
    %c0_i32_0 = arith.constant 0 : i32
    %c0_i32_1 = arith.constant 0 : i32
    return %c0_i32, %c0_i32_0 : i32, i32
  }
  func.func @transform_2(%arg0: i32) -> (i32, i32) {
    %c0_i32 = arith.constant 0 : i32
    %c0_i32_0 = arith.constant 0 : i32
    return %arg0, %c0_i32 : i32, i32
  }
  func.func @transform_3(%arg0: i32) -> (i32, i32, i32) {
    %c0_i32 = arith.constant 0 : i32
    %c0_i32_0 = arith.constant 0 : i32
    %c0_i32_1 = arith.constant 0 : i32
    return %arg0, %c0_i32, %c0_i32_0 : i32, i32, i32
  }
}

module attributes {stable_mosaic.version = 11 : i64} {
  func.func @_affine_act_kernel(%arg0: i32, %arg1: memref<256x128xbf16, #tpu.memory_space<vmem>>, %arg2: memref<1x128xf32, #tpu.memory_space<vmem>>, %arg3: memref<1x128xf32, #tpu.memory_space<vmem>>, %arg4: memref<256x128xbf16, #tpu.memory_space<vmem>>) attributes {dimension_semantics = [#tpu.dimension_semantics<parallel>], iteration_bounds = array<i64: 2>, scalar_prefetch = 0 : i64, scratch_operands = 0 : i64, tpu.core_type = #tpu.core_type<tc>, window_params = [{transform_indices = @transform_0, window_bounds = array<i64: 256, 128>}, {pipeline_mode = #tpu.pipeline_mode<synchronous>, transform_indices = @transform_1, window_bounds = array<i64: 1, 128>}, {pipeline_mode = #tpu.pipeline_mode<synchronous>, transform_indices = @transform_2, window_bounds = array<i64: 1, 128>}, {transform_indices = @transform_3, window_bounds = array<i64: 256, 128>}]} {
    %c0 = arith.constant 0 : index
    %c0_0 = arith.constant 0 : index
    %0 = vector.load %arg1[%c0, %c0_0] : memref<256x128xbf16, #tpu.memory_space<vmem>>, vector<256x128xbf16>
    %1 = arith.extf %0 : vector<256x128xbf16> to vector<256x128xf32>
    %c0_1 = arith.constant 0 : index
    %c0_2 = arith.constant 0 : index
    %2 = vector.load %arg2[%c0_1, %c0_2] : memref<1x128xf32, #tpu.memory_space<vmem>>, vector<1x128xf32>
    %3 = vector.broadcast %2 : vector<1x128xf32> to vector<256x128xf32>
    %4 = arith.mulf %1, %3 : vector<256x128xf32>
    %c0_3 = arith.constant 0 : index
    %c0_4 = arith.constant 0 : index
    %5 = vector.load %arg3[%c0_3, %c0_4] : memref<1x128xf32, #tpu.memory_space<vmem>>, vector<1x128xf32>
    %6 = vector.broadcast %5 : vector<1x128xf32> to vector<256x128xf32>
    %7 = arith.addf %4, %6 : vector<256x128xf32>
    %cst = arith.constant 0.000000e+00 : f32
    %8 = vector.broadcast %cst : f32 to vector<256x128xf32>
    %9 = arith.maximumf %7, %8 : vector<256x128xf32>
    %10 = arith.truncf %9 : vector<256x128xf32> to vector<256x128xbf16>
    %c0_5 = arith.constant 0 : index
    %c0_6 = arith.constant 0 : index
    %11 = vector.load %arg4[%c0_5, %c0_6] : memref<256x128xbf16, #tpu.memory_space<vmem>>, vector<256x128xbf16>
    tpu.vector_store %arg4[%c0_5, %c0_6], %10 {strides = array<i32>} : memref<256x128xbf16, #tpu.memory_space<vmem>>, vector<256x128xbf16>,
    return
  }
  func.func @transform_0(%arg0: i32) -> (i32, i32) {
    %c0_i32 = arith.constant 0 : i32
    %c0_i32_0 = arith.constant 0 : i32
    return %arg0, %c0_i32 : i32, i32
  }
  func.func @transform_1(%arg0: i32) -> (i32, i32) {
    %c0_i32 = arith.constant 0 : i32
    %c0_i32_0 = arith.constant 0 : i32
    %c0_i32_1 = arith.constant 0 : i32
    return %c0_i32, %c0_i32_0 : i32, i32
  }
  func.func @transform_2(%arg0: i32) -> (i32, i32) {
    %c0_i32 = arith.constant 0 : i32
    %c0_i32_0 = arith.constant 0 : i32
    %c0_i32_1 = arith.constant 0 : i32
    return %c0_i32, %c0_i32_0 : i32, i32
  }
  func.func @transform_3(%arg0: i32) -> (i32, i32) {
    %c0_i32 = arith.constant 0 : i32
    %c0_i32_0 = arith.constant 0 : i32
    return %arg0, %c0_i32 : i32, i32
  }
}

module attributes {stable_mosaic.version = 11 : i64} {
  func.func @_matmul_stats_kernel(%arg0: i32, %arg1: memref<512x256xbf16, #tpu.memory_space<vmem>>, %arg2: memref<256x128xbf16, #tpu.memory_space<vmem>>, %arg3: memref<512x128xbf16, #tpu.memory_space<vmem>>, %arg4: memref<1x8x128xf32, #tpu.memory_space<vmem>>) attributes {dimension_semantics = [#tpu.dimension_semantics<parallel>], iteration_bounds = array<i64: 4>, scalar_prefetch = 0 : i64, scratch_operands = 0 : i64, tpu.core_type = #tpu.core_type<tc>, window_params = [{transform_indices = @transform_0, window_bounds = array<i64: 512, 256>}, {pipeline_mode = #tpu.pipeline_mode<synchronous>, transform_indices = @transform_1, window_bounds = array<i64: 256, 128>}, {transform_indices = @transform_2, window_bounds = array<i64: 512, 128>}, {transform_indices = @transform_3, window_bounds = array<i64: 1, 8, 128>}]} {
    %c0 = arith.constant 0 : index
    %c0_0 = arith.constant 0 : index
    %0 = vector.load %arg1[%c0, %c0_0] : memref<512x256xbf16, #tpu.memory_space<vmem>>, vector<512x256xbf16>
    %c0_1 = arith.constant 0 : index
    %c0_2 = arith.constant 0 : index
    %1 = vector.load %arg2[%c0_1, %c0_2] : memref<256x128xbf16, #tpu.memory_space<vmem>>, vector<256x128xbf16>
    %cst = arith.constant dense<0.000000e+00> : vector<512x128xf32>
    %2 = tpu.matmul %0, %1, %cst {dimension_numbers = #tpu.dot_dimension_numbers<[1], [0], [0], [1], [0, 0, 1, 1], [], []>} : vector<512x256xbf16>, vector<256x128xbf16>, vector<512x128xf32> -> vector<512x128xf32>
    %3 = arith.truncf %2 : vector<512x128xf32> to vector<512x128xbf16>
    %c0_3 = arith.constant 0 : index
    %c0_4 = arith.constant 0 : index
    %4 = vector.load %arg3[%c0_3, %c0_4] : memref<512x128xbf16, #tpu.memory_space<vmem>>, vector<512x128xbf16>
    tpu.vector_store %arg3[%c0_3, %c0_4], %3 {strides = array<i32>} : memref<512x128xbf16, #tpu.memory_space<vmem>>, vector<512x128xbf16>,
    %cst_5 = arith.constant dense<0.000000e+00> : vector<128xf32>
    %5 = vector.multi_reduction <add>, %2, %cst_5 [0] : vector<512x128xf32> to vector<128xf32>
    %6 = vector.shape_cast %5 : vector<128xf32> to vector<1x128xf32>
    %7 = arith.mulf %2, %2 : vector<512x128xf32>
    %cst_6 = arith.constant dense<0.000000e+00> : vector<128xf32>
    %8 = vector.multi_reduction <add>, %7, %cst_6 [0] : vector<512x128xf32> to vector<128xf32>
    %9 = vector.shape_cast %8 : vector<128xf32> to vector<1x128xf32>
    %cst_7 = arith.constant 0.000000e+00 : f32
    %10 = vector.broadcast %cst_7 : f32 to vector<6x128xf32>
    %11 = tpu.concatenate %6, %9, %10 in 0 : vector<1x128xf32>, vector<1x128xf32>, vector<6x128xf32> -> vector<8x128xf32>
    %12 = vector.shape_cast %11 : vector<8x128xf32> to vector<1x8x128xf32>
    %c0_8 = arith.constant 0 : index
    %c0_9 = arith.constant 0 : index
    %c0_10 = arith.constant 0 : index
    %13 = vector.load %arg4[%c0_8, %c0_9, %c0_10] : memref<1x8x128xf32, #tpu.memory_space<vmem>>, vector<1x8x128xf32>
    tpu.vector_store %arg4[%c0_8, %c0_9, %c0_10], %12 {strides = array<i32>} : memref<1x8x128xf32, #tpu.memory_space<vmem>>, vector<1x8x128xf32>,
    return
  }
  func.func @transform_0(%arg0: i32) -> (i32, i32) {
    %c0_i32 = arith.constant 0 : i32
    %c0_i32_0 = arith.constant 0 : i32
    return %arg0, %c0_i32 : i32, i32
  }
  func.func @transform_1(%arg0: i32) -> (i32, i32) {
    %c0_i32 = arith.constant 0 : i32
    %c0_i32_0 = arith.constant 0 : i32
    %c0_i32_1 = arith.constant 0 : i32
    return %c0_i32, %c0_i32_0 : i32, i32
  }
  func.func @transform_2(%arg0: i32) -> (i32, i32) {
    %c0_i32 = arith.constant 0 : i32
    %c0_i32_0 = arith.constant 0 : i32
    return %arg0, %c0_i32 : i32, i32
  }
  func.func @transform_3(%arg0: i32) -> (i32, i32, i32) {
    %c0_i32 = arith.constant 0 : i32
    %c0_i32_0 = arith.constant 0 : i32
    %c0_i32_1 = arith.constant 0 : i32
    return %arg0, %c0_i32, %c0_i32_0 : i32, i32, i32
  }
}

module attributes {stable_mosaic.version = 11 : i64} {
  func.func @_affine_act_kernel(%arg0: i32, %arg1: memref<512x128xbf16, #tpu.memory_space<vmem>>, %arg2: memref<1x128xf32, #tpu.memory_space<vmem>>, %arg3: memref<1x128xf32, #tpu.memory_space<vmem>>, %arg4: memref<512x128xbf16, #tpu.memory_space<vmem>>) attributes {dimension_semantics = [#tpu.dimension_semantics<parallel>], iteration_bounds = array<i64: 4>, scalar_prefetch = 0 : i64, scratch_operands = 0 : i64, tpu.core_type = #tpu.core_type<tc>, window_params = [{transform_indices = @transform_0, window_bounds = array<i64: 512, 128>}, {pipeline_mode = #tpu.pipeline_mode<synchronous>, transform_indices = @transform_1, window_bounds = array<i64: 1, 128>}, {pipeline_mode = #tpu.pipeline_mode<synchronous>, transform_indices = @transform_2, window_bounds = array<i64: 1, 128>}, {transform_indices = @transform_3, window_bounds = array<i64: 512, 128>}]} {
    %c0 = arith.constant 0 : index
    %c0_0 = arith.constant 0 : index
    %0 = vector.load %arg1[%c0, %c0_0] : memref<512x128xbf16, #tpu.memory_space<vmem>>, vector<512x128xbf16>
    %1 = arith.extf %0 : vector<512x128xbf16> to vector<512x128xf32>
    %c0_1 = arith.constant 0 : index
    %c0_2 = arith.constant 0 : index
    %2 = vector.load %arg2[%c0_1, %c0_2] : memref<1x128xf32, #tpu.memory_space<vmem>>, vector<1x128xf32>
    %3 = vector.broadcast %2 : vector<1x128xf32> to vector<512x128xf32>
    %4 = arith.mulf %1, %3 : vector<512x128xf32>
    %c0_3 = arith.constant 0 : index
    %c0_4 = arith.constant 0 : index
    %5 = vector.load %arg3[%c0_3, %c0_4] : memref<1x128xf32, #tpu.memory_space<vmem>>, vector<1x128xf32>
    %6 = vector.broadcast %5 : vector<1x128xf32> to vector<512x128xf32>
    %7 = arith.addf %4, %6 : vector<512x128xf32>
    %cst = arith.constant 0.000000e+00 : f32
    %8 = vector.broadcast %cst : f32 to vector<512x128xf32>
    %9 = arith.maximumf %7, %8 : vector<512x128xf32>
    %10 = arith.truncf %9 : vector<512x128xf32> to vector<512x128xbf16>
    %c0_5 = arith.constant 0 : index
    %c0_6 = arith.constant 0 : index
    %11 = vector.load %arg4[%c0_5, %c0_6] : memref<512x128xbf16, #tpu.memory_space<vmem>>, vector<512x128xbf16>
    tpu.vector_store %arg4[%c0_5, %c0_6], %10 {strides = array<i32>} : memref<512x128xbf16, #tpu.memory_space<vmem>>, vector<512x128xbf16>,
    return
  }
  func.func @transform_0(%arg0: i32) -> (i32, i32) {
    %c0_i32 = arith.constant 0 : i32
    %c0_i32_0 = arith.constant 0 : i32
    return %arg0, %c0_i32 : i32, i32
  }
  func.func @transform_1(%arg0: i32) -> (i32, i32) {
    %c0_i32 = arith.constant 0 : i32
    %c0_i32_0 = arith.constant 0 : i32
    %c0_i32_1 = arith.constant 0 : i32
    return %c0_i32, %c0_i32_0 : i32, i32
  }
  func.func @transform_2(%arg0: i32) -> (i32, i32) {
    %c0_i32 = arith.constant 0 : i32
    %c0_i32_0 = arith.constant 0 : i32
    %c0_i32_1 = arith.constant 0 : i32
    return %c0_i32, %c0_i32_0 : i32, i32
  }
  func.func @transform_3(%arg0: i32) -> (i32, i32) {
    %c0_i32 = arith.constant 0 : i32
    %c0_i32_0 = arith.constant 0 : i32
    return %arg0, %c0_i32 : i32, i32
  }
}

module attributes {stable_mosaic.version = 11 : i64} {
  func.func @_matmul_epilogue_kernel(%arg0: i32, %arg1: memref<512x128xbf16, #tpu.memory_space<vmem>>, %arg2: memref<128x128xbf16, #tpu.memory_space<vmem>>, %arg3: memref<1x128xf32, #tpu.memory_space<vmem>>, %arg4: memref<1x128xf32, #tpu.memory_space<vmem>>, %arg5: memref<512x128xf32, #tpu.memory_space<vmem>>) attributes {dimension_semantics = [#tpu.dimension_semantics<parallel>], iteration_bounds = array<i64: 16>, scalar_prefetch = 0 : i64, scratch_operands = 0 : i64, tpu.core_type = #tpu.core_type<tc>, window_params = [{transform_indices = @transform_0, window_bounds = array<i64: 512, 128>}, {pipeline_mode = #tpu.pipeline_mode<synchronous>, transform_indices = @transform_1, window_bounds = array<i64: 128, 128>}, {pipeline_mode = #tpu.pipeline_mode<synchronous>, transform_indices = @transform_2, window_bounds = array<i64: 1, 128>}, {pipeline_mode = #tpu.pipeline_mode<synchronous>, transform_indices = @transform_3, window_bounds = array<i64: 1, 128>}, {transform_indices = @transform_4, window_bounds = array<i64: 512, 128>}]} {
    %c0 = arith.constant 0 : index
    %c0_0 = arith.constant 0 : index
    %0 = vector.load %arg1[%c0, %c0_0] : memref<512x128xbf16, #tpu.memory_space<vmem>>, vector<512x128xbf16>
    %c0_1 = arith.constant 0 : index
    %c0_2 = arith.constant 0 : index
    %1 = vector.load %arg2[%c0_1, %c0_2] : memref<128x128xbf16, #tpu.memory_space<vmem>>, vector<128x128xbf16>
    %cst = arith.constant dense<0.000000e+00> : vector<512x128xf32>
    %2 = tpu.matmul %0, %1, %cst {dimension_numbers = #tpu.dot_dimension_numbers<[1], [0], [0], [1], [0, 0, 1, 1], [], []>} : vector<512x128xbf16>, vector<128x128xbf16>, vector<512x128xf32> -> vector<512x128xf32>
    %c0_3 = arith.constant 0 : index
    %c0_4 = arith.constant 0 : index
    %3 = vector.load %arg3[%c0_3, %c0_4] : memref<1x128xf32, #tpu.memory_space<vmem>>, vector<1x128xf32>
    %4 = vector.broadcast %3 : vector<1x128xf32> to vector<512x128xf32>
    %5 = arith.mulf %2, %4 : vector<512x128xf32>
    %c0_5 = arith.constant 0 : index
    %c0_6 = arith.constant 0 : index
    %6 = vector.load %arg4[%c0_5, %c0_6] : memref<1x128xf32, #tpu.memory_space<vmem>>, vector<1x128xf32>
    %7 = vector.broadcast %6 : vector<1x128xf32> to vector<512x128xf32>
    %8 = arith.addf %5, %7 : vector<512x128xf32>
    %9 = math.tanh %8 : vector<512x128xf32>
    %c0_7 = arith.constant 0 : index
    %c0_8 = arith.constant 0 : index
    %10 = vector.load %arg5[%c0_7, %c0_8] : memref<512x128xf32, #tpu.memory_space<vmem>>, vector<512x128xf32>
    tpu.vector_store %arg5[%c0_7, %c0_8], %9 {strides = array<i32>} : memref<512x128xf32, #tpu.memory_space<vmem>>, vector<512x128xf32>,
    return
  }
  func.func @transform_0(%arg0: i32) -> (i32, i32) {
    %c0_i32 = arith.constant 0 : i32
    %c0_i32_0 = arith.constant 0 : i32
    return %arg0, %c0_i32 : i32, i32
  }
  func.func @transform_1(%arg0: i32) -> (i32, i32) {
    %c0_i32 = arith.constant 0 : i32
    %c0_i32_0 = arith.constant 0 : i32
    %c0_i32_1 = arith.constant 0 : i32
    return %c0_i32, %c0_i32_0 : i32, i32
  }
  func.func @transform_2(%arg0: i32) -> (i32, i32) {
    %c0_i32 = arith.constant 0 : i32
    %c0_i32_0 = arith.constant 0 : i32
    %c0_i32_1 = arith.constant 0 : i32
    return %c0_i32, %c0_i32_0 : i32, i32
  }
  func.func @transform_3(%arg0: i32) -> (i32, i32) {
    %c0_i32 = arith.constant 0 : i32
    %c0_i32_0 = arith.constant 0 : i32
    %c0_i32_1 = arith.constant 0 : i32
    return %c0_i32, %c0_i32_0 : i32, i32
  }
  func.func @transform_4(%arg0: i32) -> (i32, i32) {
    %c0_i32 = arith.constant 0 : i32
    %c0_i32_0 = arith.constant 0 : i32
    return %arg0, %c0_i32 : i32, i32
  }
}

</mosaic_0001>

<bundles_post_ra>
// kernel: generator_forward.10
= control target key start
LH: loop header
LB: loop body
LE: loop exit
PB: predicated region body
PF: predicated region fallthrough
CT: control target
= control target key end

     0   :  { %s326_s12 = smov 0   ;;  %s343_s0 = inlined_call_operand.vmem [shape: bf16[32,128], index: 0, kind: input, shape index: {}]   ;;  %s344_s1 = inlined_call_operand.vmem [shape: f32[1,128], index: 1, kind: input, shape index: {}]   ;;  %s345_s2 = inlined_call_operand.vmem [shape: f32[1,128], index: 2, kind: input, shape index: {}]   ;;  %s346_s3 = inlined_call_operand.vmem [shape: bf16[32,128], index: 3, kind: output, shape index: {}]  }
   0x1 LB: > { %s264_s13 = sadd.s32 4294967295, %s304_s12   ;;  %p268_p0 = scmp.ge.s32.totalorder %s304_s12, 1  ;;  %s304_s12 = sphi %s326_s12, %s13_s12  }
   0x2   : > { %p138_p1 = scmp.lt.s32.totalorder %s304_s12, 3 }
   0x4   : > { %p139_p2 = pnand %p268_p0, %p138_p1 }
   0x5   : > { %s269_s14 = sshll.u32 (!%p139_p2), %s264_s13, 1  ;;  %v273_v1 = vld [vmem:[%s344_s1] ss:$0 sm:$0xff] (!%p139_p2) }
   0x6   : > { %142 = sbr.rel (%p139_p2) target bundleno = 28 (0x1c), region = 32  ;;  %p163_p3 = scmp.lt.s32.totalorder (!%p139_p2), %s269_s14, 3  ;;  %v274_v4 = vld [vmem:[%s345_s2] ss:$0 sm:$0xff] (!%p139_p2) }
   0xd   : > { %s348_s14 = smov (!%p163_p3, %s269_s14), 3 }
   0xe   : > { %s270_s15 = sshll.u32 %s348_s14, 2 }
   0xf   : > { %s166_s18 = scalar_lea.vmem %s343_s0, %s270_s15  ;;  %s172_s25 = scalar_lea.vmem %s346_s3, %s270_s15 }
  0x10   : > { %v282_v0 = vld [vmem:[%s166_s18] sm:$0xff]  }
  0x11   : > { %v283_v2 = vunpack.c.l.bf16 %v282_v0  ;;  %v284_v3 = vunpack.c.h.bf16 %v282_v0 }
  0x13   : > { %v185_v5 = vmul.f32 %v283_v2, %v273_v1  ;;  %v186_v6 = vmul.f32 %v284_v3, %v273_v1 }
  0x15   : > { %v194_v7 = vadd.f32 %v274_v4, %v185_v5  ;;  %v195_v8 = vadd.f32 %v274_v4, %v186_v6 }
  0x17   : > { %v196_v9 = vmax.f32 %v194_v7, 0.0  ;;  %v197_v10 = vmax.f32 %v195_v8, 0.0 }
  0x19   : > { %v288_v11 = vpack.c.bf16 %v197_v10, %v196_v9 }
  0x1b   : > { %289 = vst [vmem:[%s172_s25] sm:$0xff] %v288_v11  }
  0x1c PF: > { %s13_s12 = sadd.s32 1, %s304_s12  }
  0x1d   : > { %p10_p4 = scmp.ge.s32.totalorder %s13_s12, 4  }
  0x1f   :  { %12 = sbr.rel (!%p10_p4) target bundleno = 1 (0x1), region = 62 }

// kernel: generator_forward.9
= control target key start
LH: loop header
LB: loop body
LE: loop exit
PB: predicated region body
PF: predicated region fallthrough
CT: control target
= control target key end

     0   :  { %s846_s12 = smov 0   ;;  %s971_s0 = inlined_call_operand.vmem [shape: bf16[32,512], index: 0, kind: input, shape index: {}]   ;;  %s972_s1 = inlined_call_operand.vmem [shape: bf16[512,128], index: 1, kind: input, shape index: {}]   ;;  %s973_s2 = inlined_call_operand.vmem [shape: bf16[32,128], index: 2, kind: output, shape index: {0}]   ;;  %s974_s3 = inlined_call_operand.vmem [shape: f32[2,8,128], index: 3, kind: output, shape index: {1}]  }
   0x1 LB: > { %s852_s13 = sadd.s32 4294967295, %s824_s12   ;;  %p673_p0 = scmp.ge.s32.totalorder %s824_s12, 1  ;;  %s824_s12 = sphi %s846_s12, %s14_s12  }
   0x2   : > { %p142_p1 = scmp.lt.s32.totalorder %s824_s12, 3 }
   0x4   : > { %p143_p2 = pnand %p673_p0, %p142_p1 }
   0x5   : > { %v780_v0 = vld [vmem:[%s972_s1 + $0x40] sm:$0xff] (!%p143_p2)   ;;  %v784_v4 = vld [vmem:[%s972_s1 + $0x48] sm:$0xff] (!%p143_p2)   ;;  %v788_v8 = vld [vmem:[%s972_s1 + $0x50] sm:$0xff] (!%p143_p2)   ;;  %s674_s21 = sshll.u32 (!%p143_p2), %s852_s13, 1  ;;  %p184_p4 = scmp.lt.s32.totalorder (!%p143_p2), %s852_s13, 1  ;;  %vm577_vm0 = vcmask (!%p143_p2), 1040384  }
   0x6   : > { %146 = sbr.rel (%p143_p2) target bundleno = 278 (0x116), region = 28  ;;  %v781_v1 = vld [vmem:[%s972_s1 + $0xc0] sm:$0xff] (!%p143_p2)   ;;  %728 = vmatprep.subr.bf16.mxu0 (!%p143_p2), %v780_v0  ;;  %v785_v5 = vld [vmem:[%s972_s1 + $0xc8] sm:$0xff] (!%p143_p2)   ;;  %v789_v9 = vld [vmem:[%s972_s1 + $0xd0] sm:$0xff] (!%p143_p2)   ;;  %p172_p3 = scmp.lt.s32.totalorder (!%p143_p2), %s674_s21, 3  ;;  %vm579_vm1 = vcmask (!%p143_p2), 1041408  }
   0x7   : > { %v782_v2 = vld [vmem:[%s972_s1] sm:$0xff] (!%p143_p2)   ;;  %750 = vmatprep.subr.bf16.mxu1 (!%p143_p2), %v781_v1  ;;  %v786_v6 = vld [vmem:[%s972_s1 + $0x8] sm:$0xff] (!%p143_p2)   ;;  %v790_v10 = vld [vmem:[%s972_s1 + $0x10] sm:$0xff] (!%p143_p2)  }
   0x8   : > { %v783_v3 = vld [vmem:[%s972_s1 + $0x80] sm:$0xff] (!%p143_p2)   ;;  %729 = vmatpush3.bf16.msra.mxu0 (!%p143_p2), %v782_v2  ;;  %v787_v7 = vld [vmem:[%s972_s1 + $0x88] sm:$0xff] (!%p143_p2)   ;;  %v791_v11 = vld [vmem:[%s972_s1 + $0x90] sm:$0xff] (!%p143_p2)  }
   0x9   : > { %751 = vmatpush3.bf16.msra.mxu1 (!%p143_p2), %v783_v3  ;;  %730 = vmatprep.subr.bf16.mxu0 (!%p143_p2), %v784_v4  ;;  %v792_v12 = vld [vmem:[%s972_s1 + $0x58] sm:$0xff] (!%p143_p2)   ;;  %v796_v16 = vld [vmem:[%s972_s1 + $0x60] sm:$0xff] (!%p143_p2)   ;;  %v800_v20 = vld [vmem:[%s972_s1 + $0x68] sm:$0xff] (!%p143_p2)  }
   0xa   : > { %752 = vmatprep.subr.bf16.mxu1 (!%p143_p2), %v785_v5  ;;  %v793_v13 = vld [vmem:[%s972_s1 + $0xd8] sm:$0xff] (!%p143_p2)   ;;  %v797_v17 = vld [vmem:[%s972_s1 + $0xe0] sm:$0xff] (!%p143_p2)   ;;  %v801_v21 = vld [vmem:[%s972_s1 + $0xe8] sm:$0xff] (!%p143_p2)  }
   0xb   : > { %v794_v14 = vld [vmem:[%s972_s1 + $0x18] sm:$0xff] (!%p143_p2)   ;;  %v798_v18 = vld [vmem:[%s972_s1 + $0x20] sm:$0xff] (!%p143_p2)   ;;  %v802_v22 = vld [vmem:[%s972_s1 + $0x28] sm:$0xff] (!%p143_p2)  }
   0xc   : > { %731 = vmatpush3.bf16.msra.mxu0 (!%p143_p2), %v786_v6  ;;  %v795_v15 = vld [vmem:[%s972_s1 + $0x98] sm:$0xff] (!%p143_p2)   ;;  %v799_v19 = vld [vmem:[%s972_s1 + $0xa0] sm:$0xff] (!%p143_p2)   ;;  %v803_v23 = vld [vmem:[%s972_s1 + $0xa8] sm:$0xff] (!%p143_p2)  }
   0xd   : > { %753 = vmatpush3.bf16.msra.mxu1 %v787_v7  ;;  %732 = vmatprep.subr.bf16.mxu0 %v788_v8  ;;  %s976_s21 = smov (!%p172_p3, %s674_s21), 3  ;;  %v804_v24 = vld [vmem:[%s972_s1 + $0x70] sm:$0xff]   ;;  %v808_v28 = vld [vmem:[%s972_s1 + $0x78] sm:$0xff]   ;;  %s978_s13 = smov (!%p184_p4, %s852_s13), 1 }
   0xe   : > { %754 = vmatprep.subr.bf16.mxu1 %v789_v9  ;;  %v805_v25 = vld [vmem:[%s972_s1 + $0xf0] sm:$0xff]   ;;  %s720_s19 = sshll.u32 %s976_s21, 4  ;;  %v809_v29 = vld [vmem:[%s972_s1 + $0xf8] sm:$0xff]   ;;  %s678_s7 = sshll.u32 %s976_s21, 2 }
   0xf   : > { %v806_v26 = vld [vmem:[%s972_s1 + $0x30] sm:$0xff]   ;;  %s176_s29 = scalar_lea.vmem %s971_s0, %s720_s19  ;;  %v810_v30 = vld [vmem:[%s972_s1 + $0x38] sm:$0xff]   ;;  %s182_s10 = scalar_lea.vmem %s973_s2, %s678_s7 }
  0x10   : > { %733 = vmatpush3.bf16.msra.mxu0 %v790_v10  ;;  %v807_v27 = vld [vmem:[%s972_s1 + $0xb0] sm:$0xff]   ;;  %v811_v31 = vld [vmem:[%s972_s1 + $0xb8] sm:$0xff]   ;;  %s679_s21 = sshll.u32 %s978_s13, 3 }
  0x11   : > { %755 = vmatpush3.bf16.msra.mxu1 %v791_v11  ;;  %734 = vmatprep.subr.bf16.mxu0 %v792_v12  ;;  %v812_v32 = vld [vmem:[%s176_s29] ss:$16 sps:$4 sm:$0xff]   ;;  %v814_v33 = vld [vmem:[%s176_s29 + $0x4] ss:$16 sps:$4 sm:$0xff]   ;;  %v815_v34 = vld [vmem:[%s176_s29 + $0x8] ss:$16 sps:$4 sm:$0xff]   ;;  %s187_s15 = scalar_lea.vmem %s974_s3, %s679_s21 }
  0x12   : > { %756 = vmatprep.subr.bf16.mxu1 %v793_v13  ;;  %v817_v35 = vld [vmem:[%s176_s29 + $0xc] ss:$16 sps:$4 sm:$0xff]   ;;  %501 = vmatprep.mubr.bf16.mxu0 %v814_v33 }
  0x13   : > { %542 = vmatprep.mubr.bf16.mxu1 %v817_v35 }
  0x14   : > { %735 = vmatpush3.bf16.msra.mxu0 %v794_v14 }
  0x15   : > { %757 = vmatpush3.bf16.msra.mxu1 %v795_v15  ;;  %736 = vmatprep.subr.bf16.mxu0 %v796_v16 }
  0x16   : > { %758 = vmatprep.subr.bf16.mxu1 %v797_v17 }
  0x18   : > { %737 = vmatpush3.bf16.msra.mxu0 %v798_v18 }
  0x19   : > { %759 = vmatpush3.bf16.msra.mxu1 %v799_v19  ;;  %738 = vmatprep.subr.bf16.mxu0 %v800_v20 }
  0x1a   : > { %760 = vmatprep.subr.bf16.mxu1 %v801_v21 }
  0x1c   : > { %739 = vmatpush3.bf16.msra.mxu0 %v802_v22 }
  0x1d   : > { %761 = vmatpush3.bf16.msra.mxu1 %v803_v23  ;;  %740 = vmatprep.subr.bf16.mxu0 %v804_v24 }
  0x1e   : > { %762 = vmatprep.subr.bf16.mxu1 %v805_v25 }
  0x20   : > { %741 = vmatpush3.bf16.msra.mxu0 %v806_v26 }
  0x21   : > { %763 = vmatpush3.bf16.msra.mxu1 %v807_v27  ;;  %742 = vmatprep.subr.bf16.mxu0 %v808_v28 }
  0x22   : > { %764 = vmatprep.subr.bf16.mxu1 %v809_v29 }
  0x24   : > { %743 = vmatpush3.bf16.msra.mxu0 %v810_v30 }
  0x25   : > { %765 = vmatpush3.bf16.msra.mxu1 %v811_v31 }
  0x27   : > { %502 = vmatmul.mubr.bf16.vlgmr.msra.gmra.mrb[0].mxu0 %v812_v32 }
  0x28   : > { %543 = vmatmul.mubr.bf16.vlgmr.msra.gmra.mrb[0].mxu1 %v815_v34 }
  0xfa   : > { %v744_v36 = vpop.f32.mrb[0].mxu0 }
  0xfb   : > { %v766_v37 = vpop.f32.mrb[0].mxu1  ;;  %v745_v38 = vpop.f32.mrb[1].mxu0 }
  0xfc   : > { %v746_v39 = vadd.f32 %v745_v38, %v744_v36  ;;  %v767_v40 = vpop.f32.mrb[1].mxu1  ;;  %v747_v41 = vpop.f32.mrb[2].mxu0 }
  0xfd   : > { %v768_v42 = vadd.f32 %v767_v40, %v766_v37  ;;  %v769_v43 = vpop.f32.mrb[2].mxu1  ;;  %v748_v44 = vpop.f32.mrb[3].mxu0 }
  0xfe   : > { %v749_v45 = vadd.f32 %v748_v44, %v747_v41  ;;  %v770_v46 = vpop.f32.mrb[3].mxu1 }
  0xff   : > { %v545_v47 = vadd.f32 %v768_v42, %v746_v39  ;;  %v771_v48 = vadd.f32 %v770_v46, %v769_v43 }
 0x101   : > { %v548_v49 = vadd.f32 %v771_v48, %v749_v45  ;;  %v568_v50 = vmul.f32 %v545_v47, %v545_v47 }
 0x103   : > { %v726_v51 = vpack.c.bf16 %v548_v49, %v545_v47  ;;  %v561_v52 = vadd.f32 %v548_v49, %v545_v47  ;;  %v569_v53 = vmul.f32 %v548_v49, %v548_v49 }
 0x105   : > { %727 = vst [vmem:[%s182_s10] sm:$0xff] %v726_v51   ;;  %v562_v54 = vrot.slane %v561_v52, 4  ;;  %v570_v55 = vadd.f32 %v569_v53, %v568_v50 }
 0x107   : > { %v563_v56 = vadd.f32 %v562_v54, %v561_v52  ;;  %v571_v57 = vrot.slane %v570_v55, 4 }
 0x109   : > { %v564_v58 = vrot.slane %v563_v56, 2  ;;  %v572_v59 = vadd.f32 %v571_v57, %v570_v55 }
 0x10b   : > { %v565_v60 = vadd.f32 %v564_v58, %v563_v56  ;;  %v573_v61 = vrot.slane %v572_v59, 2 }
 0x10d   : > { %v566_v62 = vrot.slane %v565_v60, 1  ;;  %v574_v63 = vadd.f32 %v573_v61, %v572_v59 }
 0x10f   : > { %v575_v0 = vrot.slane %v574_v63, 1  ;;  %v567_v1 = vadd.f32 %v566_v62, %v565_v60 }
 0x111   : > { %v576_v2 = vadd.f32 %v575_v0, %v574_v63 }
 0x113   : > { %v578_v3 = vsel %vm577_vm0, %v567_v1, %v576_v2 }
 0x114   : > { %v580_v4 = vsel %vm579_vm1, %v578_v3, 0.0 }
 0x115   : > { %581 = vst [vmem:[%s187_s15] sm:$0xff] %v580_v4 }
 0x116 PF: > { %s14_s12 = sadd.s32 1, %s824_s12  }
 0x117   : > { %p11_p5 = scmp.ge.s32.totalorder %s14_s12, 4  }
 0x119   :  { %13 = sbr.rel (!%p11_p5) target bundleno = 1 (0x1), region = 70 }

// kernel: generator_forward.12
= control target key start
LH: loop header
LB: loop body
LE: loop exit
PB: predicated region body
PF: predicated region fallthrough
CT: control target
= control target key end

     0   :  { %s431_s12 = smov 0   ;;  %s461_s0 = inlined_call_operand.vmem [shape: bf16[128,128], index: 0, kind: input, shape index: {}]   ;;  %s462_s1 = inlined_call_operand.vmem [shape: f32[1,128], index: 1, kind: input, shape index: {}]   ;;  %s463_s2 = inlined_call_operand.vmem [shape: f32[1,128], index: 2, kind: input, shape index: {}]   ;;  %s464_s3 = inlined_call_operand.vmem [shape: bf16[128,128], index: 3, kind: output, shape index: {}]  }
   0x1 LB: > { %s324_s13 = sadd.s32 4294967295, %s409_s12   ;;  %p328_p0 = scmp.ge.s32.totalorder %s409_s12, 1  ;;  %s409_s12 = sphi %s431_s12, %s13_s12  }
   0x2   : > { %p138_p1 = scmp.lt.s32.totalorder %s409_s12, 3 }
   0x4   : > { %p139_p2 = pnand %p328_p0, %p138_p1 }
   0x5   : > { %s329_s14 = sshll.u32 (!%p139_p2), %s324_s13, 3  ;;  %v333_v0 = vld [vmem:[%s462_s1] ss:$0 sm:$0xff] (!%p139_p2) }
   0x6   : > { %142 = sbr.rel (%p139_p2) target bundleno = 29 (0x1d), region = 32  ;;  %p163_p3 = scmp.lt.s32.totalorder (!%p139_p2), %s329_s14, 15  ;;  %v334_v9 = vld [vmem:[%s463_s2] ss:$0 sm:$0xff] (!%p139_p2) }
   0xd   : > { %s466_s14 = smov (!%p163_p3, %s329_s14), 15 }
   0xe   : > { %s330_s15 = sshll.u32 %s466_s14, 2 }
   0xf   : > { %s166_s18 = scalar_lea.vmem %s461_s0, %s330_s15  ;;  %s172_s25 = scalar_lea.vmem %s464_s3, %s330_s15 }
  0x10   : > { %v354_v1 = vld [vmem:[%s166_s18] sm:$0xff]   ;;  %v389_v2 = vld [vmem:[%s166_s18 + $0x8] sm:$0xff]   ;;  %v390_v3 = vld [vmem:[%s166_s18 + $0x10] sm:$0xff]  }
  0x11   : > { %v355_v4 = vunpack.c.l.bf16 %v354_v1  ;;  %v356_v5 = vunpack.c.h.bf16 %v354_v1  ;;  %v359_v6 = vunpack.c.l.bf16 %v389_v2  ;;  %v360_v7 = vunpack.c.h.bf16 %v389_v2  ;;  %v391_v8 = vld [vmem:[%s166_s18 + $0x18] sm:$0xff]  }
  0x12   : > { %v363_v10 = vunpack.c.l.bf16 %v390_v3  ;;  %v364_v11 = vunpack.c.h.bf16 %v390_v3  ;;  %v367_v12 = vunpack.c.l.bf16 %v391_v8  ;;  %v368_v13 = vunpack.c.h.bf16 %v391_v8 }
  0x13   : > { %v197_v14 = vmul.f32 %v355_v4, %v333_v0  ;;  %v198_v15 = vmul.f32 %v356_v5, %v333_v0  ;;  %v199_v16 = vmul.f32 %v359_v6, %v333_v0  ;;  %v200_v17 = vmul.f32 %v360_v7, %v333_v0 }
  0x14   : > { %v201_v18 = vmul.f32 %v363_v10, %v333_v0  ;;  %v202_v19 = vmul.f32 %v364_v11, %v333_v0  ;;  %v203_v20 = vmul.f32 %v367_v12, %v333_v0  ;;  %v204_v21 = vmul.f32 %v368_v13, %v333_v0 }
  0x15   : > { %v212_v22 = vadd.f32 %v334_v9, %v197_v14  ;;  %v213_v23 = vadd.f32 %v334_v9, %v198_v15  ;;  %v214_v24 = vadd.f32 %v334_v9, %v199_v16  ;;  %v215_v25 = vadd.f32 %v334_v9, %v200_v17 }
  0x16   : > { %v216_v26 = vadd.f32 %v334_v9, %v201_v18  ;;  %v217_v27 = vadd.f32 %v334_v9, %v202_v19  ;;  %v218_v28 = vadd.f32 %v334_v9, %v203_v20  ;;  %v219_v29 = vadd.f32 %v334_v9, %v204_v21 }
  0x17   : > { %v220_v30 = vmax.f32 %v212_v22, 0.0  ;;  %v221_v31 = vmax.f32 %v213_v23, 0.0  ;;  %v222_v32 = vmax.f32 %v214_v24, 0.0  ;;  %v223_v33 = vmax.f32 %v215_v25, 0.0 }
  0x18   : > { %v224_v34 = vmax.f32 %v216_v26, 0.0  ;;  %v225_v35 = vmax.f32 %v217_v27, 0.0  ;;  %v226_v36 = vmax.f32 %v218_v28, 0.0  ;;  %v227_v37 = vmax.f32 %v219_v29, 0.0 }
  0x19   : > { %v372_v38 = vpack.c.bf16 %v221_v31, %v220_v30  ;;  %v377_v39 = vpack.c.bf16 %v223_v33, %v222_v32 }
  0x1a   : > { %v382_v40 = vpack.c.bf16 %v225_v35, %v224_v34  ;;  %v387_v41 = vpack.c.bf16 %v227_v37, %v226_v36 }
  0x1b   : > { %373 = vst [vmem:[%s172_s25] sm:$0xff] %v372_v38   ;;  %392 = vst [vmem:[%s172_s25 + $0x8] sm:$0xff] %v377_v39  }
  0x1c   : > { %393 = vst [vmem:[%s172_s25 + $0x10] sm:$0xff] %v382_v40   ;;  %394 = vst [vmem:[%s172_s25 + $0x18] sm:$0xff] %v387_v41  }
  0x1d PF: > { %s13_s12 = sadd.s32 1, %s409_s12  }
  0x1e   : > { %p10_p4 = scmp.ge.s32.totalorder %s13_s12, 4  }
  0x20   :  { %12 = sbr.rel (!%p10_p4) target bundleno = 1 (0x1), region = 62 }

// kernel: generator_forward.11
= control target key start
LH: loop header
LB: loop body
LE: loop exit
PB: predicated region body
PF: predicated region fallthrough
CT: control target
= control target key end

     0   :  { %s1728_s12 = smov 0   ;;  %s2007_s0 = inlined_call_operand.vmem [shape: bf16[128,1024], index: 0, kind: input, shape index: {}]   ;;  %s2008_s1 = inlined_call_operand.vmem [shape: bf16[1024,128], index: 1, kind: input, shape index: {}]   ;;  %s2009_s2 = inlined_call_operand.vmem [shape: bf16[128,128], index: 2, kind: output, shape index: {0}]   ;;  %s2010_s3 = inlined_call_operand.vmem [shape: f32[2,8,128], index: 3, kind: output, shape index: {1}]  }
   0x1 LB: > { %s1734_s13 = sadd.s32 4294967295, %s1706_s12   ;;  %p1323_p0 = scmp.ge.s32.totalorder %s1706_s12, 1  ;;  %s1706_s12 = sphi %s1728_s12, %s14_s12  }
   0x2   : > { %p142_p1 = scmp.lt.s32.totalorder %s1706_s12, 3 }
   0x4   : > { %p143_p2 = pnand %p1323_p0, %p142_p1 }
   0x5   : > { %v1636_v0 = vld [vmem:[%s2008_s1 + $0x40] sm:$0xff] (!%p143_p2)   ;;  %v1640_v4 = vld [vmem:[%s2008_s1 + $0x48] sm:$0xff] (!%p143_p2)   ;;  %v1644_v8 = vld [vmem:[%s2008_s1 + $0x50] sm:$0xff] (!%p143_p2)   ;;  %s1324_s21 = sshll.u32 (!%p143_p2), %s1734_s13, 3  ;;  %p184_p4 = scmp.lt.s32.totalorder (!%p143_p2), %s1734_s13, 1  ;;  %vm1227_vm0 = vcmask (!%p143_p2), 1040384  }
   0x6   : > { %146 = sbr.rel (%p143_p2) target bundleno = 335 (0x14f), region = 28  ;;  %v1637_v1 = vld [vmem:[%s2008_s1 + $0xc0] sm:$0xff] (!%p143_p2)   ;;  %1468 = vmatprep.subr.bf16.mxu0 (!%p143_p2), %v1636_v0  ;;  %v1641_v5 = vld [vmem:[%s2008_s1 + $0xc8] sm:$0xff] (!%p143_p2)   ;;  %v1645_v9 = vld [vmem:[%s2008_s1 + $0xd0] sm:$0xff] (!%p143_p2)   ;;  %p172_p3 = scmp.lt.s32.totalorder (!%p143_p2), %s1324_s21, 15  ;;  %vm1229_vm1 = vcmask (!%p143_p2), 1041408  }
   0x7   : > { %v1638_v2 = vld [vmem:[%s2008_s1] sm:$0xff] (!%p143_p2)   ;;  %1508 = vmatprep.subr.bf16.mxu1 (!%p143_p2), %v1637_v1  ;;  %v1642_v6 = vld [vmem:[%s2008_s1 + $0x8] sm:$0xff] (!%p143_p2)   ;;  %v1646_v10 = vld [vmem:[%s2008_s1 + $0x10] sm:$0xff] (!%p143_p2)  }
   0x8   : > { %v1639_v3 = vld [vmem:[%s2008_s1 + $0x80] sm:$0xff] (!%p143_p2)   ;;  %1469 = vmatpush3.bf16.msra.mxu0 (!%p143_p2), %v1638_v2  ;;  %v1643_v7 = vld [vmem:[%s2008_s1 + $0x88] sm:$0xff] (!%p143_p2)   ;;  %v1647_v11 = vld [vmem:[%s2008_s1 + $0x90] sm:$0xff] (!%p143_p2)  }
   0x9   : > { %1509 = vmatpush3.bf16.msra.mxu1 (!%p143_p2), %v1639_v3  ;;  %1470 = vmatprep.subr.bf16.mxu0 (!%p143_p2), %v1640_v4  ;;  %v1648_v12 = vld [vmem:[%s2008_s1 + $0x58] sm:$0xff] (!%p143_p2)   ;;  %v1652_v16 = vld [vmem:[%s2008_s1 + $0x60] sm:$0xff] (!%p143_p2)   ;;  %v1656_v20 = vld [vmem:[%s2008_s1 + $0x68] sm:$0xff] (!%p143_p2)  }
   0xa   : > { %1510 = vmatprep.subr.bf16.mxu1 (!%p143_p2), %v1641_v5  ;;  %v1649_v13 = vld [vmem:[%s2008_s1 + $0xd8] sm:$0xff] (!%p143_p2)   ;;  %v1653_v17 = vld [vmem:[%s2008_s1 + $0xe0] sm:$0xff] (!%p143_p2)   ;;  %v1657_v21 = vld [vmem:[%s2008_s1 + $0xe8] sm:$0xff] (!%p143_p2)  }
   0xb   : > { %v1650_v14 = vld [vmem:[%s2008_s1 + $0x18] sm:$0xff] (!%p143_p2)   ;;  %v1654_v18 = vld [vmem:[%s2008_s1 + $0x20] sm:$0xff] (!%p143_p2)   ;;  %v1658_v22 = vld [vmem:[%s2008_s1 + $0x28] sm:$0xff] (!%p143_p2)  }
   0xc   : > { %1471 = vmatpush3.bf16.msra.mxu0 (!%p143_p2), %v1642_v6  ;;  %v1651_v15 = vld [vmem:[%s2008_s1 + $0x98] sm:$0xff] (!%p143_p2)   ;;  %v1655_v19 = vld [vmem:[%s2008_s1 + $0xa0] sm:$0xff] (!%p143_p2)   ;;  %v1659_v23 = vld [vmem:[%s2008_s1 + $0xa8] sm:$0xff] (!%p143_p2)  }
   0xd   : > { %1511 = vmatpush3.bf16.msra.mxu1 %v1643_v7  ;;  %1472 = vmatprep.subr.bf16.mxu0 %v1644_v8  ;;  %s2012_s21 = smov (!%p172_p3, %s1324_s21), 15  ;;  %v1660_v24 = vld [vmem:[%s2008_s1 + $0x70] sm:$0xff]   ;;  %v1664_v28 = vld [vmem:[%s2008_s1 + $0x78] sm:$0xff]   ;;  %v1668_v40 = vld [vmem:[%s2008_s1 + $0x140] sm:$0xff]   ;;  %s2014_s13 = smov (!%p184_p4, %s1734_s13), 1 }
   0xe   : > { %1512 = vmatprep.subr.bf16.mxu1 %v1645_v9  ;;  %v1661_v25 = vld [vmem:[%s2008_s1 + $0xf0] sm:$0xff]   ;;  %s1436_s19 = sshll.u32 %s2012_s21, 5  ;;  %v1665_v29 = vld [vmem:[%s2008_s1 + $0xf8] sm:$0xff]   ;;  %v1669_v41 = vld [vmem:[%s2008_s1 + $0x1c0] sm:$0xff]  }
   0xf   : > { %v1662_v26 = vld [vmem:[%s2008_s1 + $0x30] sm:$0xff]   ;;  %s1835_s29 = scalar_lea.vmem %s2007_s0, %s1436_s19  ;;  %v1666_v30 = vld [vmem:[%s2008_s1 + $0x38] sm:$0xff]   ;;  %v1670_v42 = vld [vmem:[%s2008_s1 + $0x100] sm:$0xff]  }
  0x10   : > { %1473 = vmatpush3.bf16.msra.mxu0 %v1646_v10  ;;  %v1663_v27 = vld [vmem:[%s2008_s1 + $0xb0] sm:$0xff]   ;;  %v1667_v31 = vld [vmem:[%s2008_s1 + $0xb8] sm:$0xff]   ;;  %v189_v32 = vld [vmem:[%s1835_s29] sm:$0xff] }
  0x11   : > { %1513 = vmatpush3.bf16.msra.mxu1 %v1647_v11  ;;  %1474 = vmatprep.subr.bf16.mxu0 %v1648_v12  ;;  %v193_v33 = vld [vmem:[%s1835_s29 + $0x20] sm:$0xff]  ;;  %v190_v34 = vld [vmem:[%s1835_s29 + $0x8] sm:$0xff]  ;;  %v1676_v56 = vld [vmem:[%s2008_s1 + $0x150] sm:$0xff]  }
  0x12   : > { %1514 = vmatprep.subr.bf16.mxu1 %v1649_v13  ;;  %v1330_v35 = vcombine.low %v189_v32, %v193_v33  ;;  %v1331_v36 = vcombine.high %v189_v32, %v193_v33  ;;  %v194_v37 = vld [vmem:[%s1835_s29 + $0x28] sm:$0xff]  ;;  %v1671_v43 = vld [vmem:[%s2008_s1 + $0x180] sm:$0xff]   ;;  %v1677_v57 = vld [vmem:[%s2008_s1 + $0x1d0] sm:$0xff]  }
  0x13   : > { %v1332_v38 = vcombine.low %v190_v34, %v194_v37  ;;  %v1333_v39 = vcombine.high %v190_v34, %v194_v37  ;;  %v1672_v44 = vld [vmem:[%s2008_s1 + $0x148] sm:$0xff]   ;;  %v197_v48 = vld [vmem:[%s1835_s29 + $0x40] sm:$0xff]  ;;  %v1678_v58 = vld [vmem:[%s2008_s1 + $0x110] sm:$0xff]  }
  0x14   : > { %1475 = vmatpush3.bf16.msra.mxu0 %v1650_v14  ;;  %925 = vmatprep.mubr.bf16.mxu0 %v1331_v36  ;;  %v1673_v45 = vld [vmem:[%s2008_s1 + $0x1c8] sm:$0xff]   ;;  %v201_v49 = vld [vmem:[%s1835_s29 + $0x60] sm:$0xff]  ;;  %v1679_v59 = vld [vmem:[%s2008_s1 + $0x190] sm:$0xff]  }
  0x15   : > { %1515 = vmatpush3.bf16.msra.mxu1 %v1651_v15  ;;  %1476 = vmatprep.subr.bf16.mxu0 %v1652_v16  ;;  %v1674_v46 = vld [vmem:[%s2008_s1 + $0x108] sm:$0xff]   ;;  %v1339_v50 = vcombine.high %v197_v48, %v201_v49  ;;  %v1338_v53 = vcombine.low %v197_v48, %v201_v49  ;;  %v1680_v60 = vld [vmem:[%s2008_s1 + $0x158] sm:$0xff]   ;;  %v205_v0 = vld [vmem:[%s1835_s29 + $0x80] sm:$0xff] }
  0x16   : > { %1516 = vmatprep.subr.bf16.mxu1 %v1653_v17  ;;  %990 = vmatprep.mubr.bf16.mxu1 %v1333_v39  ;;  %v1675_v47 = vld [vmem:[%s2008_s1 + $0x188] sm:$0xff]   ;;  %v1681_v61 = vld [vmem:[%s2008_s1 + $0x1d8] sm:$0xff]   ;;  %v209_v1 = vld [vmem:[%s1835_s29 + $0xa0] sm:$0xff] }
  0x17   : > { %v198_v51 = vld [vmem:[%s1835_s29 + $0x48] sm:$0xff]  ;;  %v1682_v62 = vld [vmem:[%s2008_s1 + $0x118] sm:$0xff]   ;;  %v1347_v4 = vcombine.high %v205_v0, %v209_v1  ;;  %v1346_v6 = vcombine.low %v205_v0, %v209_v1  ;;  %v1684_v8 = vld [vmem:[%s2008_s1 + $0x160] sm:$0xff]  }
  0x18   : > { %1477 = vmatpush3.bf16.msra.mxu0 %v1654_v18  ;;  %v202_v52 = vld [vmem:[%s1835_s29 + $0x68] sm:$0xff]  ;;  %v1683_v63 = vld [vmem:[%s2008_s1 + $0x198] sm:$0xff]   ;;  %v1685_v9 = vld [vmem:[%s2008_s1 + $0x1e0] sm:$0xff]  }
  0x19   : > { %1517 = vmatpush3.bf16.msra.mxu1 %v1655_v19  ;;  %1478 = vmatprep.subr.bf16.mxu0 %v1656_v20  ;;  %v1341_v54 = vcombine.high %v198_v51, %v202_v52  ;;  %v1340_v55 = vcombine.low %v198_v51, %v202_v52  ;;  %v206_v2 = vld [vmem:[%s1835_s29 + $0x88] sm:$0xff]  ;;  %v1686_v10 = vld [vmem:[%s2008_s1 + $0x120] sm:$0xff]   ;;  %v191_v32 = vld [vmem:[%s1835_s29 + $0x10] sm:$0xff] }
  0x1a   : > { %1518 = vmatprep.subr.bf16.mxu1 %v1657_v21  ;;  %v210_v3 = vld [vmem:[%s1835_s29 + $0xa8] sm:$0xff]  ;;  %v1687_v11 = vld [vmem:[%s2008_s1 + $0x1a0] sm:$0xff]   ;;  %v195_v33 = vld [vmem:[%s1835_s29 + $0x30] sm:$0xff] }
  0x1b   : > { %v1349_v5 = vcombine.high %v206_v2, %v210_v3  ;;  %v1348_v7 = vcombine.low %v206_v2, %v210_v3  ;;  %v1688_v12 = vld [vmem:[%s2008_s1 + $0x168] sm:$0xff]   ;;  %v213_v16 = vld [vmem:[%s1835_s29 + $0xc0] sm:$0xff]  ;;  %v1334_v34 = vcombine.low %v191_v32, %v195_v33  ;;  %v192_v36 = vld [vmem:[%s1835_s29 + $0x18] sm:$0xff] }
  0x1c   : > { %1479 = vmatpush3.bf16.msra.mxu0 %v1658_v22  ;;  %v1689_v13 = vld [vmem:[%s2008_s1 + $0x1e8] sm:$0xff]   ;;  %v217_v17 = vld [vmem:[%s1835_s29 + $0xe0] sm:$0xff]  ;;  %v196_v37 = vld [vmem:[%s1835_s29 + $0x38] sm:$0xff] }
  0x1d   : > { %1519 = vmatpush3.bf16.msra.mxu1 %v1659_v23  ;;  %1480 = vmatprep.subr.bf16.mxu0 %v1660_v24  ;;  %v1690_v14 = vld [vmem:[%s2008_s1 + $0x128] sm:$0xff]   ;;  %v1355_v19 = vcombine.high %v213_v16, %v217_v17  ;;  %v1354_v21 = vcombine.low %v213_v16, %v217_v17  ;;  %v1692_v24 = vld [vmem:[%s2008_s1 + $0x170] sm:$0xff]   ;;  %v1336_v39 = vcombine.low %v192_v36, %v196_v37  ;;  %v208_v48 = vld [vmem:[%s1835_s29 + $0x98] sm:$0xff] }
  0x1e   : > { %1520 = vmatprep.subr.bf16.mxu1 %v1661_v25  ;;  %v1691_v15 = vld [vmem:[%s2008_s1 + $0x1a8] sm:$0xff]   ;;  %v1693_v25 = vld [vmem:[%s2008_s1 + $0x1f0] sm:$0xff]   ;;  %v212_v49 = vld [vmem:[%s1835_s29 + $0xb8] sm:$0xff] }
  0x1f   : > { %v214_v18 = vld [vmem:[%s1835_s29 + $0xc8] sm:$0xff] }
  0x20   : > { %1481 = vmatpush3.bf16.msra.mxu0 %v1662_v26  ;;  %v218_v20 = vld [vmem:[%s1835_s29 + $0xe8] sm:$0xff]  ;;  %v1694_v26 = vld [vmem:[%s2008_s1 + $0x130] sm:$0xff]  }
  0x21   : > { %1521 = vmatpush3.bf16.msra.mxu1 %v1663_v27  ;;  %1482 = vmatprep.subr.bf16.mxu0 %v1664_v28  ;;  %v1357_v22 = vcombine.high %v214_v18, %v218_v20  ;;  %v1356_v23 = vcombine.low %v214_v18, %v218_v20  ;;  %v1695_v27 = vld [vmem:[%s2008_s1 + $0x1b0] sm:$0xff]   ;;  %v1696_v28 = vld [vmem:[%s2008_s1 + $0x178] sm:$0xff]  }
  0x22   : > { %1522 = vmatprep.subr.bf16.mxu1 %v1665_v29  ;;  %v1697_v29 = vld [vmem:[%s2008_s1 + $0x1f8] sm:$0xff]  }
  0x24   : > { %1483 = vmatpush3.bf16.msra.mxu0 %v1666_v30  ;;  %v1698_v30 = vld [vmem:[%s2008_s1 + $0x138] sm:$0xff]  }
  0x25   : > { %1523 = vmatpush3.bf16.msra.mxu1 %v1667_v31  ;;  %1548 = vmatprep.subr.bf16.mxu0 %v1668_v40  ;;  %v1699_v31 = vld [vmem:[%s2008_s1 + $0x1b8] sm:$0xff]   ;;  %v1337_v40 = vcombine.high %v192_v36, %v196_v37 }
  0x26   : > { %1588 = vmatprep.subr.bf16.mxu1 %v1669_v41  ;;  %v203_v41 = vld [vmem:[%s1835_s29 + $0x70] sm:$0xff] }
  0x27   : > { %926 = vmatmul.mubr.bf16.vlgmr.msra.gmra.mrb[0].mxu0 %v1330_v35  ;;  %v1335_v35 = vcombine.high %v191_v32, %v195_v33 }
  0x28   : > { %991 = vmatmul.mubr.bf16.vlgmr.msra.gmra.mrb[0].mxu1 %v1332_v38  ;;  %1549 = vmatpush3.bf16.msra.mxu0 %v1670_v42  ;;  %v199_v38 = vld [vmem:[%s1835_s29 + $0x50] sm:$0xff]  ;;  %v200_v42 = vld [vmem:[%s1835_s29 + $0x58] sm:$0xff] }
  0x29   : > { %1589 = vmatpush3.bf16.msra.mxu1 %v1671_v43  ;;  %1550 = vmatprep.subr.bf16.mxu0 %v1672_v44  ;;  %v204_v43 = vld [vmem:[%s1835_s29 + $0x78] sm:$0xff]  ;;  %v1343_v44 = vcombine.high %v199_v38, %v203_v41 }
  0x2a   : > { %1590 = vmatprep.subr.bf16.mxu1 %v1673_v45  ;;  %933 = vmatprep.mubr.bf16.mxu0 %v1339_v50  ;;  %v1345_v45 = vcombine.high %v200_v42, %v204_v43  ;;  %v1342_v50 = vcombine.low %v199_v38, %v203_v41  ;;  %v1344_v51 = vcombine.low %v200_v42, %v204_v43 }
  0x2b   : > { %998 = vmatprep.mubr.bf16.mxu1 %v1341_v54  ;;  %v215_v54 = vld [vmem:[%s1835_s29 + $0xd0] sm:$0xff] }
  0x2c   : > { %1551 = vmatpush3.bf16.msra.mxu0 %v1674_v46  ;;  %v207_v46 = vld [vmem:[%s1835_s29 + $0x90] sm:$0xff] }
  0x2d   : > { %1591 = vmatpush3.bf16.msra.mxu1 %v1675_v47  ;;  %1552 = vmatprep.subr.bf16.mxu0 %v1676_v56  ;;  %v211_v47 = vld [vmem:[%s1835_s29 + $0xb0] sm:$0xff]  ;;  %v216_v56 = vld [vmem:[%s1835_s29 + $0xd8] sm:$0xff] }
  0x2e   : > { %1592 = vmatprep.subr.bf16.mxu1 %v1677_v57  ;;  %v1351_v52 = vcombine.high %v207_v46, %v211_v47  ;;  %v220_v57 = vld [vmem:[%s1835_s29 + $0xf8] sm:$0xff] }
  0x2f   : > { %934 = vmatmul.mubr.bf16.gmra.mrb[4].mxu0 %v1338_v53  ;;  %v1353_v53 = vcombine.high %v208_v48, %v212_v49 }
  0x30   : > { %999 = vmatmul.mubr.bf16.gmra.mrb[4].mxu1 %v1340_v55  ;;  %1553 = vmatpush3.bf16.msra.mxu0 %v1678_v58  ;;  %v219_v55 = vld [vmem:[%s1835_s29 + $0xf0] sm:$0xff]  ;;  %v1350_v58 = vcombine.low %v207_v46, %v211_v47  ;;  %s1328_s29 = sshll.u32 %s2012_s21, 2  ;;  %s1329_s21 = sshll.u32 %s2014_s13, 3 }
  0x31   : > { %1593 = vmatpush3.bf16.msra.mxu1 %v1679_v59  ;;  %1554 = vmatprep.subr.bf16.mxu0 %v1680_v60  ;;  %v1352_v59 = vcombine.low %v208_v48, %v212_v49  ;;  %v1359_v60 = vcombine.high %v215_v54, %v219_v55  ;;  %s1987_s4 = scalar_lea.vmem %s2009_s2, %s1328_s29  ;;  %s187_s7 = scalar_lea.vmem %s2010_s3, %s1329_s21 }
  0x32   : > { %1594 = vmatprep.subr.bf16.mxu1 %v1681_v61  ;;  %941 = vmatprep.mubr.bf16.mxu0 %v1347_v4  ;;  %v1361_v61 = vcombine.high %v216_v56, %v220_v57 }
  0x33   : > { %1006 = vmatprep.mubr.bf16.mxu1 %v1349_v5 }
  0x34   : > { %1555 = vmatpush3.bf16.msra.mxu0 %v1682_v62  ;;  %v1358_v62 = vcombine.low %v215_v54, %v219_v55 }
  0x35   : > { %1595 = vmatpush3.bf16.msra.mxu1 %v1683_v63  ;;  %1556 = vmatprep.subr.bf16.mxu0 %v1684_v8  ;;  %v1360_v63 = vcombine.low %v216_v56, %v220_v57 }
  0x36   : > { %1596 = vmatprep.subr.bf16.mxu1 %v1685_v9 }
  0x37   : > { %942 = vmatmul.mubr.bf16.gmra.mrb[8].mxu0 %v1346_v6 }
  0x38   : > { %1007 = vmatmul.mubr.bf16.gmra.mrb[8].mxu1 %v1348_v7  ;;  %1557 = vmatpush3.bf16.msra.mxu0 %v1686_v10 }
  0x39   : > { %1597 = vmatpush3.bf16.msra.mxu1 %v1687_v11  ;;  %1558 = vmatprep.subr.bf16.mxu0 %v1688_v12 }
  0x3a   : > { %1598 = vmatprep.subr.bf16.mxu1 %v1689_v13  ;;  %949 = vmatprep.mubr.bf16.mxu0 %v1355_v19 }
  0x3b   : > { %1014 = vmatprep.mubr.bf16.mxu1 %v1357_v22 }
  0x3c   : > { %1559 = vmatpush3.bf16.msra.mxu0 %v1690_v14 }
  0x3d   : > { %1599 = vmatpush3.bf16.msra.mxu1 %v1691_v15  ;;  %1560 = vmatprep.subr.bf16.mxu0 %v1692_v24 }
  0x3e   : > { %1600 = vmatprep.subr.bf16.mxu1 %v1693_v25 }
  0x3f   : > { %950 = vmatmul.mubr.bf16.gmra.mrb[12].mxu0 %v1354_v21 }
  0x40   : > { %1015 = vmatmul.mubr.bf16.gmra.mrb[12].mxu1 %v1356_v23  ;;  %1561 = vmatpush3.bf16.msra.mxu0 %v1694_v26 }
  0x41   : > { %1601 = vmatpush3.bf16.msra.mxu1 %v1695_v27  ;;  %1562 = vmatprep.subr.bf16.mxu0 %v1696_v28 }
  0x42   : > { %1602 = vmatprep.subr.bf16.mxu1 %v1697_v29  ;;  %1055 = vmatprep.mubr.bf16.mxu0 %v1335_v35 }
  0x43   : > { %1120 = vmatprep.mubr.bf16.mxu1 %v1337_v40 }
  0x44   : > { %1563 = vmatpush3.bf16.msra.mxu0 %v1698_v30 }
  0x45   : > { %1603 = vmatpush3.bf16.msra.mxu1 %v1699_v31 }
  0x47   : > { %1056 = vmatmul.mubr.bf16.vlgmr.msra.gmra.mrb[16].mxu0 %v1334_v34 }
  0x48   : > { %1121 = vmatmul.mubr.bf16.vlgmr.msra.gmra.mrb[16].mxu1 %v1336_v39  ;;  %1063 = vmatprep.mubr.bf16.mxu0 %v1343_v44 }
  0x49   : > { %1128 = vmatprep.mubr.bf16.mxu1 %v1345_v45 }
  0x4f   : > { %1064 = vmatmul.mubr.bf16.gmra.mrb[20].mxu0 %v1342_v50 }
  0x50   : > { %1129 = vmatmul.mubr.bf16.gmra.mrb[20].mxu1 %v1344_v51  ;;  %1071 = vmatprep.mubr.bf16.mxu0 %v1351_v52 }
  0x51   : > { %1136 = vmatprep.mubr.bf16.mxu1 %v1353_v53 }
  0x57   : > { %1072 = vmatmul.mubr.bf16.gmra.mrb[24].mxu0 %v1350_v58 }
  0x58   : > { %1137 = vmatmul.mubr.bf16.gmra.mrb[24].mxu1 %v1352_v59  ;;  %1079 = vmatprep.mubr.bf16.mxu0 %v1359_v60 }
  0x59   : > { %1144 = vmatprep.mubr.bf16.mxu1 %v1361_v61 }
  0x5f   : > { %1080 = vmatmul.mubr.bf16.gmra.mrb[28].mxu0 %v1358_v62 }
  0x60   : > { %1145 = vmatmul.mubr.bf16.gmra.mrb[28].mxu1 %v1360_v63 }
  0xfa   : > { %v1484_v0 = vpop.f32.mrb[0].mxu0 }
  0xfb   : > { %v1524_v1 = vpop.f32.mrb[0].mxu1  ;;  %v1485_v2 = vpop.f32.mrb[1].mxu0 }
  0xfc   : > { %v1486_v3 = vadd.f32 %v1485_v2, %v1484_v0  ;;  %v1525_v4 = vpop.f32.mrb[1].mxu1  ;;  %v1487_v5 = vpop.f32.mrb[2].mxu0 }
  0xfd   : > { %v1526_v6 = vadd.f32 %v1525_v4, %v1524_v1  ;;  %v1527_v7 = vpop.f32.mrb[2].mxu1  ;;  %v1488_v8 = vpop.f32.mrb[3].mxu0 }
  0xfe   : > { %v1489_v9 = vadd.f32 %v1488_v8, %v1487_v5  ;;  %v1528_v10 = vpop.f32.mrb[3].mxu1 }
  0xff   : > { %v993_v11 = vadd.f32 %v1526_v6, %v1486_v3  ;;  %v1529_v12 = vadd.f32 %v1528_v10, %v1527_v7 }
 0x101   : > { %v996_v13 = vadd.f32 %v1529_v12, %v1489_v9 }
 0x102   : > { %v1490_v14 = vpop.f32.mrb[4].mxu0 }
 0x103   : > { %v1530_v15 = vpop.f32.mrb[4].mxu1  ;;  %v1491_v16 = vpop.f32.mrb[5].mxu0 }
 0x104   : > { %v1492_v17 = vadd.f32 %v1491_v16, %v1490_v14  ;;  %v1531_v18 = vpop.f32.mrb[5].mxu1  ;;  %v1493_v19 = vpop.f32.mrb[6].mxu0 }
 0x105   : > { %v1532_v20 = vadd.f32 %v1531_v18, %v1530_v15  ;;  %v1533_v21 = vpop.f32.mrb[6].mxu1  ;;  %v1494_v22 = vpop.f32.mrb[7].mxu0 }
 0x106   : > { %v1495_v23 = vadd.f32 %v1494_v22, %v1493_v19  ;;  %v1534_v24 = vpop.f32.mrb[7].mxu1 }
 0x107   : > { %v1971_v25 = vadd.f32 %v1532_v20, %v1492_v17  ;;  %v1535_v26 = vadd.f32 %v1534_v24, %v1533_v21 }
 0x109   : > { %v1973_v27 = vadd.f32 %v1535_v26, %v1495_v23 }
 0x10a   : > { %v1496_v28 = vpop.f32.mrb[8].mxu0 }
 0x10b   : > { %v1536_v29 = vpop.f32.mrb[8].mxu1  ;;  %v1497_v30 = vpop.f32.mrb[9].mxu0 }
 0x10c   : > { %v1537_v31 = vpop.f32.mrb[9].mxu1  ;;  %v1498_v32 = vadd.f32 %v1497_v30, %v1496_v28  ;;  %v1499_v34 = vpop.f32.mrb[10].mxu0 }
 0x10d   : > { %v1538_v33 = vadd.f32 %v1537_v31, %v1536_v29  ;;  %v1539_v35 = vpop.f32.mrb[10].mxu1  ;;  %v1500_v36 = vpop.f32.mrb[11].mxu0 }
 0x10e   : > { %v1540_v37 = vpop.f32.mrb[11].mxu1  ;;  %v1501_v39 = vadd.f32 %v1500_v36, %v1499_v34 }
 0x10f   : > { %v1975_v38 = vadd.f32 %v1538_v33, %v1498_v32  ;;  %v1541_v40 = vadd.f32 %v1540_v37, %v1539_v35 }
 0x111   : > { %v1977_v41 = vadd.f32 %v1541_v40, %v1501_v39 }
 0x112   : > { %v1502_v42 = vpop.f32.mrb[12].mxu0 }
 0x113   : > { %v1542_v43 = vpop.f32.mrb[12].mxu1  ;;  %v1503_v44 = vpop.f32.mrb[13].mxu0 }
 0x114   : > { %v1504_v45 = vadd.f32 %v1503_v44, %v1502_v42  ;;  %v1543_v46 = vpop.f32.mrb[13].mxu1  ;;  %v1505_v47 = vpop.f32.mrb[14].mxu0 }
 0x115   : > { %v1544_v48 = vadd.f32 %v1543_v46, %v1542_v43  ;;  %v1545_v49 = vpop.f32.mrb[14].mxu1  ;;  %v1506_v50 = vpop.f32.mrb[15].mxu0 }
 0x116   : > { %v1507_v51 = vadd.f32 %v1506_v50, %v1505_v47  ;;  %v1546_v52 = vpop.f32.mrb[15].mxu1 }
 0x117   : > { %v1979_v53 = vadd.f32 %v1544_v48, %v1504_v45  ;;  %v1547_v54 = vadd.f32 %v1546_v52, %v1545_v49 }
 0x119   : > { %v1981_v55 = vadd.f32 %v1547_v54, %v1507_v51 }
 0x11a   : > { %v1564_v56 = vpop.f32.mrb[16].mxu0 }
 0x11b   : > { %v1604_v57 = vpop.f32.mrb[16].mxu1  ;;  %v1565_v58 = vpop.f32.mrb[17].mxu0 }
 0x11c   : > { %v1566_v59 = vadd.f32 %v1565_v58, %v1564_v56  ;;  %v1605_v60 = vpop.f32.mrb[17].mxu1  ;;  %v1567_v61 = vpop.f32.mrb[18].mxu0 }
 0x11d   : > { %v1606_v62 = vadd.f32 %v1605_v60, %v1604_v57  ;;  %v1607_v63 = vpop.f32.mrb[18].mxu1  ;;  %v1568_v0 = vpop.f32.mrb[19].mxu0 }
 0x11e   : > { %v1058_v1 = vadd.f32 %v1566_v59, %v993_v11  ;;  %v1569_v2 = vadd.f32 %v1568_v0, %v1567_v61  ;;  %v1608_v3 = vpop.f32.mrb[19].mxu1 }
 0x11f   : > { %v1609_v4 = vadd.f32 %v1608_v3, %v1607_v63 }
 0x120   : > { %v1123_v5 = vadd.f32 %v1606_v62, %v1058_v1  ;;  %v1061_v6 = vadd.f32 %v1569_v2, %v996_v13 }
 0x122   : > { %v1126_v7 = vadd.f32 %v1609_v4, %v1061_v6  ;;  %v1570_v8 = vpop.f32.mrb[20].mxu0  ;;  %v1206_v9 = vmul.f32 %v1123_v5, %v1123_v5 }
 0x123   : > { %v1610_v10 = vpop.f32.mrb[20].mxu1  ;;  %v1571_v12 = vpop.f32.mrb[21].mxu0 }
 0x124   : > { %v1448_v14 = vpack.c.bf16 %v1126_v7, %v1123_v5  ;;  %v1193_v15 = vadd.f32 %v1126_v7, %v1123_v5  ;;  %v1207_v11 = vmul.f32 %v1126_v7, %v1126_v7  ;;  %v1572_v16 = vadd.f32 %v1571_v12, %v1570_v8  ;;  %v1611_v17 = vpop.f32.mrb[21].mxu1  ;;  %v1573_v18 = vpop.f32.mrb[22].mxu0 }
 0x125   : > { %v1612_v19 = vadd.f32 %v1611_v17, %v1610_v10  ;;  %v1613_v13 = vpop.f32.mrb[22].mxu1  ;;  %v1574_v20 = vpop.f32.mrb[23].mxu0 }
 0x126   : > { %1449 = vst [vmem:[%s1987_s4] sm:$0xff] %v1448_v14   ;;  %v1214_v21 = vadd.f32 %v1207_v11, %v1206_v9  ;;  %v1066_v22 = vadd.f32 %v1572_v16, %v1971_v25  ;;  %v1575_v23 = vadd.f32 %v1574_v20, %v1573_v18  ;;  %v1614_v24 = vpop.f32.mrb[23].mxu1 }
 0x127   : > { %v1615_v26 = vadd.f32 %v1614_v24, %v1613_v13 }
 0x128   : > { %v1131_v28 = vadd.f32 %v1612_v19, %v1066_v22  ;;  %v1069_v29 = vadd.f32 %v1575_v23, %v1973_v27 }
 0x12a   : > { %v1194_v30 = vadd.f32 %v1193_v15, %v1131_v28  ;;  %v1208_v31 = vmul.f32 %v1131_v28, %v1131_v28  ;;  %v1134_v32 = vadd.f32 %v1615_v26, %v1069_v29  ;;  %v1576_v33 = vpop.f32.mrb[24].mxu0 }
 0x12b   : > { %v1616_v34 = vpop.f32.mrb[24].mxu1  ;;  %v1577_v35 = vpop.f32.mrb[25].mxu0 }
 0x12c   : > { %v1215_v36 = vadd.f32 %v1214_v21, %v1208_v31  ;;  %v1453_v37 = vpack.c.bf16 %v1134_v32, %v1131_v28  ;;  %v1195_v39 = vadd.f32 %v1194_v30, %v1134_v32  ;;  %v1209_v40 = vmul.f32 %v1134_v32, %v1134_v32  ;;  %v1617_v42 = vpop.f32.mrb[25].mxu1  ;;  %v1579_v43 = vpop.f32.mrb[26].mxu0 }
 0x12d   : > { %v1578_v25 = vadd.f32 %v1577_v35, %v1576_v33  ;;  %v1618_v44 = vadd.f32 %v1617_v42, %v1616_v34  ;;  %v1619_v45 = vpop.f32.mrb[26].mxu1  ;;  %v1580_v46 = vpop.f32.mrb[27].mxu0 }
 0x12e   : > { %1465 = vst [vmem:[%s1987_s4 + $0x8] sm:$0xff] %v1453_v37   ;;  %v1216_v47 = vadd.f32 %v1215_v36, %v1209_v40  ;;  %v1581_v27 = vadd.f32 %v1580_v46, %v1579_v43  ;;  %v1620_v48 = vpop.f32.mrb[27].mxu1 }
 0x12f   : > { %v1074_v49 = vadd.f32 %v1578_v25, %v1975_v38  ;;  %v1621_v50 = vadd.f32 %v1620_v48, %v1619_v45 }
 0x130   : > { %v1077_v51 = vadd.f32 %v1581_v27, %v1977_v41 }
 0x131   : > { %v1139_v52 = vadd.f32 %v1618_v44, %v1074_v49 }
 0x132   : > { %v1142_v54 = vadd.f32 %v1621_v50, %v1077_v51  ;;  %v1582_v56 = vpop.f32.mrb[28].mxu0 }
 0x133   : > { %v1196_v57 = vadd.f32 %v1195_v39, %v1139_v52  ;;  %v1210_v58 = vmul.f32 %v1139_v52, %v1139_v52  ;;  %v1622_v59 = vpop.f32.mrb[28].mxu1  ;;  %v1583_v60 = vpop.f32.mrb[29].mxu0 }
 0x134   : > { %v1458_v61 = vpack.c.bf16 %v1142_v54, %v1139_v52  ;;  %v1211_v62 = vmul.f32 %v1142_v54, %v1142_v54  ;;  %v1584_v63 = vadd.f32 %v1583_v60, %v1582_v56  ;;  %v1623_v0 = vpop.f32.mrb[29].mxu1  ;;  %v1585_v1 = vpop.f32.mrb[30].mxu0 }
 0x135   : > { %v1217_v2 = vadd.f32 %v1216_v47, %v1210_v58  ;;  %v1197_v3 = vadd.f32 %v1196_v57, %v1142_v54  ;;  %v1624_v4 = vadd.f32 %v1623_v0, %v1622_v59  ;;  %v1625_v38 = vpop.f32.mrb[30].mxu1  ;;  %v1586_v5 = vpop.f32.mrb[31].mxu0 }
 0x136   : > { %1466 = vst [vmem:[%s1987_s4 + $0x10] sm:$0xff] %v1458_v61   ;;  %v1082_v41 = vadd.f32 %v1584_v63, %v1979_v53  ;;  %v1587_v6 = vadd.f32 %v1586_v5, %v1585_v1  ;;  %v1626_v7 = vpop.f32.mrb[31].mxu1 }
 0x137   : > { %v1218_v8 = vadd.f32 %v1217_v2, %v1211_v62  ;;  %v1627_v9 = vadd.f32 %v1626_v7, %v1625_v38 }
 0x138   : > { %v1147_v10 = vadd.f32 %v1624_v4, %v1082_v41  ;;  %v1085_v12 = vadd.f32 %v1587_v6, %v1981_v55 }
 0x13a   : > { %v1198_v14 = vadd.f32 %v1197_v3, %v1147_v10  ;;  %v1212_v15 = vmul.f32 %v1147_v10, %v1147_v10  ;;  %v1150_v11 = vadd.f32 %v1627_v9, %v1085_v12 }
 0x13c   : > { %v1219_v16 = vadd.f32 %v1218_v8, %v1212_v15  ;;  %v1463_v17 = vpack.c.bf16 %v1150_v11, %v1147_v10  ;;  %v1199_v18 = vadd.f32 %v1198_v14, %v1150_v11  ;;  %v1213_v19 = vmul.f32 %v1150_v11, %v1150_v11 }
 0x13e   : > { %1467 = vst [vmem:[%s1987_s4 + $0x18] sm:$0xff] %v1463_v17   ;;  %v1200_v13 = vrot.slane %v1199_v18, 4  ;;  %v1220_v20 = vadd.f32 %v1219_v16, %v1213_v19 }
 0x140   : > { %v1201_v53 = vadd.f32 %v1200_v13, %v1199_v18  ;;  %v1221_v21 = vrot.slane %v1220_v20, 4 }
 0x142   : > { %v1202_v22 = vrot.slane %v1201_v53, 2  ;;  %v1222_v23 = vadd.f32 %v1221_v21, %v1220_v20 }
 0x144   : > { %v1203_v24 = vadd.f32 %v1202_v22, %v1201_v53  ;;  %v1223_v26 = vrot.slane %v1222_v23, 2 }
 0x146   : > { %v1204_v55 = vrot.slane %v1203_v24, 1  ;;  %v1224_v28 = vadd.f32 %v1223_v26, %v1222_v23 }
 0x148   : > { %v1225_v29 = vrot.slane %v1224_v28, 1  ;;  %v1205_v30 = vadd.f32 %v1204_v55, %v1203_v24 }
 0x14a   : > { %v1226_v31 = vadd.f32 %v1225_v29, %v1224_v28 }
 0x14c   : > { %v1228_v32 = vsel %vm1227_vm0, %v1205_v30, %v1226_v31 }
 0x14d   : > { %v1230_v33 = vsel %vm1229_vm1, %v1228_v32, 0.0 }
 0x14e   : > { %1231 = vst [vmem:[%s187_s7] sm:$0xff] %v1230_v33 }
 0x14f PF: > { %s14_s12 = sadd.s32 1, %s1706_s12  }
 0x150   : > { %p11_p5 = scmp.ge.s32.totalorder %s14_s12, 4  }
 0x152   :  { %13 = sbr.rel (!%p11_p5) target bundleno = 1 (0x1), region = 70 }

// kernel: generator_forward.13
= control target key start
LH: loop header
LB: loop body
LE: loop exit
PB: predicated region body
PF: predicated region fallthrough
CT: control target
= control target key end

     0   :  { %s2166_s12 = smov 0   ;;  %s2375_s0 = inlined_call_operand.vmem [shape: bf16[512,512], index: 0, kind: input, shape index: {}]   ;;  %s2376_s1 = inlined_call_operand.vmem [shape: bf16[512,128], index: 1, kind: input, shape index: {}]   ;;  %s2377_s2 = inlined_call_operand.vmem [shape: bf16[512,128], index: 2, kind: output, shape index: {0}]   ;;  %s2378_s3 = inlined_call_operand.vmem [shape: f32[2,8,128], index: 3, kind: output, shape index: {1}]  }
   0x1 LB: > { %s2172_s13 = sadd.s32 4294967295, %s2144_s12   ;;  %p1513_p0 = scmp.ge.s32.totalorder %s2144_s12, 1  ;;  %s2144_s12 = sphi %s2166_s12, %s14_s12  }
   0x2   : > { %p142_p1 = scmp.lt.s32.totalorder %s2144_s12, 3 }
   0x4   : > { %p143_p2 = pnand %p1513_p0, %p142_p1 }
   0x5   : > { %v2010_v0 = vld [vmem:[%s2376_s1 + $0x40] sm:$0xff] (!%p143_p2)   ;;  %v2014_v4 = vld [vmem:[%s2376_s1 + $0x48] sm:$0xff] (!%p143_p2)   ;;  %v2018_v8 = vld [vmem:[%s2376_s1 + $0x50] sm:$0xff] (!%p143_p2)   ;;  %s1514_s21 = sshll.u32 (!%p143_p2), %s2172_s13, 5  ;;  %p184_p4 = scmp.lt.s32.totalorder (!%p143_p2), %s2172_s13, 1  ;;  %vm1417_vm0 = vcmask (!%p143_p2), 1040384  }
   0x6   : > { %146 = sbr.rel (%p143_p2) target bundleno = 398 (0x18e), region = 28  ;;  %v2011_v1 = vld [vmem:[%s2376_s1 + $0xc0] sm:$0xff] (!%p143_p2)   ;;  %1778 = vmatprep.subr.bf16.mxu0 (!%p143_p2), %v2010_v0  ;;  %v2015_v5 = vld [vmem:[%s2376_s1 + $0xc8] sm:$0xff] (!%p143_p2)   ;;  %v2019_v9 = vld [vmem:[%s2376_s1 + $0xd0] sm:$0xff] (!%p143_p2)   ;;  %p172_p3 = scmp.lt.s32.totalorder (!%p143_p2), %s1514_s21, 63  ;;  %vm1419_vm1 = vcmask (!%p143_p2), 1041408  }
   0x7   : > { %v2012_v2 = vld [vmem:[%s2376_s1] sm:$0xff] (!%p143_p2)   ;;  %1890 = vmatprep.subr.bf16.mxu1 (!%p143_p2), %v2011_v1  ;;  %v2016_v6 = vld [vmem:[%s2376_s1 + $0x8] sm:$0xff] (!%p143_p2)   ;;  %v2020_v10 = vld [vmem:[%s2376_s1 + $0x10] sm:$0xff] (!%p143_p2)  }
   0x8   : > { %v2013_v3 = vld [vmem:[%s2376_s1 + $0x80] sm:$0xff] (!%p143_p2)   ;;  %1779 = vmatpush3.bf16.msra.mxu0 (!%p143_p2), %v2012_v2  ;;  %v2017_v7 = vld [vmem:[%s2376_s1 + $0x88] sm:$0xff] (!%p143_p2)   ;;  %v2021_v11 = vld [vmem:[%s2376_s1 + $0x90] sm:$0xff] (!%p143_p2)  }
   0x9   : > { %1891 = vmatpush3.bf16.msra.mxu1 (!%p143_p2), %v2013_v3  ;;  %1780 = vmatprep.subr.bf16.mxu0 (!%p143_p2), %v2014_v4  ;;  %v2022_v12 = vld [vmem:[%s2376_s1 + $0x58] sm:$0xff] (!%p143_p2)   ;;  %v2026_v16 = vld [vmem:[%s2376_s1 + $0x60] sm:$0xff] (!%p143_p2)   ;;  %v2030_v20 = vld [vmem:[%s2376_s1 + $0x68] sm:$0xff] (!%p143_p2)  }
   0xa   : > { %1892 = vmatprep.subr.bf16.mxu1 (!%p143_p2), %v2015_v5  ;;  %v2023_v13 = vld [vmem:[%s2376_s1 + $0xd8] sm:$0xff] (!%p143_p2)   ;;  %v2027_v17 = vld [vmem:[%s2376_s1 + $0xe0] sm:$0xff] (!%p143_p2)   ;;  %v2031_v21 = vld [vmem:[%s2376_s1 + $0xe8] sm:$0xff] (!%p143_p2)  }
   0xb   : > { %v2024_v14 = vld [vmem:[%s2376_s1 + $0x18] sm:$0xff] (!%p143_p2)   ;;  %v2028_v18 = vld [vmem:[%s2376_s1 + $0x20] sm:$0xff] (!%p143_p2)   ;;  %v2032_v22 = vld [vmem:[%s2376_s1 + $0x28] sm:$0xff] (!%p143_p2)  }
   0xc   : > { %1781 = vmatpush3.bf16.msra.mxu0 (!%p143_p2), %v2016_v6  ;;  %v2025_v15 = vld [vmem:[%s2376_s1 + $0x98] sm:$0xff] (!%p143_p2)   ;;  %v2029_v19 = vld [vmem:[%s2376_s1 + $0xa0] sm:$0xff] (!%p143_p2)   ;;  %v2033_v23 = vld [vmem:[%s2376_s1 + $0xa8] sm:$0xff] (!%p143_p2)  }
   0xd   : > { %1893 = vmatpush3.bf16.msra.mxu1 %v2017_v7  ;;  %1782 = vmatprep.subr.bf16.mxu0 %v2018_v8  ;;  %s2380_s21 = smov (!%p172_p3, %s1514_s21), 63  ;;  %v2034_v24 = vld [vmem:[%s2376_s1 + $0x70] sm:$0xff]   ;;  %v2038_v28 = vld [vmem:[%s2376_s1 + $0x78] sm:$0xff]   ;;  %s2382_s13 = smov (!%p184_p4, %s2172_s13), 1 }
   0xe   : > { %1894 = vmatprep.subr.bf16.mxu1 %v2019_v9  ;;  %v2035_v25 = vld [vmem:[%s2376_s1 + $0xf0] sm:$0xff]   ;;  %s1650_s19 = sshll.u32 %s2380_s21, 4  ;;  %v2039_v29 = vld [vmem:[%s2376_s1 + $0xf8] sm:$0xff]   ;;  %s1518_s7 = sshll.u32 %s2380_s21, 2 }
   0xf   : > { %v2036_v26 = vld [vmem:[%s2376_s1 + $0x30] sm:$0xff]   ;;  %s2273_s29 = scalar_lea.vmem %s2375_s0, %s1650_s19  ;;  %v2040_v30 = vld [vmem:[%s2376_s1 + $0x38] sm:$0xff]   ;;  %s2349_s10 = scalar_lea.vmem %s2377_s2, %s1518_s7 }
  0x10   : > { %1783 = vmatpush3.bf16.msra.mxu0 %v2020_v10  ;;  %v2037_v27 = vld [vmem:[%s2376_s1 + $0xb0] sm:$0xff]   ;;  %v2041_v31 = vld [vmem:[%s2376_s1 + $0xb8] sm:$0xff]   ;;  %s1519_s21 = sshll.u32 %s2382_s13, 3 }
  0x11   : > { %1895 = vmatpush3.bf16.msra.mxu1 %v2021_v11  ;;  %1784 = vmatprep.subr.bf16.mxu0 %v2022_v12  ;;  %v2042_v32 = vld [vmem:[%s2273_s29] ss:$16 sps:$4 sm:$0xff]   ;;  %v2044_v33 = vld [vmem:[%s2273_s29 + $0x4] ss:$16 sps:$4 sm:$0xff]   ;;  %v2045_v34 = vld [vmem:[%s2273_s29 + $0x8] ss:$16 sps:$4 sm:$0xff]   ;;  %s187_s15 = scalar_lea.vmem %s2378_s3, %s1519_s21 }
  0x12   : > { %1896 = vmatprep.subr.bf16.mxu1 %v2023_v13  ;;  %v2047_v35 = vld [vmem:[%s2273_s29 + $0xc] ss:$16 sps:$4 sm:$0xff]   ;;  %861 = vmatprep.mubr.bf16.mxu0 %v2044_v33  ;;  %v2048_v36 = vld [vmem:[%s2273_s29 + $0x24] ss:$16 sps:$4 sm:$0xff]   ;;  %v2052_v38 = vld [vmem:[%s2273_s29 + $0x20] ss:$16 sps:$4 sm:$0xff]  }
  0x13   : > { %1022 = vmatprep.mubr.bf16.mxu1 %v2047_v35  ;;  %v2050_v37 = vld [vmem:[%s2273_s29 + $0x2c] ss:$16 sps:$4 sm:$0xff]   ;;  %v2053_v39 = vld [vmem:[%s2273_s29 + $0x28] ss:$16 sps:$4 sm:$0xff]   ;;  %v2054_v40 = vld [vmem:[%s2273_s29 + $0x44] ss:$16 sps:$4 sm:$0xff]  }
  0x14   : > { %1785 = vmatpush3.bf16.msra.mxu0 %v2024_v14  ;;  %v2056_v41 = vld [vmem:[%s2273_s29 + $0x4c] ss:$16 sps:$4 sm:$0xff]   ;;  %v2058_v42 = vld [vmem:[%s2273_s29 + $0x40] ss:$16 sps:$4 sm:$0xff]   ;;  %v2059_v43 = vld [vmem:[%s2273_s29 + $0x48] ss:$16 sps:$4 sm:$0xff]  }
  0x15   : > { %1897 = vmatpush3.bf16.msra.mxu1 %v2025_v15  ;;  %1786 = vmatprep.subr.bf16.mxu0 %v2026_v16  ;;  %v2060_v44 = vld [vmem:[%s2273_s29 + $0x64] ss:$16 sps:$4 sm:$0xff]   ;;  %v2062_v45 = vld [vmem:[%s2273_s29 + $0x6c] ss:$16 sps:$4 sm:$0xff]   ;;  %v2064_v46 = vld [vmem:[%s2273_s29 + $0x60] ss:$16 sps:$4 sm:$0xff]  }
  0x16   : > { %1898 = vmatprep.subr.bf16.mxu1 %v2027_v17  ;;  %v2065_v47 = vld [vmem:[%s2273_s29 + $0x68] ss:$16 sps:$4 sm:$0xff]   ;;  %v2066_v48 = vld [vmem:[%s2273_s29 + $0x84] ss:$16 sps:$4 sm:$0xff]   ;;  %v2068_v49 = vld [vmem:[%s2273_s29 + $0x8c] ss:$16 sps:$4 sm:$0xff]  }
  0x17   : > { %v2070_v50 = vld [vmem:[%s2273_s29 + $0x80] ss:$16 sps:$4 sm:$0xff]   ;;  %v2071_v51 = vld [vmem:[%s2273_s29 + $0x88] ss:$16 sps:$4 sm:$0xff]   ;;  %v2072_v52 = vld [vmem:[%s2273_s29 + $0xa4] ss:$16 sps:$4 sm:$0xff]  }
  0x18   : > { %1787 = vmatpush3.bf16.msra.mxu0 %v2028_v18  ;;  %v2074_v53 = vld [vmem:[%s2273_s29 + $0xac] ss:$16 sps:$4 sm:$0xff]   ;;  %v2076_v54 = vld [vmem:[%s2273_s29 + $0xa0] ss:$16 sps:$4 sm:$0xff]   ;;  %v2077_v55 = vld [vmem:[%s2273_s29 + $0xa8] ss:$16 sps:$4 sm:$0xff]  }
  0x19   : > { %1899 = vmatpush3.bf16.msra.mxu1 %v2029_v19  ;;  %1788 = vmatprep.subr.bf16.mxu0 %v2030_v20  ;;  %v2078_v56 = vld [vmem:[%s2273_s29 + $0xc4] ss:$16 sps:$4 sm:$0xff]   ;;  %v2080_v57 = vld [vmem:[%s2273_s29 + $0xcc] ss:$16 sps:$4 sm:$0xff]   ;;  %v2082_v58 = vld [vmem:[%s2273_s29 + $0xc0] ss:$16 sps:$4 sm:$0xff]  }
  0x1a   : > { %1900 = vmatprep.subr.bf16.mxu1 %v2031_v21  ;;  %v2083_v59 = vld [vmem:[%s2273_s29 + $0xc8] ss:$16 sps:$4 sm:$0xff]   ;;  %v2084_v60 = vld [vmem:[%s2273_s29 + $0xe4] ss:$16 sps:$4 sm:$0xff]   ;;  %v2086_v61 = vld [vmem:[%s2273_s29 + $0xec] ss:$16 sps:$4 sm:$0xff]  }
  0x1b   : > { %v2088_v62 = vld [vmem:[%s2273_s29 + $0xe0] ss:$16 sps:$4 sm:$0xff]   ;;  %v2089_v63 = vld [vmem:[%s2273_s29 + $0xe8] ss:$16 sps:$4 sm:$0xff]   ;;  %v2090_v0 = vld [vmem:[%s2273_s29 + $0x104] ss:$16 sps:$4 sm:$0xff]  }
  0x1c   : > { %1789 = vmatpush3.bf16.msra.mxu0 %v2032_v22  ;;  %v2092_v1 = vld [vmem:[%s2273_s29 + $0x10c] ss:$16 sps:$4 sm:$0xff]   ;;  %v2094_v2 = vld [vmem:[%s2273_s29 + $0x100] ss:$16 sps:$4 sm:$0xff]   ;;  %v2095_v3 = vld [vmem:[%s2273_s29 + $0x108] ss:$16 sps:$4 sm:$0xff]  }
  0x1d   : > { %1901 = vmatpush3.bf16.msra.mxu1 %v2033_v23  ;;  %1790 = vmatprep.subr.bf16.mxu0 %v2034_v24  ;;  %v2096_v4 = vld [vmem:[%s2273_s29 + $0x124] ss:$16 sps:$4 sm:$0xff]   ;;  %v2098_v5 = vld [vmem:[%s2273_s29 + $0x12c] ss:$16 sps:$4 sm:$0xff]   ;;  %v2100_v6 = vld [vmem:[%s2273_s29 + $0x120] ss:$16 sps:$4 sm:$0xff]  }
  0x1e   : > { %1902 = vmatprep.subr.bf16.mxu1 %v2035_v25  ;;  %v2101_v7 = vld [vmem:[%s2273_s29 + $0x128] ss:$16 sps:$4 sm:$0xff]   ;;  %v2102_v8 = vld [vmem:[%s2273_s29 + $0x144] ss:$16 sps:$4 sm:$0xff]   ;;  %v2104_v9 = vld [vmem:[%s2273_s29 + $0x14c] ss:$16 sps:$4 sm:$0xff]  }
  0x1f   : > { %v2106_v10 = vld [vmem:[%s2273_s29 + $0x140] ss:$16 sps:$4 sm:$0xff]   ;;  %v2107_v11 = vld [vmem:[%s2273_s29 + $0x148] ss:$16 sps:$4 sm:$0xff]   ;;  %v2108_v12 = vld [vmem:[%s2273_s29 + $0x164] ss:$16 sps:$4 sm:$0xff]  }
  0x20   : > { %1791 = vmatpush3.bf16.msra.mxu0 %v2036_v26  ;;  %v2110_v13 = vld [vmem:[%s2273_s29 + $0x16c] ss:$16 sps:$4 sm:$0xff]   ;;  %v2112_v14 = vld [vmem:[%s2273_s29 + $0x160] ss:$16 sps:$4 sm:$0xff]   ;;  %v2113_v15 = vld [vmem:[%s2273_s29 + $0x168] ss:$16 sps:$4 sm:$0xff]  }
  0x21   : > { %1903 = vmatpush3.bf16.msra.mxu1 %v2037_v27  ;;  %1792 = vmatprep.subr.bf16.mxu0 %v2038_v28  ;;  %v2114_v16 = vld [vmem:[%s2273_s29 + $0x184] ss:$16 sps:$4 sm:$0xff]   ;;  %v2116_v17 = vld [vmem:[%s2273_s29 + $0x18c] ss:$16 sps:$4 sm:$0xff]   ;;  %v2118_v18 = vld [vmem:[%s2273_s29 + $0x180] ss:$16 sps:$4 sm:$0xff]  }
  0x22   : > { %1904 = vmatprep.subr.bf16.mxu1 %v2039_v29  ;;  %v2119_v19 = vld [vmem:[%s2273_s29 + $0x188] ss:$16 sps:$4 sm:$0xff]   ;;  %v2120_v20 = vld [vmem:[%s2273_s29 + $0x1a4] ss:$16 sps:$4 sm:$0xff]   ;;  %v2122_v21 = vld [vmem:[%s2273_s29 + $0x1ac] ss:$16 sps:$4 sm:$0xff]  }
  0x23   : > { %v2124_v22 = vld [vmem:[%s2273_s29 + $0x1a0] ss:$16 sps:$4 sm:$0xff]   ;;  %v2125_v23 = vld [vmem:[%s2273_s29 + $0x1a8] ss:$16 sps:$4 sm:$0xff]   ;;  %v2126_v24 = vld [vmem:[%s2273_s29 + $0x1c4] ss:$16 sps:$4 sm:$0xff]  }
  0x24   : > { %1793 = vmatpush3.bf16.msra.mxu0 %v2040_v30  ;;  %v2128_v25 = vld [vmem:[%s2273_s29 + $0x1cc] ss:$16 sps:$4 sm:$0xff]   ;;  %v2130_v26 = vld [vmem:[%s2273_s29 + $0x1c0] ss:$16 sps:$4 sm:$0xff]   ;;  %v2131_v27 = vld [vmem:[%s2273_s29 + $0x1c8] ss:$16 sps:$4 sm:$0xff]  }
  0x25   : > { %1905 = vmatpush3.bf16.msra.mxu1 %v2041_v31  ;;  %v2132_v28 = vld [vmem:[%s2273_s29 + $0x1e4] ss:$16 sps:$4 sm:$0xff]   ;;  %v2134_v29 = vld [vmem:[%s2273_s29 + $0x1ec] ss:$16 sps:$4 sm:$0xff]   ;;  %v2136_v30 = vld [vmem:[%s2273_s29 + $0x1e0] ss:$16 sps:$4 sm:$0xff]  }
  0x26   : > { %v2137_v31 = vld [vmem:[%s2273_s29 + $0x1e8] ss:$16 sps:$4 sm:$0xff]  }
  0x27   : > { %862 = vmatmul.mubr.bf16.vlgmr.msra.gmra.mrb[0].mxu0 %v2042_v32 }
  0x28   : > { %1023 = vmatmul.mubr.bf16.vlgmr.msra.gmra.mrb[0].mxu1 %v2045_v34  ;;  %869 = vmatprep.mubr.bf16.mxu0 %v2048_v36 }
  0x29   : > { %1030 = vmatprep.mubr.bf16.mxu1 %v2050_v37 }
  0x2f   : > { %870 = vmatmul.mubr.bf16.gmra.mrb[4].mxu0 %v2052_v38 }
  0x30   : > { %1031 = vmatmul.mubr.bf16.gmra.mrb[4].mxu1 %v2053_v39  ;;  %877 = vmatprep.mubr.bf16.mxu0 %v2054_v40 }
  0x31   : > { %1038 = vmatprep.mubr.bf16.mxu1 %v2056_v41 }
  0x37   : > { %878 = vmatmul.mubr.bf16.gmra.mrb[8].mxu0 %v2058_v42 }
  0x38   : > { %1039 = vmatmul.mubr.bf16.gmra.mrb[8].mxu1 %v2059_v43  ;;  %885 = vmatprep.mubr.bf16.mxu0 %v2060_v44 }
  0x39   : > { %1046 = vmatprep.mubr.bf16.mxu1 %v2062_v45 }
  0x3f   : > { %886 = vmatmul.mubr.bf16.gmra.mrb[12].mxu0 %v2064_v46 }
  0x40   : > { %1047 = vmatmul.mubr.bf16.gmra.mrb[12].mxu1 %v2065_v47  ;;  %893 = vmatprep.mubr.bf16.mxu0 %v2066_v48 }
  0x41   : > { %1054 = vmatprep.mubr.bf16.mxu1 %v2068_v49 }
  0x47   : > { %894 = vmatmul.mubr.bf16.gmra.mrb[16].mxu0 %v2070_v50 }
  0x48   : > { %1055 = vmatmul.mubr.bf16.gmra.mrb[16].mxu1 %v2071_v51  ;;  %901 = vmatprep.mubr.bf16.mxu0 %v2072_v52 }
  0x49   : > { %1062 = vmatprep.mubr.bf16.mxu1 %v2074_v53 }
  0x4f   : > { %902 = vmatmul.mubr.bf16.gmra.mrb[20].mxu0 %v2076_v54 }
  0x50   : > { %1063 = vmatmul.mubr.bf16.gmra.mrb[20].mxu1 %v2077_v55  ;;  %909 = vmatprep.mubr.bf16.mxu0 %v2078_v56 }
  0x51   : > { %1070 = vmatprep.mubr.bf16.mxu1 %v2080_v57 }
  0x57   : > { %910 = vmatmul.mubr.bf16.gmra.mrb[24].mxu0 %v2082_v58 }
  0x58   : > { %1071 = vmatmul.mubr.bf16.gmra.mrb[24].mxu1 %v2083_v59  ;;  %917 = vmatprep.mubr.bf16.mxu0 %v2084_v60 }
  0x59   : > { %1078 = vmatprep.mubr.bf16.mxu1 %v2086_v61 }
  0x5f   : > { %918 = vmatmul.mubr.bf16.gmra.mrb[28].mxu0 %v2088_v62 }
  0x60   : > { %1079 = vmatmul.mubr.bf16.gmra.mrb[28].mxu1 %v2089_v63  ;;  %925 = vmatprep.mubr.bf16.mxu0 %v2090_v0 }
  0x61   : > { %1086 = vmatprep.mubr.bf16.mxu1 %v2092_v1 }
  0x67   : > { %926 = vmatmul.mubr.bf16.gmra.mrb[32].mxu0 %v2094_v2 }
  0x68   : > { %1087 = vmatmul.mubr.bf16.gmra.mrb[32].mxu1 %v2095_v3  ;;  %933 = vmatprep.mubr.bf16.mxu0 %v2096_v4 }
  0x69   : > { %1094 = vmatprep.mubr.bf16.mxu1 %v2098_v5 }
  0x6f   : > { %934 = vmatmul.mubr.bf16.gmra.mrb[36].mxu0 %v2100_v6 }
  0x70   : > { %1095 = vmatmul.mubr.bf16.gmra.mrb[36].mxu1 %v2101_v7  ;;  %941 = vmatprep.mubr.bf16.mxu0 %v2102_v8 }
  0x71   : > { %1102 = vmatprep.mubr.bf16.mxu1 %v2104_v9 }
  0x77   : > { %942 = vmatmul.mubr.bf16.gmra.mrb[40].mxu0 %v2106_v10 }
  0x78   : > { %1103 = vmatmul.mubr.bf16.gmra.mrb[40].mxu1 %v2107_v11  ;;  %949 = vmatprep.mubr.bf16.mxu0 %v2108_v12 }
  0x79   : > { %1110 = vmatprep.mubr.bf16.mxu1 %v2110_v13 }
  0x7f   : > { %950 = vmatmul.mubr.bf16.gmra.mrb[44].mxu0 %v2112_v14 }
  0x80   : > { %1111 = vmatmul.mubr.bf16.gmra.mrb[44].mxu1 %v2113_v15  ;;  %957 = vmatprep.mubr.bf16.mxu0 %v2114_v16 }
  0x81   : > { %1118 = vmatprep.mubr.bf16.mxu1 %v2116_v17 }
  0x87   : > { %958 = vmatmul.mubr.bf16.gmra.mrb[48].mxu0 %v2118_v18 }
  0x88   : > { %1119 = vmatmul.mubr.bf16.gmra.mrb[48].mxu1 %v2119_v19  ;;  %965 = vmatprep.mubr.bf16.mxu0 %v2120_v20 }
  0x89   : > { %1126 = vmatprep.mubr.bf16.mxu1 %v2122_v21 }
  0x8f   : > { %966 = vmatmul.mubr.bf16.gmra.mrb[52].mxu0 %v2124_v22 }
  0x90   : > { %1127 = vmatmul.mubr.bf16.gmra.mrb[52].mxu1 %v2125_v23  ;;  %973 = vmatprep.mubr.bf16.mxu0 %v2126_v24 }
  0x91   : > { %1134 = vmatprep.mubr.bf16.mxu1 %v2128_v25 }
  0x97   : > { %974 = vmatmul.mubr.bf16.gmra.mrb[56].mxu0 %v2130_v26 }
  0x98   : > { %1135 = vmatmul.mubr.bf16.gmra.mrb[56].mxu1 %v2131_v27  ;;  %981 = vmatprep.mubr.bf16.mxu0 %v2132_v28 }
  0x99   : > { %1142 = vmatprep.mubr.bf16.mxu1 %v2134_v29 }
  0x9f   : > { %982 = vmatmul.mubr.bf16.gmra.mrb[60].mxu0 %v2136_v30 }
  0xa0   : > { %1143 = vmatmul.mubr.bf16.gmra.mrb[60].mxu1 %v2137_v31 }
  0xfa   : > { %v1794_v32 = vpop.f32.mrb[0].mxu0 }
  0xfb   : > { %v1906_v33 = vpop.f32.mrb[0].mxu1  ;;  %v1795_v34 = vpop.f32.mrb[1].mxu0 }
  0xfc   : > { %v1796_v35 = vadd.f32 %v1795_v34, %v1794_v32  ;;  %v1907_v36 = vpop.f32.mrb[1].mxu1  ;;  %v1797_v37 = vpop.f32.mrb[2].mxu0 }
  0xfd   : > { %v1908_v38 = vadd.f32 %v1907_v36, %v1906_v33  ;;  %v1909_v39 = vpop.f32.mrb[2].mxu1  ;;  %v1798_v40 = vpop.f32.mrb[3].mxu0 }
  0xfe   : > { %v1799_v41 = vadd.f32 %v1798_v40, %v1797_v37  ;;  %v1910_v42 = vpop.f32.mrb[3].mxu1 }
  0xff   : > { %v1025_v43 = vadd.f32 %v1908_v38, %v1796_v35  ;;  %v1911_v44 = vadd.f32 %v1910_v42, %v1909_v39 }
 0x101   : > { %v1028_v45 = vadd.f32 %v1911_v44, %v1799_v41  ;;  %v1348_v47 = vmul.f32 %v1025_v43, %v1025_v43 }
 0x102   : > { %v1800_v46 = vpop.f32.mrb[4].mxu0 }
 0x103   : > { %v1686_v48 = vpack.c.bf16 %v1028_v45, %v1025_v43  ;;  %v1311_v49 = vadd.f32 %v1028_v45, %v1025_v43  ;;  %v1349_v50 = vmul.f32 %v1028_v45, %v1028_v45  ;;  %v1912_v51 = vpop.f32.mrb[4].mxu1  ;;  %v1801_v52 = vpop.f32.mrb[5].mxu0 }
 0x104   : > { %v1802_v53 = vadd.f32 %v1801_v52, %v1800_v46  ;;  %v1913_v54 = vpop.f32.mrb[5].mxu1  ;;  %v1803_v55 = vpop.f32.mrb[6].mxu0 }
 0x105   : > { %1687 = vst [vmem:[%s2349_s10] sm:$0xff] %v1686_v48   ;;  %v1380_v56 = vadd.f32 %v1349_v50, %v1348_v47  ;;  %v1914_v57 = vadd.f32 %v1913_v54, %v1912_v51  ;;  %v1915_v58 = vpop.f32.mrb[6].mxu1  ;;  %v1804_v59 = vpop.f32.mrb[7].mxu0 }
 0x106   : > { %v1805_v60 = vadd.f32 %v1804_v59, %v1803_v55  ;;  %v1916_v61 = vpop.f32.mrb[7].mxu1 }
 0x107   : > { %v1033_v62 = vadd.f32 %v1914_v57, %v1802_v53  ;;  %v1917_v63 = vadd.f32 %v1916_v61, %v1915_v58 }
 0x109   : > { %v1312_v0 = vadd.f32 %v1311_v49, %v1033_v62  ;;  %v1350_v1 = vmul.f32 %v1033_v62, %v1033_v62  ;;  %v1036_v2 = vadd.f32 %v1917_v63, %v1805_v60 }
 0x10a   : > { %v1806_v3 = vpop.f32.mrb[8].mxu0 }
 0x10b   : > { %v1381_v4 = vadd.f32 %v1380_v56, %v1350_v1  ;;  %v1691_v5 = vpack.c.bf16 %v1036_v2, %v1033_v62  ;;  %v1313_v6 = vadd.f32 %v1312_v0, %v1036_v2  ;;  %v1351_v7 = vmul.f32 %v1036_v2, %v1036_v2  ;;  %v1918_v8 = vpop.f32.mrb[8].mxu1  ;;  %v1807_v9 = vpop.f32.mrb[9].mxu0 }
 0x10c   : > { %v1808_v10 = vadd.f32 %v1807_v9, %v1806_v3  ;;  %v1919_v11 = vpop.f32.mrb[9].mxu1  ;;  %v1809_v12 = vpop.f32.mrb[10].mxu0 }
 0x10d   : > { %1763 = vst [vmem:[%s2349_s10 + $0x8] sm:$0xff] %v1691_v5   ;;  %v1382_v13 = vadd.f32 %v1381_v4, %v1351_v7  ;;  %v1920_v14 = vadd.f32 %v1919_v11, %v1918_v8  ;;  %v1921_v15 = vpop.f32.mrb[10].mxu1  ;;  %v1810_v16 = vpop.f32.mrb[11].mxu0 }
 0x10e   : > { %v1811_v17 = vadd.f32 %v1810_v16, %v1809_v12  ;;  %v1922_v18 = vpop.f32.mrb[11].mxu1 }
 0x10f   : > { %v1041_v19 = vadd.f32 %v1920_v14, %v1808_v10  ;;  %v1923_v20 = vadd.f32 %v1922_v18, %v1921_v15 }
 0x111   : > { %v1314_v21 = vadd.f32 %v1313_v6, %v1041_v19  ;;  %v1352_v22 = vmul.f32 %v1041_v19, %v1041_v19  ;;  %v1044_v23 = vadd.f32 %v1923_v20, %v1811_v17 }
 0x112   : > { %v1812_v24 = vpop.f32.mrb[12].mxu0 }
 0x113   : > { %v1383_v25 = vadd.f32 %v1382_v13, %v1352_v22  ;;  %v1696_v26 = vpack.c.bf16 %v1044_v23, %v1041_v19  ;;  %v1315_v27 = vadd.f32 %v1314_v21, %v1044_v23  ;;  %v1353_v28 = vmul.f32 %v1044_v23, %v1044_v23  ;;  %v1924_v29 = vpop.f32.mrb[12].mxu1  ;;  %v1813_v30 = vpop.f32.mrb[13].mxu0 }
 0x114   : > { %v1814_v31 = vadd.f32 %v1813_v30, %v1812_v24  ;;  %v1925_v32 = vpop.f32.mrb[13].mxu1  ;;  %v1815_v33 = vpop.f32.mrb[14].mxu0 }
 0x115   : > { %1764 = vst [vmem:[%s2349_s10 + $0x10] sm:$0xff] %v1696_v26   ;;  %v1384_v34 = vadd.f32 %v1383_v25, %v1353_v28  ;;  %v1926_v35 = vadd.f32 %v1925_v32, %v1924_v29  ;;  %v1927_v36 = vpop.f32.mrb[14].mxu1  ;;  %v1816_v37 = vpop.f32.mrb[15].mxu0 }
 0x116   : > { %v1817_v38 = vadd.f32 %v1816_v37, %v1815_v33  ;;  %v1928_v39 = vpop.f32.mrb[15].mxu1 }
 0x117   : > { %v1049_v40 = vadd.f32 %v1926_v35, %v1814_v31  ;;  %v1929_v41 = vadd.f32 %v1928_v39, %v1927_v36 }
 0x119   : > { %v1316_v42 = vadd.f32 %v1315_v27, %v1049_v40  ;;  %v1354_v43 = vmul.f32 %v1049_v40, %v1049_v40  ;;  %v1052_v44 = vadd.f32 %v1929_v41, %v1817_v38 }
 0x11a   : > { %v1818_v45 = vpop.f32.mrb[16].mxu0 }
 0x11b   : > { %v1385_v46 = vadd.f32 %v1384_v34, %v1354_v43  ;;  %v1701_v47 = vpack.c.bf16 %v1052_v44, %v1049_v40  ;;  %v1317_v48 = vadd.f32 %v1316_v42, %v1052_v44  ;;  %v1355_v49 = vmul.f32 %v1052_v44, %v1052_v44  ;;  %v1930_v50 = vpop.f32.mrb[16].mxu1  ;;  %v1819_v51 = vpop.f32.mrb[17].mxu0 }
 0x11c   : > { %v1820_v52 = vadd.f32 %v1819_v51, %v1818_v45  ;;  %v1931_v53 = vpop.f32.mrb[17].mxu1  ;;  %v1821_v54 = vpop.f32.mrb[18].mxu0 }
 0x11d   : > { %1765 = vst [vmem:[%s2349_s10 + $0x18] sm:$0xff] %v1701_v47   ;;  %v1386_v55 = vadd.f32 %v1385_v46, %v1355_v49  ;;  %v1932_v56 = vadd.f32 %v1931_v53, %v1930_v50  ;;  %v1933_v57 = vpop.f32.mrb[18].mxu1  ;;  %v1822_v58 = vpop.f32.mrb[19].mxu0 }
 0x11e   : > { %v1823_v59 = vadd.f32 %v1822_v58, %v1821_v54  ;;  %v1934_v60 = vpop.f32.mrb[19].mxu1 }
 0x11f   : > { %v1057_v61 = vadd.f32 %v1932_v56, %v1820_v52  ;;  %v1935_v62 = vadd.f32 %v1934_v60, %v1933_v57 }
 0x121   : > { %v1318_v63 = vadd.f32 %v1317_v48, %v1057_v61  ;;  %v1356_v0 = vmul.f32 %v1057_v61, %v1057_v61  ;;  %v1060_v1 = vadd.f32 %v1935_v62, %v1823_v59 }
 0x122   : > { %v1824_v2 = vpop.f32.mrb[20].mxu0 }
 0x123   : > { %v1387_v3 = vadd.f32 %v1386_v55, %v1356_v0  ;;  %v1706_v4 = vpack.c.bf16 %v1060_v1, %v1057_v61  ;;  %v1319_v5 = vadd.f32 %v1318_v63, %v1060_v1  ;;  %v1357_v6 = vmul.f32 %v1060_v1, %v1060_v1  ;;  %v1936_v7 = vpop.f32.mrb[20].mxu1  ;;  %v1825_v8 = vpop.f32.mrb[21].mxu0 }
 0x124   : > { %v1826_v9 = vadd.f32 %v1825_v8, %v1824_v2  ;;  %v1937_v10 = vpop.f32.mrb[21].mxu1  ;;  %v1827_v11 = vpop.f32.mrb[22].mxu0 }
 0x125   : > { %1766 = vst [vmem:[%s2349_s10 + $0x20] sm:$0xff] %v1706_v4   ;;  %v1388_v12 = vadd.f32 %v1387_v3, %v1357_v6  ;;  %v1938_v13 = vadd.f32 %v1937_v10, %v1936_v7  ;;  %v1939_v14 = vpop.f32.mrb[22].mxu1  ;;  %v1828_v15 = vpop.f32.mrb[23].mxu0 }
 0x126   : > { %v1829_v16 = vadd.f32 %v1828_v15, %v1827_v11  ;;  %v1940_v17 = vpop.f32.mrb[23].mxu1 }
 0x127   : > { %v1065_v18 = vadd.f32 %v1938_v13, %v1826_v9  ;;  %v1941_v19 = vadd.f32 %v1940_v17, %v1939_v14 }
 0x129   : > { %v1320_v20 = vadd.f32 %v1319_v5, %v1065_v18  ;;  %v1358_v21 = vmul.f32 %v1065_v18, %v1065_v18  ;;  %v1068_v22 = vadd.f32 %v1941_v19, %v1829_v16 }
 0x12a   : > { %v1830_v23 = vpop.f32.mrb[24].mxu0 }
 0x12b   : > { %v1389_v24 = vadd.f32 %v1388_v12, %v1358_v21  ;;  %v1711_v25 = vpack.c.bf16 %v1068_v22, %v1065_v18  ;;  %v1321_v26 = vadd.f32 %v1320_v20, %v1068_v22  ;;  %v1359_v27 = vmul.f32 %v1068_v22, %v1068_v22  ;;  %v1942_v28 = vpop.f32.mrb[24].mxu1  ;;  %v1831_v29 = vpop.f32.mrb[25].mxu0 }
 0x12c   : > { %v1832_v30 = vadd.f32 %v1831_v29, %v1830_v23  ;;  %v1943_v31 = vpop.f32.mrb[25].mxu1  ;;  %v1833_v32 = vpop.f32.mrb[26].mxu0 }
 0x12d   : > { %1767 = vst [vmem:[%s2349_s10 + $0x28] sm:$0xff] %v1711_v25   ;;  %v1390_v33 = vadd.f32 %v1389_v24, %v1359_v27  ;;  %v1944_v34 = vadd.f32 %v1943_v31, %v1942_v28  ;;  %v1945_v35 = vpop.f32.mrb[26].mxu1  ;;  %v1834_v36 = vpop.f32.mrb[27].mxu0 }
 0x12e   : > { %v1835_v37 = vadd.f32 %v1834_v36, %v1833_v32  ;;  %v1946_v38 = vpop.f32.mrb[27].mxu1 }
 0x12f   : > { %v1073_v39 = vadd.f32 %v1944_v34, %v1832_v30  ;;  %v1947_v40 = vadd.f32 %v1946_v38, %v1945_v35 }
 0x131   : > { %v1322_v41 = vadd.f32 %v1321_v26, %v1073_v39  ;;  %v1360_v42 = vmul.f32 %v1073_v39, %v1073_v39  ;;  %v1076_v43 = vadd.f32 %v1947_v40, %v1835_v37 }
 0x132   : > { %v1836_v44 = vpop.f32.mrb[28].mxu0 }
 0x133   : > { %v1391_v45 = vadd.f32 %v1390_v33, %v1360_v42  ;;  %v1716_v46 = vpack.c.bf16 %v1076_v43, %v1073_v39  ;;  %v1323_v47 = vadd.f32 %v1322_v41, %v1076_v43  ;;  %v1361_v48 = vmul.f32 %v1076_v43, %v1076_v43  ;;  %v1948_v49 = vpop.f32.mrb[28].mxu1  ;;  %v1837_v50 = vpop.f32.mrb[29].mxu0 }
 0x134   : > { %v1838_v51 = vadd.f32 %v1837_v50, %v1836_v44  ;;  %v1949_v52 = vpop.f32.mrb[29].mxu1  ;;  %v1839_v53 = vpop.f32.mrb[30].mxu0 }
 0x135   : > { %1768 = vst [vmem:[%s2349_s10 + $0x30] sm:$0xff] %v1716_v46   ;;  %v1392_v54 = vadd.f32 %v1391_v45, %v1361_v48  ;;  %v1950_v55 = vadd.f32 %v1949_v52, %v1948_v49  ;;  %v1951_v56 = vpop.f32.mrb[30].mxu1  ;;  %v1840_v57 = vpop.f32.mrb[31].mxu0 }
 0x136   : > { %v1841_v58 = vadd.f32 %v1840_v57, %v1839_v53  ;;  %v1952_v59 = vpop.f32.mrb[31].mxu1 }
 0x137   : > { %v1081_v60 = vadd.f32 %v1950_v55, %v1838_v51  ;;  %v1953_v61 = vadd.f32 %v1952_v59, %v1951_v56 }
 0x139   : > { %v1324_v62 = vadd.f32 %v1323_v47, %v1081_v60  ;;  %v1362_v63 = vmul.f32 %v1081_v60, %v1081_v60  ;;  %v1084_v0 = vadd.f32 %v1953_v61, %v1841_v58 }
 0x13a   : > { %v1842_v1 = vpop.f32.mrb[32].mxu0 }
 0x13b   : > { %v1393_v2 = vadd.f32 %v1392_v54, %v1362_v63  ;;  %v1721_v3 = vpack.c.bf16 %v1084_v0, %v1081_v60  ;;  %v1325_v4 = vadd.f32 %v1324_v62, %v1084_v0  ;;  %v1363_v5 = vmul.f32 %v1084_v0, %v1084_v0  ;;  %v1954_v6 = vpop.f32.mrb[32].mxu1  ;;  %v1843_v7 = vpop.f32.mrb[33].mxu0 }
 0x13c   : > { %v1844_v8 = vadd.f32 %v1843_v7, %v1842_v1  ;;  %v1955_v9 = vpop.f32.mrb[33].mxu1  ;;  %v1845_v10 = vpop.f32.mrb[34].mxu0 }
 0x13d   : > { %1769 = vst [vmem:[%s2349_s10 + $0x38] sm:$0xff] %v1721_v3   ;;  %v1394_v11 = vadd.f32 %v1393_v2, %v1363_v5  ;;  %v1956_v12 = vadd.f32 %v1955_v9, %v1954_v6  ;;  %v1957_v13 = vpop.f32.mrb[34].mxu1  ;;  %v1846_v14 = vpop.f32.mrb[35].mxu0 }
 0x13e   : > { %v1847_v15 = vadd.f32 %v1846_v14, %v1845_v10  ;;  %v1958_v16 = vpop.f32.mrb[35].mxu1 }
 0x13f   : > { %v1089_v17 = vadd.f32 %v1956_v12, %v1844_v8  ;;  %v1959_v18 = vadd.f32 %v1958_v16, %v1957_v13 }
 0x141   : > { %v1326_v19 = vadd.f32 %v1325_v4, %v1089_v17  ;;  %v1364_v20 = vmul.f32 %v1089_v17, %v1089_v17  ;;  %v1092_v21 = vadd.f32 %v1959_v18, %v1847_v15 }
 0x142   : > { %v1848_v22 = vpop.f32.mrb[36].mxu0 }
 0x143   : > { %v1395_v23 = vadd.f32 %v1394_v11, %v1364_v20  ;;  %v1726_v24 = vpack.c.bf16 %v1092_v21, %v1089_v17  ;;  %v1327_v25 = vadd.f32 %v1326_v19, %v1092_v21  ;;  %v1365_v26 = vmul.f32 %v1092_v21, %v1092_v21  ;;  %v1960_v27 = vpop.f32.mrb[36].mxu1  ;;  %v1849_v28 = vpop.f32.mrb[37].mxu0 }
 0x144   : > { %v1850_v29 = vadd.f32 %v1849_v28, %v1848_v22  ;;  %v1961_v30 = vpop.f32.mrb[37].mxu1  ;;  %v1851_v31 = vpop.f32.mrb[38].mxu0 }
 0x145   : > { %1770 = vst [vmem:[%s2349_s10 + $0x40] sm:$0xff] %v1726_v24   ;;  %v1396_v32 = vadd.f32 %v1395_v23, %v1365_v26  ;;  %v1962_v33 = vadd.f32 %v1961_v30, %v1960_v27  ;;  %v1963_v34 = vpop.f32.mrb[38].mxu1  ;;  %v1852_v35 = vpop.f32.mrb[39].mxu0 }
 0x146   : > { %v1853_v36 = vadd.f32 %v1852_v35, %v1851_v31  ;;  %v1964_v37 = vpop.f32.mrb[39].mxu1 }
 0x147   : > { %v1097_v38 = vadd.f32 %v1962_v33, %v1850_v29  ;;  %v1965_v39 = vadd.f32 %v1964_v37, %v1963_v34 }
 0x149   : > { %v1328_v40 = vadd.f32 %v1327_v25, %v1097_v38  ;;  %v1366_v41 = vmul.f32 %v1097_v38, %v1097_v38  ;;  %v1100_v42 = vadd.f32 %v1965_v39, %v1853_v36 }
 0x14a   : > { %v1854_v43 = vpop.f32.mrb[40].mxu0 }
 0x14b   : > { %v1397_v44 = vadd.f32 %v1396_v32, %v1366_v41  ;;  %v1731_v45 = vpack.c.bf16 %v1100_v42, %v1097_v38  ;;  %v1329_v46 = vadd.f32 %v1328_v40, %v1100_v42  ;;  %v1367_v47 = vmul.f32 %v1100_v42, %v1100_v42  ;;  %v1966_v48 = vpop.f32.mrb[40].mxu1  ;;  %v1855_v49 = vpop.f32.mrb[41].mxu0 }
 0x14c   : > { %v1856_v50 = vadd.f32 %v1855_v49, %v1854_v43  ;;  %v1967_v51 = vpop.f32.mrb[41].mxu1  ;;  %v1857_v52 = vpop.f32.mrb[42].mxu0 }
 0x14d   : > { %1771 = vst [vmem:[%s2349_s10 + $0x48] sm:$0xff] %v1731_v45   ;;  %v1398_v53 = vadd.f32 %v1397_v44, %v1367_v47  ;;  %v1968_v54 = vadd.f32 %v1967_v51, %v1966_v48  ;;  %v1969_v55 = vpop.f32.mrb[42].mxu1  ;;  %v1858_v56 = vpop.f32.mrb[43].mxu0 }
 0x14e   : > { %v1859_v57 = vadd.f32 %v1858_v56, %v1857_v52  ;;  %v1970_v58 = vpop.f32.mrb[43].mxu1 }
 0x14f   : > { %v1105_v59 = vadd.f32 %v1968_v54, %v1856_v50  ;;  %v1971_v60 = vadd.f32 %v1970_v58, %v1969_v55 }
 0x151   : > { %v1330_v61 = vadd.f32 %v1329_v46, %v1105_v59  ;;  %v1368_v62 = vmul.f32 %v1105_v59, %v1105_v59  ;;  %v1108_v63 = vadd.f32 %v1971_v60, %v1859_v57 }
 0x152   : > { %v1860_v0 = vpop.f32.mrb[44].mxu0 }
 0x153   : > { %v1399_v1 = vadd.f32 %v1398_v53, %v1368_v62  ;;  %v1736_v2 = vpack.c.bf16 %v1108_v63, %v1105_v59  ;;  %v1331_v3 = vadd.f32 %v1330_v61, %v1108_v63  ;;  %v1369_v4 = vmul.f32 %v1108_v63, %v1108_v63  ;;  %v1972_v5 = vpop.f32.mrb[44].mxu1  ;;  %v1861_v6 = vpop.f32.mrb[45].mxu0 }
 0x154   : > { %v1862_v7 = vadd.f32 %v1861_v6, %v1860_v0  ;;  %v1973_v8 = vpop.f32.mrb[45].mxu1  ;;  %v1863_v9 = vpop.f32.mrb[46].mxu0 }
 0x155   : > { %1772 = vst [vmem:[%s2349_s10 + $0x50] sm:$0xff] %v1736_v2   ;;  %v1400_v10 = vadd.f32 %v1399_v1, %v1369_v4  ;;  %v1974_v11 = vadd.f32 %v1973_v8, %v1972_v5  ;;  %v1975_v12 = vpop.f32.mrb[46].mxu1  ;;  %v1864_v13 = vpop.f32.mrb[47].mxu0 }
 0x156   : > { %v1865_v14 = vadd.f32 %v1864_v13, %v1863_v9  ;;  %v1976_v15 = vpop.f32.mrb[47].mxu1 }
 0x157   : > { %v1113_v16 = vadd.f32 %v1974_v11, %v1862_v7  ;;  %v1977_v17 = vadd.f32 %v1976_v15, %v1975_v12 }
 0x159   : > { %v1332_v18 = vadd.f32 %v1331_v3, %v1113_v16  ;;  %v1370_v19 = vmul.f32 %v1113_v16, %v1113_v16  ;;  %v1116_v20 = vadd.f32 %v1977_v17, %v1865_v14 }
 0x15a   : > { %v1866_v21 = vpop.f32.mrb[48].mxu0 }
 0x15b   : > { %v1401_v22 = vadd.f32 %v1400_v10, %v1370_v19  ;;  %v1741_v23 = vpack.c.bf16 %v1116_v20, %v1113_v16  ;;  %v1333_v24 = vadd.f32 %v1332_v18, %v1116_v20  ;;  %v1371_v25 = vmul.f32 %v1116_v20, %v1116_v20  ;;  %v1978_v26 = vpop.f32.mrb[48].mxu1  ;;  %v1867_v27 = vpop.f32.mrb[49].mxu0 }
 0x15c   : > { %v1868_v28 = vadd.f32 %v1867_v27, %v1866_v21  ;;  %v1979_v29 = vpop.f32.mrb[49].mxu1  ;;  %v1869_v30 = vpop.f32.mrb[50].mxu0 }
 0x15d   : > { %1773 = vst [vmem:[%s2349_s10 + $0x58] sm:$0xff] %v1741_v23   ;;  %v1402_v31 = vadd.f32 %v1401_v22, %v1371_v25  ;;  %v1980_v32 = vadd.f32 %v1979_v29, %v1978_v26  ;;  %v1981_v33 = vpop.f32.mrb[50].mxu1  ;;  %v1870_v34 = vpop.f32.mrb[51].mxu0 }
 0x15e   : > { %v1871_v35 = vadd.f32 %v1870_v34, %v1869_v30  ;;  %v1982_v36 = vpop.f32.mrb[51].mxu1 }
 0x15f   : > { %v1121_v37 = vadd.f32 %v1980_v32, %v1868_v28  ;;  %v1983_v38 = vadd.f32 %v1982_v36, %v1981_v33 }
 0x161   : > { %v1334_v39 = vadd.f32 %v1333_v24, %v1121_v37  ;;  %v1372_v40 = vmul.f32 %v1121_v37, %v1121_v37  ;;  %v1124_v41 = vadd.f32 %v1983_v38, %v1871_v35 }
 0x162   : > { %v1872_v42 = vpop.f32.mrb[52].mxu0 }
 0x163   : > { %v1403_v43 = vadd.f32 %v1402_v31, %v1372_v40  ;;  %v1746_v44 = vpack.c.bf16 %v1124_v41, %v1121_v37  ;;  %v1335_v45 = vadd.f32 %v1334_v39, %v1124_v41  ;;  %v1373_v46 = vmul.f32 %v1124_v41, %v1124_v41  ;;  %v1984_v47 = vpop.f32.mrb[52].mxu1  ;;  %v1873_v48 = vpop.f32.mrb[53].mxu0 }
 0x164   : > { %v1874_v49 = vadd.f32 %v1873_v48, %v1872_v42  ;;  %v1985_v50 = vpop.f32.mrb[53].mxu1  ;;  %v1875_v51 = vpop.f32.mrb[54].mxu0 }
 0x165   : > { %1774 = vst [vmem:[%s2349_s10 + $0x60] sm:$0xff] %v1746_v44   ;;  %v1404_v52 = vadd.f32 %v1403_v43, %v1373_v46  ;;  %v1986_v53 = vadd.f32 %v1985_v50, %v1984_v47  ;;  %v1987_v54 = vpop.f32.mrb[54].mxu1  ;;  %v1876_v55 = vpop.f32.mrb[55].mxu0 }
 0x166   : > { %v1877_v56 = vadd.f32 %v1876_v55, %v1875_v51  ;;  %v1988_v57 = vpop.f32.mrb[55].mxu1 }
 0x167   : > { %v1129_v58 = vadd.f32 %v1986_v53, %v1874_v49  ;;  %v1989_v59 = vadd.f32 %v1988_v57, %v1987_v54 }
 0x169   : > { %v1336_v60 = vadd.f32 %v1335_v45, %v1129_v58  ;;  %v1374_v61 = vmul.f32 %v1129_v58, %v1129_v58  ;;  %v1132_v62 = vadd.f32 %v1989_v59, %v1877_v56 }
 0x16a   : > { %v1878_v63 = vpop.f32.mrb[56].mxu0 }
 0x16b   : > { %v1405_v0 = vadd.f32 %v1404_v52, %v1374_v61  ;;  %v1751_v1 = vpack.c.bf16 %v1132_v62, %v1129_v58  ;;  %v1337_v2 = vadd.f32 %v1336_v60, %v1132_v62  ;;  %v1375_v3 = vmul.f32 %v1132_v62, %v1132_v62  ;;  %v1990_v4 = vpop.f32.mrb[56].mxu1  ;;  %v1879_v5 = vpop.f32.mrb[57].mxu0 }
 0x16c   : > { %v1880_v6 = vadd.f32 %v1879_v5, %v1878_v63  ;;  %v1991_v7 = vpop.f32.mrb[57].mxu1  ;;  %v1881_v8 = vpop.f32.mrb[58].mxu0 }
 0x16d   : > { %1775 = vst [vmem:[%s2349_s10 + $0x68] sm:$0xff] %v1751_v1   ;;  %v1406_v9 = vadd.f32 %v1405_v0, %v1375_v3  ;;  %v1992_v10 = vadd.f32 %v1991_v7, %v1990_v4  ;;  %v1993_v11 = vpop.f32.mrb[58].mxu1  ;;  %v1882_v12 = vpop.f32.mrb[59].mxu0 }
 0x16e   : > { %v1883_v13 = vadd.f32 %v1882_v12, %v1881_v8  ;;  %v1994_v14 = vpop.f32.mrb[59].mxu1 }
 0x16f   : > { %v1137_v15 = vadd.f32 %v1992_v10, %v1880_v6  ;;  %v1995_v16 = vadd.f32 %v1994_v14, %v1993_v11 }
 0x171   : > { %v1338_v17 = vadd.f32 %v1337_v2, %v1137_v15  ;;  %v1376_v18 = vmul.f32 %v1137_v15, %v1137_v15  ;;  %v1140_v19 = vadd.f32 %v1995_v16, %v1883_v13 }
 0x172   : > { %v1884_v20 = vpop.f32.mrb[60].mxu0 }
 0x173   : > { %v1407_v21 = vadd.f32 %v1406_v9, %v1376_v18  ;;  %v1756_v22 = vpack.c.bf16 %v1140_v19, %v1137_v15  ;;  %v1339_v23 = vadd.f32 %v1338_v17, %v1140_v19  ;;  %v1377_v24 = vmul.f32 %v1140_v19, %v1140_v19  ;;  %v1996_v25 = vpop.f32.mrb[60].mxu1  ;;  %v1885_v26 = vpop.f32.mrb[61].mxu0 }
 0x174   : > { %v1886_v27 = vadd.f32 %v1885_v26, %v1884_v20  ;;  %v1997_v28 = vpop.f32.mrb[61].mxu1  ;;  %v1887_v29 = vpop.f32.mrb[62].mxu0 }
 0x175   : > { %1776 = vst [vmem:[%s2349_s10 + $0x70] sm:$0xff] %v1756_v22   ;;  %v1408_v30 = vadd.f32 %v1407_v21, %v1377_v24  ;;  %v1998_v31 = vadd.f32 %v1997_v28, %v1996_v25  ;;  %v1999_v32 = vpop.f32.mrb[62].mxu1  ;;  %v1888_v33 = vpop.f32.mrb[63].mxu0 }
 0x176   : > { %v1889_v34 = vadd.f32 %v1888_v33, %v1887_v29  ;;  %v2000_v35 = vpop.f32.mrb[63].mxu1 }
 0x177   : > { %v1145_v36 = vadd.f32 %v1998_v31, %v1886_v27  ;;  %v2001_v37 = vadd.f32 %v2000_v35, %v1999_v32 }
 0x179   : > { %v1340_v38 = vadd.f32 %v1339_v23, %v1145_v36  ;;  %v1378_v39 = vmul.f32 %v1145_v36, %v1145_v36  ;;  %v1148_v40 = vadd.f32 %v2001_v37, %v1889_v34 }
 0x17b   : > { %v1409_v41 = vadd.f32 %v1408_v30, %v1378_v39  ;;  %v1761_v42 = vpack.c.bf16 %v1148_v40, %v1145_v36  ;;  %v1341_v43 = vadd.f32 %v1340_v38, %v1148_v40  ;;  %v1379_v44 = vmul.f32 %v1148_v40, %v1148_v40 }
 0x17d   : > { %1777 = vst [vmem:[%s2349_s10 + $0x78] sm:$0xff] %v1761_v42   ;;  %v1342_v45 = vrot.slane %v1341_v43, 4  ;;  %v1410_v46 = vadd.f32 %v1409_v41, %v1379_v44 }
 0x17f   : > { %v1343_v47 = vadd.f32 %v1342_v45, %v1341_v43  ;;  %v1411_v48 = vrot.slane %v1410_v46, 4 }
 0x181   : > { %v1344_v49 = vrot.slane %v1343_v47, 2  ;;  %v1412_v50 = vadd.f32 %v1411_v48, %v1410_v46 }
 0x183   : > { %v1345_v51 = vadd.f32 %v1344_v49, %v1343_v47  ;;  %v1413_v52 = vrot.slane %v1412_v50, 2 }
 0x185   : > { %v1346_v53 = vrot.slane %v1345_v51, 1  ;;  %v1414_v54 = vadd.f32 %v1413_v52, %v1412_v50 }
 0x187   : > { %v1415_v55 = vrot.slane %v1414_v54, 1  ;;  %v1347_v56 = vadd.f32 %v1346_v53, %v1345_v51 }
 0x189   : > { %v1416_v57 = vadd.f32 %v1415_v55, %v1414_v54 }
 0x18b   : > { %v1418_v58 = vsel %vm1417_vm0, %v1347_v56, %v1416_v57 }
 0x18c   : > { %v1420_v59 = vsel %vm1419_vm1, %v1418_v58, 0.0 }
 0x18d   : > { %1421 = vst [vmem:[%s187_s15] sm:$0xff] %v1420_v59 }
 0x18e PF: > { %s14_s12 = sadd.s32 1, %s2144_s12  }
 0x18f   : > { %p11_p5 = scmp.ge.s32.totalorder %s14_s12, 4  }
 0x191   :  { %13 = sbr.rel (!%p11_p5) target bundleno = 1 (0x1), region = 70 }

// kernel: generator_forward.14
= control target key start
LH: loop header
LB: loop body
LE: loop exit
PB: predicated region body
PF: predicated region fallthrough
CT: control target
= control target key end

     0   :  { %s851_s12 = smov 0   ;;  %s985_s0 = inlined_call_operand.vmem [shape: bf16[512,128], index: 0, kind: input, shape index: {}]   ;;  %s986_s1 = inlined_call_operand.vmem [shape: f32[1,128], index: 1, kind: input, shape index: {}]   ;;  %s987_s2 = inlined_call_operand.vmem [shape: f32[1,128], index: 2, kind: input, shape index: {}]   ;;  %s988_s3 = inlined_call_operand.vmem [shape: bf16[512,128], index: 3, kind: output, shape index: {}]  }
   0x1 LB: > { %s564_s13 = sadd.s32 4294967295, %s829_s12   ;;  %p568_p0 = scmp.ge.s32.totalorder %s829_s12, 1  ;;  %s829_s12 = sphi %s851_s12, %s13_s12  }
   0x2   : > { %p138_p1 = scmp.lt.s32.totalorder %s829_s12, 3 }
   0x4   : > { %p139_p2 = pnand %p568_p0, %p138_p1 }
   0x5   : > { %s569_s14 = sshll.u32 (!%p139_p2), %s564_s13, 5  ;;  %v872_v0 = vld [vmem:[%s986_s1] ss:$0 sm:$0xff] (!%p139_p2) }
   0x6   : > { %142 = sbr.rel (%p139_p2) target bundleno = 59 (0x3b), region = 32  ;;  %p163_p3 = scmp.lt.s32.totalorder (!%p139_p2), %s569_s14, 63  ;;  %v881_v9 = vld [vmem:[%s987_s2] ss:$0 sm:$0xff] (!%p139_p2) }
   0xd   : > { %s990_s14 = smov (!%p163_p3, %s569_s14), 63 }
   0xe   : > { %s570_s15 = sshll.u32 %s990_s14, 2 }
   0xf   : > { %s867_s18 = scalar_lea.vmem %s985_s0, %s570_s15  ;;  %s906_s25 = scalar_lea.vmem %s988_s3, %s570_s15 }
  0x10   : > { %v642_v1 = vld [vmem:[%s867_s18] sm:$0xff]   ;;  %v785_v2 = vld [vmem:[%s867_s18 + $0x8] sm:$0xff]   ;;  %v786_v3 = vld [vmem:[%s867_s18 + $0x10] sm:$0xff]  }
  0x11   : > { %v643_v4 = vunpack.c.l.bf16 %v642_v1  ;;  %v644_v5 = vunpack.c.h.bf16 %v642_v1  ;;  %v647_v6 = vunpack.c.l.bf16 %v785_v2  ;;  %v648_v7 = vunpack.c.h.bf16 %v785_v2  ;;  %v787_v8 = vld [vmem:[%s867_s18 + $0x18] sm:$0xff]   ;;  %v788_v30 = vld [vmem:[%s867_s18 + $0x20] sm:$0xff]   ;;  %v789_v35 = vld [vmem:[%s867_s18 + $0x28] sm:$0xff]  }
  0x12   : > { %v651_v10 = vunpack.c.l.bf16 %v786_v3  ;;  %v652_v11 = vunpack.c.h.bf16 %v786_v3  ;;  %v655_v12 = vunpack.c.l.bf16 %v787_v8  ;;  %v656_v13 = vunpack.c.h.bf16 %v787_v8  ;;  %v790_v40 = vld [vmem:[%s867_s18 + $0x30] sm:$0xff]   ;;  %v791_v45 = vld [vmem:[%s867_s18 + $0x38] sm:$0xff]   ;;  %v792_v3 = vld [vmem:[%s867_s18 + $0x40] sm:$0xff]  }
  0x13   : > { %v245_v14 = vmul.f32 %v643_v4, %v872_v0  ;;  %v246_v15 = vmul.f32 %v644_v5, %v872_v0  ;;  %v247_v16 = vmul.f32 %v647_v6, %v872_v0  ;;  %v248_v17 = vmul.f32 %v648_v7, %v872_v0 }
  0x14   : > { %v249_v18 = vmul.f32 %v651_v10, %v872_v0  ;;  %v250_v19 = vmul.f32 %v652_v11, %v872_v0  ;;  %v251_v20 = vmul.f32 %v655_v12, %v872_v0  ;;  %v252_v21 = vmul.f32 %v656_v13, %v872_v0  ;;  %v793_v13 = vld [vmem:[%s867_s18 + $0x48] sm:$0xff]  }
  0x15   : > { %v284_v22 = vadd.f32 %v881_v9, %v245_v14  ;;  %v285_v23 = vadd.f32 %v881_v9, %v246_v15  ;;  %v286_v24 = vadd.f32 %v881_v9, %v247_v16  ;;  %v287_v25 = vadd.f32 %v881_v9, %v248_v17 }
  0x16   : > { %v288_v26 = vadd.f32 %v881_v9, %v249_v18  ;;  %v289_v27 = vadd.f32 %v881_v9, %v250_v19  ;;  %v290_v28 = vadd.f32 %v881_v9, %v251_v20  ;;  %v291_v29 = vadd.f32 %v881_v9, %v252_v21  ;;  %v794_v18 = vld [vmem:[%s867_s18 + $0x50] sm:$0xff]  }
  0x17   : > { %v316_v31 = vmax.f32 %v284_v22, 0.0  ;;  %v317_v32 = vmax.f32 %v285_v23, 0.0  ;;  %v318_v33 = vmax.f32 %v286_v24, 0.0  ;;  %v319_v34 = vmax.f32 %v287_v25, 0.0  ;;  %v795_v23 = vld [vmem:[%s867_s18 + $0x58] sm:$0xff]  }
  0x18   : > { %v320_v36 = vmax.f32 %v288_v26, 0.0  ;;  %v321_v37 = vmax.f32 %v289_v27, 0.0  ;;  %v322_v38 = vmax.f32 %v290_v28, 0.0  ;;  %v323_v39 = vmax.f32 %v291_v29, 0.0 }
  0x19   : > { %v708_v41 = vpack.c.bf16 %v317_v32, %v316_v31  ;;  %v713_v42 = vpack.c.bf16 %v319_v34, %v318_v33  ;;  %v659_v43 = vunpack.c.l.bf16 %v788_v30  ;;  %v660_v44 = vunpack.c.h.bf16 %v788_v30 }
  0x1a   : > { %v718_v46 = vpack.c.bf16 %v321_v37, %v320_v36  ;;  %v723_v47 = vpack.c.bf16 %v323_v39, %v322_v38  ;;  %v663_v48 = vunpack.c.l.bf16 %v789_v35  ;;  %v664_v49 = vunpack.c.h.bf16 %v789_v35 }
  0x1b   : > { %709 = vst [vmem:[%s906_s25] sm:$0xff] %v708_v41   ;;  %800 = vst [vmem:[%s906_s25 + $0x8] sm:$0xff] %v713_v42   ;;  %v253_v50 = vmul.f32 %v659_v43, %v872_v0  ;;  %v254_v51 = vmul.f32 %v660_v44, %v872_v0  ;;  %v667_v52 = vunpack.c.l.bf16 %v790_v40  ;;  %v668_v53 = vunpack.c.h.bf16 %v790_v40  ;;  %v796_v40 = vld [vmem:[%s867_s18 + $0x60] sm:$0xff]  }
  0x1c   : > { %801 = vst [vmem:[%s906_s25 + $0x10] sm:$0xff] %v718_v46   ;;  %802 = vst [vmem:[%s906_s25 + $0x18] sm:$0xff] %v723_v47   ;;  %v255_v54 = vmul.f32 %v663_v48, %v872_v0  ;;  %v256_v55 = vmul.f32 %v664_v49, %v872_v0  ;;  %v671_v56 = vunpack.c.l.bf16 %v791_v45  ;;  %v672_v57 = vunpack.c.h.bf16 %v791_v45 }
  0x1d   : > { %v292_v58 = vadd.f32 %v881_v9, %v253_v50  ;;  %v293_v59 = vadd.f32 %v881_v9, %v254_v51  ;;  %v257_v60 = vmul.f32 %v667_v52, %v872_v0  ;;  %v258_v61 = vmul.f32 %v668_v53, %v872_v0  ;;  %v797_v53 = vld [vmem:[%s867_s18 + $0x68] sm:$0xff]  }
  0x1e   : > { %v294_v62 = vadd.f32 %v881_v9, %v255_v54  ;;  %v295_v63 = vadd.f32 %v881_v9, %v256_v55  ;;  %v259_v1 = vmul.f32 %v671_v56, %v872_v0  ;;  %v260_v2 = vmul.f32 %v672_v57, %v872_v0 }
  0x1f   : > { %v324_v4 = vmax.f32 %v292_v58, 0.0  ;;  %v325_v5 = vmax.f32 %v293_v59, 0.0  ;;  %v296_v6 = vadd.f32 %v881_v9, %v257_v60  ;;  %v297_v7 = vadd.f32 %v881_v9, %v258_v61  ;;  %v798_v58 = vld [vmem:[%s867_s18 + $0x70] sm:$0xff]  }
  0x20   : > { %v326_v8 = vmax.f32 %v294_v62, 0.0  ;;  %v327_v10 = vmax.f32 %v295_v63, 0.0  ;;  %v298_v11 = vadd.f32 %v881_v9, %v259_v1  ;;  %v299_v12 = vadd.f32 %v881_v9, %v260_v2  ;;  %v799_v63 = vld [vmem:[%s867_s18 + $0x78] sm:$0xff]  }
  0x21   : > { %v728_v14 = vpack.c.bf16 %v325_v5, %v324_v4  ;;  %v328_v15 = vmax.f32 %v296_v6, 0.0  ;;  %v329_v16 = vmax.f32 %v297_v7, 0.0  ;;  %v675_v17 = vunpack.c.l.bf16 %v792_v3 }
  0x22   : > { %v733_v19 = vpack.c.bf16 %v327_v10, %v326_v8  ;;  %v330_v20 = vmax.f32 %v298_v11, 0.0  ;;  %v331_v21 = vmax.f32 %v299_v12, 0.0  ;;  %v676_v22 = vunpack.c.h.bf16 %v792_v3 }
  0x23   : > { %803 = vst [vmem:[%s906_s25 + $0x20] sm:$0xff] %v728_v14   ;;  %v738_v24 = vpack.c.bf16 %v329_v16, %v328_v15  ;;  %v261_v25 = vmul.f32 %v675_v17, %v872_v0  ;;  %v679_v26 = vunpack.c.l.bf16 %v793_v13  ;;  %v680_v27 = vunpack.c.h.bf16 %v793_v13 }
  0x24   : > { %804 = vst [vmem:[%s906_s25 + $0x28] sm:$0xff] %v733_v19   ;;  %v743_v28 = vpack.c.bf16 %v331_v21, %v330_v20  ;;  %v262_v29 = vmul.f32 %v676_v22, %v872_v0  ;;  %v683_v30 = vunpack.c.l.bf16 %v794_v18  ;;  %v684_v31 = vunpack.c.h.bf16 %v794_v18 }
  0x25   : > { %805 = vst [vmem:[%s906_s25 + $0x30] sm:$0xff] %v738_v24   ;;  %v300_v32 = vadd.f32 %v881_v9, %v261_v25  ;;  %v263_v33 = vmul.f32 %v679_v26, %v872_v0  ;;  %v264_v34 = vmul.f32 %v680_v27, %v872_v0  ;;  %v687_v35 = vunpack.c.l.bf16 %v795_v23 }
  0x26   : > { %806 = vst [vmem:[%s906_s25 + $0x38] sm:$0xff] %v743_v28   ;;  %v301_v36 = vadd.f32 %v881_v9, %v262_v29  ;;  %v265_v37 = vmul.f32 %v683_v30, %v872_v0  ;;  %v266_v38 = vmul.f32 %v684_v31, %v872_v0  ;;  %v688_v39 = vunpack.c.h.bf16 %v795_v23 }
  0x27   : > { %v332_v41 = vmax.f32 %v300_v32, 0.0  ;;  %v302_v42 = vadd.f32 %v881_v9, %v263_v33  ;;  %v303_v43 = vadd.f32 %v881_v9, %v264_v34  ;;  %v267_v44 = vmul.f32 %v687_v35, %v872_v0 }
  0x28   : > { %v333_v45 = vmax.f32 %v301_v36, 0.0  ;;  %v304_v46 = vadd.f32 %v881_v9, %v265_v37  ;;  %v305_v47 = vadd.f32 %v881_v9, %v266_v38  ;;  %v268_v48 = vmul.f32 %v688_v39, %v872_v0 }
  0x29   : > { %v334_v49 = vmax.f32 %v302_v42, 0.0  ;;  %v335_v50 = vmax.f32 %v303_v43, 0.0  ;;  %v306_v51 = vadd.f32 %v881_v9, %v267_v44  ;;  %v691_v52 = vunpack.c.l.bf16 %v796_v40 }
  0x2a   : > { %v748_v54 = vpack.c.bf16 %v333_v45, %v332_v41  ;;  %v336_v55 = vmax.f32 %v304_v46, 0.0  ;;  %v337_v56 = vmax.f32 %v305_v47, 0.0  ;;  %v307_v57 = vadd.f32 %v881_v9, %v268_v48 }
  0x2b   : > { %v753_v59 = vpack.c.bf16 %v335_v50, %v334_v49  ;;  %v338_v60 = vmax.f32 %v306_v51, 0.0  ;;  %v692_v61 = vunpack.c.h.bf16 %v796_v40  ;;  %v269_v62 = vmul.f32 %v691_v52, %v872_v0 }
  0x2c   : > { %807 = vst [vmem:[%s906_s25 + $0x40] sm:$0xff] %v748_v54   ;;  %v758_v1 = vpack.c.bf16 %v337_v56, %v336_v55  ;;  %v339_v2 = vmax.f32 %v307_v57, 0.0  ;;  %v695_v3 = vunpack.c.l.bf16 %v797_v53  ;;  %v696_v4 = vunpack.c.h.bf16 %v797_v53 }
  0x2d   : > { %808 = vst [vmem:[%s906_s25 + $0x48] sm:$0xff] %v753_v59   ;;  %v270_v5 = vmul.f32 %v692_v61, %v872_v0  ;;  %v308_v6 = vadd.f32 %v881_v9, %v269_v62  ;;  %v699_v7 = vunpack.c.l.bf16 %v798_v58  ;;  %v700_v8 = vunpack.c.h.bf16 %v798_v58 }
  0x2e   : > { %809 = vst [vmem:[%s906_s25 + $0x50] sm:$0xff] %v758_v1   ;;  %v763_v10 = vpack.c.bf16 %v339_v2, %v338_v60  ;;  %v271_v11 = vmul.f32 %v695_v3, %v872_v0  ;;  %v272_v12 = vmul.f32 %v696_v4, %v872_v0  ;;  %v703_v13 = vunpack.c.l.bf16 %v799_v63 }
  0x2f   : > { %v309_v14 = vadd.f32 %v881_v9, %v270_v5  ;;  %v340_v15 = vmax.f32 %v308_v6, 0.0  ;;  %v273_v16 = vmul.f32 %v699_v7, %v872_v0  ;;  %v274_v17 = vmul.f32 %v700_v8, %v872_v0 }
  0x30   : > { %810 = vst [vmem:[%s906_s25 + $0x58] sm:$0xff] %v763_v10   ;;  %v310_v18 = vadd.f32 %v881_v9, %v271_v11  ;;  %v311_v19 = vadd.f32 %v881_v9, %v272_v12  ;;  %v704_v20 = vunpack.c.h.bf16 %v799_v63  ;;  %v275_v21 = vmul.f32 %v703_v13, %v872_v0 }
  0x31   : > { %v341_v22 = vmax.f32 %v309_v14, 0.0  ;;  %v312_v23 = vadd.f32 %v881_v9, %v273_v16  ;;  %v313_v24 = vadd.f32 %v881_v9, %v274_v17 }
  0x32   : > { %v342_v25 = vmax.f32 %v310_v18, 0.0  ;;  %v343_v26 = vmax.f32 %v311_v19, 0.0  ;;  %v276_v27 = vmul.f32 %v704_v20, %v872_v0  ;;  %v314_v28 = vadd.f32 %v881_v9, %v275_v21 }
  0x33   : > { %v768_v29 = vpack.c.bf16 %v341_v22, %v340_v15  ;;  %v344_v30 = vmax.f32 %v312_v23, 0.0  ;;  %v345_v31 = vmax.f32 %v313_v24, 0.0 }
  0x34   : > { %v773_v32 = vpack.c.bf16 %v343_v26, %v342_v25  ;;  %v315_v33 = vadd.f32 %v881_v9, %v276_v27  ;;  %v346_v34 = vmax.f32 %v314_v28, 0.0 }
  0x35   : > { %811 = vst [vmem:[%s906_s25 + $0x60] sm:$0xff] %v768_v29   ;;  %v778_v35 = vpack.c.bf16 %v345_v31, %v344_v30 }
  0x36   : > { %812 = vst [vmem:[%s906_s25 + $0x68] sm:$0xff] %v773_v32   ;;  %v347_v36 = vmax.f32 %v315_v33, 0.0 }
  0x37   : > { %813 = vst [vmem:[%s906_s25 + $0x70] sm:$0xff] %v778_v35  }
  0x38   : > { %v783_v37 = vpack.c.bf16 %v347_v36, %v346_v34 }
  0x3a   : > { %814 = vst [vmem:[%s906_s25 + $0x78] sm:$0xff] %v783_v37  }
  0x3b PF: > { %s13_s12 = sadd.s32 1, %s829_s12  }
  0x3c   : > { %p10_p4 = scmp.ge.s32.totalorder %s13_s12, 4  }
  0x3e   :  { %12 = sbr.rel (!%p10_p4) target bundleno = 1 (0x1), region = 62 }

// kernel: generator_forward.15
= control target key start
LH: loop header
LB: loop body
LE: loop exit
PB: predicated region body
PF: predicated region fallthrough
CT: control target
= control target key end

     0   :  { %s2199_s12 = smov 0   ;;  %s2600_s0 = inlined_call_operand.vmem [shape: bf16[2048,256], index: 0, kind: input, shape index: {}]   ;;  %s2601_s1 = inlined_call_operand.vmem [shape: bf16[256,128], index: 1, kind: input, shape index: {}]   ;;  %s2602_s2 = inlined_call_operand.vmem [shape: bf16[2048,128], index: 2, kind: output, shape index: {0}]   ;;  %s2603_s3 = inlined_call_operand.vmem [shape: f32[4,8,128], index: 3, kind: output, shape index: {1}]  }
   0x1 LB: > { %s2205_s13 = sadd.s32 4294967295, %s2176_s12   ;;  %p1608_p0 = scmp.ge.s32.totalorder %s2176_s12, 1  ;;  %s2176_s12 = sphi %s2199_s12, %s14_s12  }
   0x2   : > { %p142_p1 = scmp.lt.s32.totalorder %s2176_s12, 5 }
   0x4   : > { %p143_p2 = pnand %p1608_p0, %p142_p1 }
   0x5   : > { %v2058_v0 = vld [vmem:[%s2601_s1] sm:$0xff] (!%p143_p2)   ;;  %v2178_v1 = vmov (!%p143_p2), 0   ;;  %s1609_s16 = sshll.u32 (!%p143_p2), %s2205_s13, 6  ;;  %v2059_v2 = vld [vmem:[%s2601_s1 + $0x8] sm:$0xff] (!%p143_p2)   ;;  %v2060_v3 = vld [vmem:[%s2601_s1 + $0x10] sm:$0xff] (!%p143_p2)   ;;  %p184_p4 = scmp.lt.s32.totalorder (!%p143_p2), %s2205_s13, 3 }
   0x6   : > { %146 = sbr.rel (%p143_p2) target bundleno = 487 (0x1e7), region = 28  ;;  %701 = vmatprep.subr.bf16.mxu0 (!%p143_p2), %v2178_v1  ;;  %2017 = vmatprep.subr.bf16.mxu1 (!%p143_p2), %v2178_v1  ;;  %p172_p3 = scmp.lt.s32.totalorder (!%p143_p2), %s1609_s16, 255  ;;  %v2061_v4 = vld [vmem:[%s2601_s1 + $0x18] sm:$0xff] (!%p143_p2)   ;;  %v2062_v5 = vld [vmem:[%s2601_s1 + $0x20] sm:$0xff] (!%p143_p2)   ;;  %v2063_v7 = vld [vmem:[%s2601_s1 + $0x28] sm:$0xff] (!%p143_p2)   ;;  %vm1512_vm0 = vcmask (!%p143_p2), 1040384  }
   0x7   : > { %702 = vmatpush1.bf16.msra.mxu0 (!%p143_p2), %v2058_v0  ;;  %2033 = vmatpush1.bf16.msra.mxu1 (!%p143_p2), %v2058_v0  ;;  %v2064_v8 = vld [vmem:[%s2601_s1 + $0x30] sm:$0xff] (!%p143_p2)   ;;  %v2065_v9 = vld [vmem:[%s2601_s1 + $0x38] sm:$0xff] (!%p143_p2)   ;;  %v2066_v11 = vld [vmem:[%s2601_s1 + $0x40] sm:$0xff] (!%p143_p2)   ;;  %vm1514_vm1 = vcmask (!%p143_p2), 1041408  }
   0x8   : > { %703 = vmatprep.subr.bf16.mxu0 (!%p143_p2), %v2178_v1  ;;  %2018 = vmatprep.subr.bf16.mxu1 (!%p143_p2), %v2178_v1  ;;  %v2067_v12 = vld [vmem:[%s2601_s1 + $0x48] sm:$0xff] (!%p143_p2)   ;;  %v2068_v13 = vld [vmem:[%s2601_s1 + $0x50] sm:$0xff] (!%p143_p2)   ;;  %v2069_v14 = vld [vmem:[%s2601_s1 + $0x58] sm:$0xff] (!%p143_p2)  }
   0x9   : > { %v2070_v15 = vld [vmem:[%s2601_s1 + $0x60] sm:$0xff] (!%p143_p2)   ;;  %v2071_v16 = vld [vmem:[%s2601_s1 + $0x68] sm:$0xff] (!%p143_p2)   ;;  %v2072_v17 = vld [vmem:[%s2601_s1 + $0x70] sm:$0xff] (!%p143_p2)  }
   0xa   : > { %v2073_v18 = vld [vmem:[%s2601_s1 + $0x78] sm:$0xff] (!%p143_p2)  }
   0xb   : > { %704 = vmatpush1.bf16.msra.mxu0 (!%p143_p2), %v2059_v2  ;;  %2034 = vmatpush1.bf16.msra.mxu1 (!%p143_p2), %v2059_v2 }
   0xc   : > { %705 = vmatprep.subr.bf16.mxu0 (!%p143_p2), %v2178_v1  ;;  %2019 = vmatprep.subr.bf16.mxu1 (!%p143_p2), %v2178_v1 }
   0xd   : > { %s2605_s16 = smov (!%p172_p3, %s1609_s16), 255  ;;  %s2607_s13 = smov (!%p184_p4, %s2205_s13), 3 }
   0xe   : > { %s1761_s23 = sshll.u32 %s2605_s16, 3  ;;  %s1613_s27 = sshll.u32 %s2605_s16, 2 }
   0xf   : > { %706 = vmatpush1.bf16.msra.mxu0 %v2060_v3  ;;  %2035 = vmatpush1.bf16.msra.mxu1 %v2060_v3  ;;  %s2239_s28 = scalar_lea.vmem %s2600_s0, %s1761_s23  ;;  %s2368_s4 = scalar_lea.vmem %s2602_s2, %s1613_s27 }
  0x10   : > { %707 = vmatprep.subr.bf16.mxu0 %v2178_v1  ;;  %2020 = vmatprep.subr.bf16.mxu1 %v2178_v1  ;;  %v2076_v6 = vld [vmem:[%s2239_s28 + $0x4] ss:$8 sps:$4 sm:$0xff]   ;;  %v2074_v19 = vld [vmem:[%s2239_s28] ss:$8 sps:$4 sm:$0xff]   ;;  %v2077_v21 = vld [vmem:[%s2239_s28 + $0x14] ss:$8 sps:$4 sm:$0xff]  }
  0x11   : > { %733 = vmatprep.mubr.bf16.mxu0 %v2076_v6  ;;  %v2100_v10 = vld [vmem:[%s2239_s28 + $0x104] ss:$8 sps:$4 sm:$0xff]   ;;  %v2098_v20 = vld [vmem:[%s2239_s28 + $0x100] ss:$8 sps:$4 sm:$0xff]   ;;  %v2104_v22 = vld [vmem:[%s2239_s28 + $0x114] ss:$8 sps:$4 sm:$0xff]  }
  0x12   : > { %861 = vmatprep.mubr.bf16.mxu1 %v2100_v10  ;;  %v2079_v23 = vld [vmem:[%s2239_s28 + $0x10] ss:$8 sps:$4 sm:$0xff]   ;;  %v2080_v25 = vld [vmem:[%s2239_s28 + $0x24] ss:$8 sps:$4 sm:$0xff]   ;;  %v2082_v27 = vld [vmem:[%s2239_s28 + $0x20] ss:$8 sps:$4 sm:$0xff]  }
  0x13   : > { %708 = vmatpush1.bf16.msra.mxu0 %v2061_v4  ;;  %2036 = vmatpush1.bf16.msra.mxu1 %v2061_v4  ;;  %v2106_v24 = vld [vmem:[%s2239_s28 + $0x110] ss:$8 sps:$4 sm:$0xff]   ;;  %v2110_v26 = vld [vmem:[%s2239_s28 + $0x124] ss:$8 sps:$4 sm:$0xff]   ;;  %v2112_v28 = vld [vmem:[%s2239_s28 + $0x120] ss:$8 sps:$4 sm:$0xff]  }
  0x14   : > { %709 = vmatprep.subr.bf16.mxu0 %v2178_v1  ;;  %2021 = vmatprep.subr.bf16.mxu1 %v2178_v1  ;;  %v2083_v29 = vld [vmem:[%s2239_s28 + $0x34] ss:$8 sps:$4 sm:$0xff]   ;;  %v2085_v31 = vld [vmem:[%s2239_s28 + $0x30] ss:$8 sps:$4 sm:$0xff]   ;;  %v2086_v33 = vld [vmem:[%s2239_s28 + $0x44] ss:$8 sps:$4 sm:$0xff]  }
  0x15   : > { %v2116_v30 = vld [vmem:[%s2239_s28 + $0x134] ss:$8 sps:$4 sm:$0xff]   ;;  %v2118_v32 = vld [vmem:[%s2239_s28 + $0x130] ss:$8 sps:$4 sm:$0xff]   ;;  %v2122_v34 = vld [vmem:[%s2239_s28 + $0x144] ss:$8 sps:$4 sm:$0xff]  }
  0x16   : > { %v2088_v35 = vld [vmem:[%s2239_s28 + $0x40] ss:$8 sps:$4 sm:$0xff]   ;;  %v2089_v37 = vld [vmem:[%s2239_s28 + $0x54] ss:$8 sps:$4 sm:$0xff]   ;;  %v2091_v39 = vld [vmem:[%s2239_s28 + $0x50] ss:$8 sps:$4 sm:$0xff]  }
  0x17   : > { %710 = vmatpush1.bf16.msra.mxu0 %v2062_v5  ;;  %2037 = vmatpush1.bf16.msra.mxu1 %v2062_v5  ;;  %v2124_v36 = vld [vmem:[%s2239_s28 + $0x140] ss:$8 sps:$4 sm:$0xff]   ;;  %v2128_v38 = vld [vmem:[%s2239_s28 + $0x154] ss:$8 sps:$4 sm:$0xff]   ;;  %v2130_v40 = vld [vmem:[%s2239_s28 + $0x150] ss:$8 sps:$4 sm:$0xff]  }
  0x18   : > { %711 = vmatprep.subr.bf16.mxu0 %v2178_v1  ;;  %2022 = vmatprep.subr.bf16.mxu1 %v2178_v1  ;;  %v2092_v41 = vld [vmem:[%s2239_s28 + $0x64] ss:$8 sps:$4 sm:$0xff]   ;;  %v2094_v43 = vld [vmem:[%s2239_s28 + $0x60] ss:$8 sps:$4 sm:$0xff]   ;;  %v2095_v45 = vld [vmem:[%s2239_s28 + $0x74] ss:$8 sps:$4 sm:$0xff]  }
  0x19   : > { %v2134_v42 = vld [vmem:[%s2239_s28 + $0x164] ss:$8 sps:$4 sm:$0xff]   ;;  %v2136_v44 = vld [vmem:[%s2239_s28 + $0x160] ss:$8 sps:$4 sm:$0xff]   ;;  %v2140_v46 = vld [vmem:[%s2239_s28 + $0x174] ss:$8 sps:$4 sm:$0xff]  }
  0x1a   : > { %v2097_v47 = vld [vmem:[%s2239_s28 + $0x70] ss:$8 sps:$4 sm:$0xff]   ;;  %v2101_v49 = vld [vmem:[%s2239_s28 + $0x84] ss:$8 sps:$4 sm:$0xff]   ;;  %v2103_v51 = vld [vmem:[%s2239_s28 + $0x80] ss:$8 sps:$4 sm:$0xff]  }
  0x1b   : > { %712 = vmatpush1.bf16.msra.mxu0 %v2063_v7  ;;  %2038 = vmatpush1.bf16.msra.mxu1 %v2063_v7  ;;  %v2142_v48 = vld [vmem:[%s2239_s28 + $0x170] ss:$8 sps:$4 sm:$0xff]   ;;  %v2146_v50 = vld [vmem:[%s2239_s28 + $0x184] ss:$8 sps:$4 sm:$0xff]   ;;  %v2148_v52 = vld [vmem:[%s2239_s28 + $0x180] ss:$8 sps:$4 sm:$0xff]  }
  0x1c   : > { %713 = vmatprep.subr.bf16.mxu0 %v2178_v1  ;;  %2023 = vmatprep.subr.bf16.mxu1 %v2178_v1  ;;  %v2107_v53 = vld [vmem:[%s2239_s28 + $0x94] ss:$8 sps:$4 sm:$0xff]   ;;  %v2109_v55 = vld [vmem:[%s2239_s28 + $0x90] ss:$8 sps:$4 sm:$0xff]   ;;  %v2113_v57 = vld [vmem:[%s2239_s28 + $0xa4] ss:$8 sps:$4 sm:$0xff]  }
  0x1d   : > { %v2149_v54 = vld [vmem:[%s2239_s28 + $0x194] ss:$8 sps:$4 sm:$0xff]   ;;  %v2151_v56 = vld [vmem:[%s2239_s28 + $0x190] ss:$8 sps:$4 sm:$0xff]   ;;  %v2152_v58 = vld [vmem:[%s2239_s28 + $0x1a4] ss:$8 sps:$4 sm:$0xff]  }
  0x1e   : > { %v2115_v59 = vld [vmem:[%s2239_s28 + $0xa0] ss:$8 sps:$4 sm:$0xff]   ;;  %v2119_v61 = vld [vmem:[%s2239_s28 + $0xb4] ss:$8 sps:$4 sm:$0xff]   ;;  %v2121_v63 = vld [vmem:[%s2239_s28 + $0xb0] ss:$8 sps:$4 sm:$0xff]  }
  0x1f   : > { %714 = vmatpush1.bf16.msra.mxu0 %v2064_v8  ;;  %2039 = vmatpush1.bf16.msra.mxu1 %v2064_v8  ;;  %v2154_v60 = vld [vmem:[%s2239_s28 + $0x1a0] ss:$8 sps:$4 sm:$0xff]   ;;  %v2155_v62 = vld [vmem:[%s2239_s28 + $0x1b4] ss:$8 sps:$4 sm:$0xff]   ;;  %v2157_v0 = vld [vmem:[%s2239_s28 + $0x1b0] ss:$8 sps:$4 sm:$0xff]  }
  0x20   : > { %715 = vmatprep.subr.bf16.mxu0 %v2178_v1  ;;  %2024 = vmatprep.subr.bf16.mxu1 %v2178_v1  ;;  %v2158_v2 = vld [vmem:[%s2239_s28 + $0x1c4] ss:$8 sps:$4 sm:$0xff]   ;;  %v2127_v3 = vld [vmem:[%s2239_s28 + $0xc0] ss:$8 sps:$4 sm:$0xff]   ;;  %v2131_v5 = vld [vmem:[%s2239_s28 + $0xd4] ss:$8 sps:$4 sm:$0xff]  }
  0x21   : > { %v2160_v4 = vld [vmem:[%s2239_s28 + $0x1c0] ss:$8 sps:$4 sm:$0xff]   ;;  %v2161_v6 = vld [vmem:[%s2239_s28 + $0x1d4] ss:$8 sps:$4 sm:$0xff]   ;;  %v2133_v7 = vld [vmem:[%s2239_s28 + $0xd0] ss:$8 sps:$4 sm:$0xff]  }
  0x22   : > { %v2163_v8 = vld [vmem:[%s2239_s28 + $0x1d0] ss:$8 sps:$4 sm:$0xff]   ;;  %v2164_v10 = vld [vmem:[%s2239_s28 + $0x1e4] ss:$8 sps:$4 sm:$0xff]   ;;  %s1614_s16 = sshll.u32 %s2607_s13, 3 }
  0x23   : > { %716 = vmatpush1.bf16.msra.mxu0 %v2065_v9  ;;  %2040 = vmatpush1.bf16.msra.mxu1 %v2065_v9  ;;  %v2137_v9 = vld [vmem:[%s2239_s28 + $0xe4] ss:$8 sps:$4 sm:$0xff]   ;;  %s187_s6 = scalar_lea.vmem %s2603_s3, %s1614_s16 }
  0x24   : > { %717 = vmatprep.subr.bf16.mxu0 %v2178_v1  ;;  %2025 = vmatprep.subr.bf16.mxu1 %v2178_v1 }
  0x27   : > { %718 = vmatpush1.bf16.msra.mxu0 %v2066_v11  ;;  %2041 = vmatpush1.bf16.msra.mxu1 %v2066_v11  ;;  %v2139_v11 = vld [vmem:[%s2239_s28 + $0xe0] ss:$8 sps:$4 sm:$0xff]  }
  0x28   : > { %719 = vmatprep.subr.bf16.mxu0 %v2178_v1  ;;  %2026 = vmatprep.subr.bf16.mxu1 %v2178_v1 }
  0x2b   : > { %720 = vmatpush1.bf16.msra.mxu0 %v2067_v12  ;;  %2042 = vmatpush1.bf16.msra.mxu1 %v2067_v12  ;;  %v2166_v12 = vld [vmem:[%s2239_s28 + $0x1e0] ss:$8 sps:$4 sm:$0xff]  }
  0x2c   : > { %721 = vmatprep.subr.bf16.mxu0 %v2178_v1  ;;  %2027 = vmatprep.subr.bf16.mxu1 %v2178_v1 }
  0x2f   : > { %722 = vmatpush1.bf16.msra.mxu0 %v2068_v13  ;;  %2043 = vmatpush1.bf16.msra.mxu1 %v2068_v13  ;;  %v2143_v13 = vld [vmem:[%s2239_s28 + $0xf4] ss:$8 sps:$4 sm:$0xff]  }
  0x30   : > { %723 = vmatprep.subr.bf16.mxu0 %v2178_v1  ;;  %2028 = vmatprep.subr.bf16.mxu1 %v2178_v1 }
  0x33   : > { %724 = vmatpush1.bf16.msra.mxu0 %v2069_v14  ;;  %2044 = vmatpush1.bf16.msra.mxu1 %v2069_v14  ;;  %v2167_v14 = vld [vmem:[%s2239_s28 + $0x1f4] ss:$8 sps:$4 sm:$0xff]  }
  0x34   : > { %725 = vmatprep.subr.bf16.mxu0 %v2178_v1  ;;  %2029 = vmatprep.subr.bf16.mxu1 %v2178_v1 }
  0x37   : > { %726 = vmatpush1.bf16.msra.mxu0 %v2070_v15  ;;  %2045 = vmatpush1.bf16.msra.mxu1 %v2070_v15  ;;  %v2145_v15 = vld [vmem:[%s2239_s28 + $0xf0] ss:$8 sps:$4 sm:$0xff]  }
  0x38   : > { %727 = vmatprep.subr.bf16.mxu0 %v2178_v1  ;;  %2030 = vmatprep.subr.bf16.mxu1 %v2178_v1 }
  0x3b   : > { %728 = vmatpush1.bf16.msra.mxu0 %v2071_v16  ;;  %2046 = vmatpush1.bf16.msra.mxu1 %v2071_v16  ;;  %v2169_v16 = vld [vmem:[%s2239_s28 + $0x1f0] ss:$8 sps:$4 sm:$0xff]  }
  0x3c   : > { %729 = vmatprep.subr.bf16.mxu0 %v2178_v1  ;;  %2031 = vmatprep.subr.bf16.mxu1 %v2178_v1 }
  0x3f   : > { %730 = vmatpush1.bf16.msra.mxu0 %v2072_v17  ;;  %2047 = vmatpush1.bf16.msra.mxu1 %v2072_v17 }
  0x40   : > { %731 = vmatprep.subr.bf16.mxu0 %v2178_v1  ;;  %2032 = vmatprep.subr.bf16.mxu1 %v2178_v1  ;;  %v2125_v1 = vld [vmem:[%s2239_s28 + $0xc4] ss:$8 sps:$4 sm:$0xff]  }
  0x43   : > { %732 = vmatpush1.bf16.msra.mxu0 %v2073_v18  ;;  %2048 = vmatpush1.bf16.msra.mxu1 %v2073_v18 }
  0x46   : > { %734 = vmatmul.mubr.bf16.vlgmr.msra.gmra.mrb[0].mxu0 %v2074_v19  ;;  %862 = vmatmul.mubr.bf16.vlgmr.msra.gmra.mrb[0].mxu1 %v2098_v20 }
  0x47   : > { %741 = vmatprep.mubr.bf16.mxu0 %v2077_v21  ;;  %869 = vmatprep.mubr.bf16.mxu1 %v2104_v22 }
  0x4e   : > { %742 = vmatmul.mubr.bf16.gmra.mrb[4].mxu0 %v2079_v23  ;;  %870 = vmatmul.mubr.bf16.gmra.mrb[4].mxu1 %v2106_v24 }
  0x4f   : > { %749 = vmatprep.mubr.bf16.mxu0 %v2080_v25  ;;  %877 = vmatprep.mubr.bf16.mxu1 %v2110_v26 }
  0x56   : > { %750 = vmatmul.mubr.bf16.gmra.mrb[8].mxu0 %v2082_v27  ;;  %878 = vmatmul.mubr.bf16.gmra.mrb[8].mxu1 %v2112_v28 }
  0x57   : > { %757 = vmatprep.mubr.bf16.mxu0 %v2083_v29  ;;  %885 = vmatprep.mubr.bf16.mxu1 %v2116_v30 }
  0x5e   : > { %758 = vmatmul.mubr.bf16.gmra.mrb[12].mxu0 %v2085_v31  ;;  %886 = vmatmul.mubr.bf16.gmra.mrb[12].mxu1 %v2118_v32 }
  0x5f   : > { %765 = vmatprep.mubr.bf16.mxu0 %v2086_v33  ;;  %893 = vmatprep.mubr.bf16.mxu1 %v2122_v34 }
  0x66   : > { %766 = vmatmul.mubr.bf16.gmra.mrb[16].mxu0 %v2088_v35  ;;  %894 = vmatmul.mubr.bf16.gmra.mrb[16].mxu1 %v2124_v36 }
  0x67   : > { %773 = vmatprep.mubr.bf16.mxu0 %v2089_v37  ;;  %901 = vmatprep.mubr.bf16.mxu1 %v2128_v38 }
  0x6e   : > { %774 = vmatmul.mubr.bf16.gmra.mrb[20].mxu0 %v2091_v39  ;;  %902 = vmatmul.mubr.bf16.gmra.mrb[20].mxu1 %v2130_v40 }
  0x6f   : > { %781 = vmatprep.mubr.bf16.mxu0 %v2092_v41  ;;  %909 = vmatprep.mubr.bf16.mxu1 %v2134_v42 }
  0x76   : > { %782 = vmatmul.mubr.bf16.gmra.mrb[24].mxu0 %v2094_v43  ;;  %910 = vmatmul.mubr.bf16.gmra.mrb[24].mxu1 %v2136_v44 }
  0x77   : > { %789 = vmatprep.mubr.bf16.mxu0 %v2095_v45  ;;  %917 = vmatprep.mubr.bf16.mxu1 %v2140_v46 }
  0x7e   : > { %790 = vmatmul.mubr.bf16.gmra.mrb[28].mxu0 %v2097_v47  ;;  %918 = vmatmul.mubr.bf16.gmra.mrb[28].mxu1 %v2142_v48 }
  0x7f   : > { %797 = vmatprep.mubr.bf16.mxu0 %v2101_v49  ;;  %925 = vmatprep.mubr.bf16.mxu1 %v2146_v50 }
  0x86   : > { %798 = vmatmul.mubr.bf16.gmra.mrb[32].mxu0 %v2103_v51  ;;  %926 = vmatmul.mubr.bf16.gmra.mrb[32].mxu1 %v2148_v52 }
  0x87   : > { %805 = vmatprep.mubr.bf16.mxu0 %v2107_v53  ;;  %933 = vmatprep.mubr.bf16.mxu1 %v2149_v54 }
  0x8e   : > { %806 = vmatmul.mubr.bf16.gmra.mrb[36].mxu0 %v2109_v55  ;;  %934 = vmatmul.mubr.bf16.gmra.mrb[36].mxu1 %v2151_v56 }
  0x8f   : > { %813 = vmatprep.mubr.bf16.mxu0 %v2113_v57  ;;  %941 = vmatprep.mubr.bf16.mxu1 %v2152_v58 }
  0x96   : > { %814 = vmatmul.mubr.bf16.gmra.mrb[40].mxu0 %v2115_v59  ;;  %942 = vmatmul.mubr.bf16.gmra.mrb[40].mxu1 %v2154_v60 }
  0x97   : > { %821 = vmatprep.mubr.bf16.mxu0 %v2119_v61  ;;  %949 = vmatprep.mubr.bf16.mxu1 %v2155_v62 }
  0x9e   : > { %822 = vmatmul.mubr.bf16.gmra.mrb[44].mxu0 %v2121_v63  ;;  %950 = vmatmul.mubr.bf16.gmra.mrb[44].mxu1 %v2157_v0 }
  0x9f   : > { %829 = vmatprep.mubr.bf16.mxu0 %v2125_v1  ;;  %957 = vmatprep.mubr.bf16.mxu1 %v2158_v2 }
  0xa6   : > { %830 = vmatmul.mubr.bf16.gmra.mrb[48].mxu0 %v2127_v3  ;;  %958 = vmatmul.mubr.bf16.gmra.mrb[48].mxu1 %v2160_v4 }
  0xa7   : > { %837 = vmatprep.mubr.bf16.mxu0 %v2131_v5  ;;  %965 = vmatprep.mubr.bf16.mxu1 %v2161_v6 }
  0xae   : > { %838 = vmatmul.mubr.bf16.gmra.mrb[52].mxu0 %v2133_v7  ;;  %966 = vmatmul.mubr.bf16.gmra.mrb[52].mxu1 %v2163_v8 }
  0xaf   : > { %845 = vmatprep.mubr.bf16.mxu0 %v2137_v9  ;;  %973 = vmatprep.mubr.bf16.mxu1 %v2164_v10 }
  0xb6   : > { %846 = vmatmul.mubr.bf16.gmra.mrb[56].mxu0 %v2139_v11  ;;  %974 = vmatmul.mubr.bf16.gmra.mrb[56].mxu1 %v2166_v12 }
  0xb7   : > { %853 = vmatprep.mubr.bf16.mxu0 %v2143_v13  ;;  %981 = vmatprep.mubr.bf16.mxu1 %v2167_v14 }
  0xbe   : > { %854 = vmatmul.mubr.bf16.gmra.mrb[60].mxu0 %v2145_v15  ;;  %982 = vmatmul.mubr.bf16.gmra.mrb[60].mxu1 %v2169_v16 }
 0x119   : > { %v735_v17 = vpop.f32.mrb[0].mxu0  ;;  %v2363_v18 = vpop.f32.mrb[0].mxu1 }
 0x11a   : > { %v737_v19 = vpop.f32.mrb[1].mxu0  ;;  %v865_v20 = vpop.f32.mrb[1].mxu1  ;;  %v1379_v21 = vmul.f32 %v735_v17, %v735_v17 }
 0x11b   : > { %v738_v22 = vpop.f32.mrb[2].mxu0  ;;  %v2370_v23 = vpop.f32.mrb[2].mxu1 }
 0x11c   : > { %v1829_v24 = vpack.c.bf16 %v738_v22, %v735_v17  ;;  %v1310_v25 = vadd.f32 %v738_v22, %v735_v17  ;;  %v1380_v26 = vmul.f32 %v738_v22, %v738_v22  ;;  %v740_v27 = vpop.f32.mrb[3].mxu0  ;;  %v1909_v28 = vpack.c.bf16 %v2370_v23, %v2363_v18  ;;  %v868_v29 = vpop.f32.mrb[3].mxu1 }
 0x11e   : > { %1830 = vst [vmem:[%s2368_s4] sm:$0xff] %v1829_v24   ;;  %v1443_v30 = vadd.f32 %v1380_v26, %v1379_v21  ;;  %2001 = vst [vmem:[%s2368_s4 + $0x80] sm:$0xff] %v1909_v28  }
 0x121   : > { %v743_v31 = vpop.f32.mrb[4].mxu0  ;;  %v2376_v32 = vpop.f32.mrb[4].mxu1 }
 0x122   : > { %v1311_v33 = vadd.f32 %v1310_v25, %v743_v31  ;;  %v1381_v34 = vmul.f32 %v743_v31, %v743_v31  ;;  %v745_v35 = vpop.f32.mrb[5].mxu0  ;;  %v873_v36 = vpop.f32.mrb[5].mxu1 }
 0x123   : > { %v746_v37 = vpop.f32.mrb[6].mxu0  ;;  %v2378_v38 = vpop.f32.mrb[6].mxu1 }
 0x124   : > { %v1444_v39 = vadd.f32 %v1443_v30, %v1381_v34  ;;  %v1834_v40 = vpack.c.bf16 %v746_v37, %v743_v31  ;;  %v1312_v41 = vadd.f32 %v1311_v33, %v746_v37  ;;  %v1382_v42 = vmul.f32 %v746_v37, %v746_v37  ;;  %v748_v43 = vpop.f32.mrb[7].mxu0  ;;  %v876_v44 = vpop.f32.mrb[7].mxu1 }
 0x125   : > { %v1914_v45 = vpack.c.bf16 %v2378_v38, %v2376_v32 }
 0x126   : > { %1986 = vst [vmem:[%s2368_s4 + $0x8] sm:$0xff] %v1834_v40   ;;  %v1445_v46 = vadd.f32 %v1444_v39, %v1382_v42 }
 0x127   : > { %2002 = vst [vmem:[%s2368_s4 + $0x88] sm:$0xff] %v1914_v45  }
 0x129   : > { %v751_v47 = vpop.f32.mrb[8].mxu0  ;;  %v2384_v48 = vpop.f32.mrb[8].mxu1 }
 0x12a   : > { %v1313_v49 = vadd.f32 %v1312_v41, %v751_v47  ;;  %v1383_v50 = vmul.f32 %v751_v47, %v751_v47  ;;  %v753_v51 = vpop.f32.mrb[9].mxu0  ;;  %v881_v52 = vpop.f32.mrb[9].mxu1 }
 0x12b   : > { %v754_v53 = vpop.f32.mrb[10].mxu0  ;;  %v2386_v54 = vpop.f32.mrb[10].mxu1 }
 0x12c   : > { %v1446_v55 = vadd.f32 %v1445_v46, %v1383_v50  ;;  %v1839_v56 = vpack.c.bf16 %v754_v53, %v751_v47  ;;  %v1314_v57 = vadd.f32 %v1313_v49, %v754_v53  ;;  %v1384_v58 = vmul.f32 %v754_v53, %v754_v53  ;;  %v756_v59 = vpop.f32.mrb[11].mxu0  ;;  %v884_v60 = vpop.f32.mrb[11].mxu1 }
 0x12d   : > { %v1919_v61 = vpack.c.bf16 %v2386_v54, %v2384_v48 }
 0x12e   : > { %1987 = vst [vmem:[%s2368_s4 + $0x10] sm:$0xff] %v1839_v56   ;;  %v1447_v62 = vadd.f32 %v1446_v55, %v1384_v58 }
 0x12f   : > { %2003 = vst [vmem:[%s2368_s4 + $0x90] sm:$0xff] %v1919_v61  }
 0x131   : > { %v759_v63 = vpop.f32.mrb[12].mxu0  ;;  %v2392_v0 = vpop.f32.mrb[12].mxu1 }
 0x132   : > { %v1315_v1 = vadd.f32 %v1314_v57, %v759_v63  ;;  %v1385_v2 = vmul.f32 %v759_v63, %v759_v63  ;;  %v761_v3 = vpop.f32.mrb[13].mxu0  ;;  %v889_v4 = vpop.f32.mrb[13].mxu1 }
 0x133   : > { %v762_v5 = vpop.f32.mrb[14].mxu0  ;;  %v2394_v6 = vpop.f32.mrb[14].mxu1 }
 0x134   : > { %v1448_v7 = vadd.f32 %v1447_v62, %v1385_v2  ;;  %v1844_v8 = vpack.c.bf16 %v762_v5, %v759_v63  ;;  %v1316_v9 = vadd.f32 %v1315_v1, %v762_v5  ;;  %v1386_v10 = vmul.f32 %v762_v5, %v762_v5  ;;  %v764_v11 = vpop.f32.mrb[15].mxu0  ;;  %v892_v12 = vpop.f32.mrb[15].mxu1 }
 0x135   : > { %v1924_v13 = vpack.c.bf16 %v2394_v6, %v2392_v0 }
 0x136   : > { %1988 = vst [vmem:[%s2368_s4 + $0x18] sm:$0xff] %v1844_v8   ;;  %v1449_v14 = vadd.f32 %v1448_v7, %v1386_v10 }
 0x137   : > { %2004 = vst [vmem:[%s2368_s4 + $0x98] sm:$0xff] %v1924_v13  }
 0x139   : > { %v767_v15 = vpop.f32.mrb[16].mxu0  ;;  %v2400_v16 = vpop.f32.mrb[16].mxu1 }
 0x13a   : > { %v1317_v17 = vadd.f32 %v1316_v9, %v767_v15  ;;  %v1387_v19 = vmul.f32 %v767_v15, %v767_v15  ;;  %v769_v20 = vpop.f32.mrb[17].mxu0  ;;  %v897_v21 = vpop.f32.mrb[17].mxu1 }
 0x13b   : > { %v770_v22 = vpop.f32.mrb[18].mxu0  ;;  %v2402_v24 = vpop.f32.mrb[18].mxu1 }
 0x13c   : > { %v1450_v25 = vadd.f32 %v1449_v14, %v1387_v19  ;;  %v1849_v26 = vpack.c.bf16 %v770_v22, %v767_v15  ;;  %v1318_v27 = vadd.f32 %v1317_v17, %v770_v22  ;;  %v1388_v28 = vmul.f32 %v770_v22, %v770_v22  ;;  %v772_v29 = vpop.f32.mrb[19].mxu0  ;;  %v900_v30 = vpop.f32.mrb[19].mxu1 }
 0x13d   : > { %v1929_v31 = vpack.c.bf16 %v2402_v24, %v2400_v16 }
 0x13e   : > { %1989 = vst [vmem:[%s2368_s4 + $0x20] sm:$0xff] %v1849_v26   ;;  %v1451_v33 = vadd.f32 %v1450_v25, %v1388_v28 }
 0x13f   : > { %2005 = vst [vmem:[%s2368_s4 + $0xa0] sm:$0xff] %v1929_v31  }
 0x141   : > { %v775_v34 = vpop.f32.mrb[20].mxu0  ;;  %v2408_v35 = vpop.f32.mrb[20].mxu1 }
 0x142   : > { %v1319_v36 = vadd.f32 %v1318_v27, %v775_v34  ;;  %v1389_v37 = vmul.f32 %v775_v34, %v775_v34  ;;  %v777_v39 = vpop.f32.mrb[21].mxu0  ;;  %v905_v40 = vpop.f32.mrb[21].mxu1 }
 0x143   : > { %v778_v41 = vpop.f32.mrb[22].mxu0  ;;  %v2410_v42 = vpop.f32.mrb[22].mxu1 }
 0x144   : > { %v1452_v43 = vadd.f32 %v1451_v33, %v1389_v37  ;;  %v1854_v44 = vpack.c.bf16 %v778_v41, %v775_v34  ;;  %v1320_v45 = vadd.f32 %v1319_v36, %v778_v41  ;;  %v1390_v46 = vmul.f32 %v778_v41, %v778_v41  ;;  %v780_v47 = vpop.f32.mrb[23].mxu0  ;;  %v908_v49 = vpop.f32.mrb[23].mxu1 }
 0x145   : > { %v1934_v50 = vpack.c.bf16 %v2410_v42, %v2408_v35 }
 0x146   : > { %1990 = vst [vmem:[%s2368_s4 + $0x28] sm:$0xff] %v1854_v44   ;;  %v1453_v51 = vadd.f32 %v1452_v43, %v1390_v46 }
 0x147   : > { %2006 = vst [vmem:[%s2368_s4 + $0xa8] sm:$0xff] %v1934_v50  }
 0x149   : > { %v783_v52 = vpop.f32.mrb[24].mxu0  ;;  %v2416_v53 = vpop.f32.mrb[24].mxu1 }
 0x14a   : > { %v1321_v55 = vadd.f32 %v1320_v45, %v783_v52  ;;  %v1391_v56 = vmul.f32 %v783_v52, %v783_v52  ;;  %v785_v57 = vpop.f32.mrb[25].mxu0  ;;  %v913_v58 = vpop.f32.mrb[25].mxu1 }
 0x14b   : > { %v786_v59 = vpop.f32.mrb[26].mxu0  ;;  %v2418_v60 = vpop.f32.mrb[26].mxu1 }
 0x14c   : > { %v1454_v61 = vadd.f32 %v1453_v51, %v1391_v56  ;;  %v1859_v62 = vpack.c.bf16 %v786_v59, %v783_v52  ;;  %v1322_v63 = vadd.f32 %v1321_v55, %v786_v59  ;;  %v1392_v1 = vmul.f32 %v786_v59, %v786_v59  ;;  %v788_v2 = vpop.f32.mrb[27].mxu0  ;;  %v916_v3 = vpop.f32.mrb[27].mxu1 }
 0x14d   : > { %v1939_v4 = vpack.c.bf16 %v2418_v60, %v2416_v53 }
 0x14e   : > { %1991 = vst [vmem:[%s2368_s4 + $0x30] sm:$0xff] %v1859_v62   ;;  %v1455_v5 = vadd.f32 %v1454_v61, %v1392_v1 }
 0x14f   : > { %2007 = vst [vmem:[%s2368_s4 + $0xb0] sm:$0xff] %v1939_v4  }
 0x151   : > { %v791_v7 = vpop.f32.mrb[28].mxu0  ;;  %v2424_v8 = vpop.f32.mrb[28].mxu1 }
 0x152   : > { %v1323_v9 = vadd.f32 %v1322_v63, %v791_v7  ;;  %v1393_v10 = vmul.f32 %v791_v7, %v791_v7  ;;  %v793_v11 = vpop.f32.mrb[29].mxu0  ;;  %v921_v12 = vpop.f32.mrb[29].mxu1 }
 0x153   : > { %v794_v13 = vpop.f32.mrb[30].mxu0  ;;  %v2426_v14 = vpop.f32.mrb[30].mxu1 }
 0x154   : > { %v1456_v15 = vadd.f32 %v1455_v5, %v1393_v10  ;;  %v1864_v17 = vpack.c.bf16 %v794_v13, %v791_v7  ;;  %v1324_v19 = vadd.f32 %v1323_v9, %v794_v13  ;;  %v1394_v20 = vmul.f32 %v794_v13, %v794_v13  ;;  %v796_v21 = vpop.f32.mrb[31].mxu0  ;;  %v924_v22 = vpop.f32.mrb[31].mxu1 }
 0x155   : > { %v1944_v25 = vpack.c.bf16 %v2426_v14, %v2424_v8 }
 0x156   : > { %1992 = vst [vmem:[%s2368_s4 + $0x38] sm:$0xff] %v1864_v17   ;;  %v1457_v26 = vadd.f32 %v1456_v15, %v1394_v20 }
 0x157   : > { %2008 = vst [vmem:[%s2368_s4 + $0xb8] sm:$0xff] %v1944_v25  }
 0x159   : > { %v799_v27 = vpop.f32.mrb[32].mxu0  ;;  %v2432_v28 = vpop.f32.mrb[32].mxu1 }
 0x15a   : > { %v1325_v29 = vadd.f32 %v1324_v19, %v799_v27  ;;  %v1395_v30 = vmul.f32 %v799_v27, %v799_v27  ;;  %v801_v31 = vpop.f32.mrb[33].mxu0  ;;  %v929_v33 = vpop.f32.mrb[33].mxu1 }
 0x15b   : > { %v802_v34 = vpop.f32.mrb[34].mxu0  ;;  %v2434_v36 = vpop.f32.mrb[34].mxu1 }
 0x15c   : > { %v1458_v37 = vadd.f32 %v1457_v26, %v1395_v30  ;;  %v1869_v39 = vpack.c.bf16 %v802_v34, %v799_v27  ;;  %v1326_v40 = vadd.f32 %v1325_v29, %v802_v34  ;;  %v1396_v41 = vmul.f32 %v802_v34, %v802_v34  ;;  %v804_v43 = vpop.f32.mrb[35].mxu0  ;;  %v932_v44 = vpop.f32.mrb[35].mxu1 }
 0x15d   : > { %v1949_v45 = vpack.c.bf16 %v2434_v36, %v2432_v28 }
 0x15e   : > { %1993 = vst [vmem:[%s2368_s4 + $0x40] sm:$0xff] %v1869_v39   ;;  %v1459_v46 = vadd.f32 %v1458_v37, %v1396_v41 }
 0x15f   : > { %2009 = vst [vmem:[%s2368_s4 + $0xc0] sm:$0xff] %v1949_v45  }
 0x161   : > { %v807_v47 = vpop.f32.mrb[36].mxu0  ;;  %v2440_v49 = vpop.f32.mrb[36].mxu1 }
 0x162   : > { %v1327_v50 = vadd.f32 %v1326_v40, %v807_v47  ;;  %v1397_v51 = vmul.f32 %v807_v47, %v807_v47  ;;  %v809_v52 = vpop.f32.mrb[37].mxu0  ;;  %v937_v55 = vpop.f32.mrb[37].mxu1 }
 0x163   : > { %v810_v56 = vpop.f32.mrb[38].mxu0  ;;  %v2442_v57 = vpop.f32.mrb[38].mxu1 }
 0x164   : > { %v1460_v58 = vadd.f32 %v1459_v46, %v1397_v51  ;;  %v1874_v59 = vpack.c.bf16 %v810_v56, %v807_v47  ;;  %v1328_v61 = vadd.f32 %v1327_v50, %v810_v56  ;;  %v1398_v62 = vmul.f32 %v810_v56, %v810_v56  ;;  %v812_v63 = vpop.f32.mrb[39].mxu0  ;;  %v940_v1 = vpop.f32.mrb[39].mxu1 }
 0x165   : > { %v1954_v2 = vpack.c.bf16 %v2442_v57, %v2440_v49 }
 0x166   : > { %1994 = vst [vmem:[%s2368_s4 + $0x48] sm:$0xff] %v1874_v59   ;;  %v1461_v3 = vadd.f32 %v1460_v58, %v1398_v62 }
 0x167   : > { %2010 = vst [vmem:[%s2368_s4 + $0xc8] sm:$0xff] %v1954_v2  }
 0x169   : > { %v815_v4 = vpop.f32.mrb[40].mxu0  ;;  %v2448_v5 = vpop.f32.mrb[40].mxu1 }
 0x16a   : > { %v1329_v7 = vadd.f32 %v1328_v61, %v815_v4  ;;  %v1399_v9 = vmul.f32 %v815_v4, %v815_v4  ;;  %v817_v10 = vpop.f32.mrb[41].mxu0  ;;  %v945_v11 = vpop.f32.mrb[41].mxu1 }
 0x16b   : > { %v818_v12 = vpop.f32.mrb[42].mxu0  ;;  %v2450_v13 = vpop.f32.mrb[42].mxu1 }
 0x16c   : > { %v1462_v15 = vadd.f32 %v1461_v3, %v1399_v9  ;;  %v1879_v17 = vpack.c.bf16 %v818_v12, %v815_v4  ;;  %v1330_v19 = vadd.f32 %v1329_v7, %v818_v12  ;;  %v1400_v20 = vmul.f32 %v818_v12, %v818_v12  ;;  %v820_v21 = vpop.f32.mrb[43].mxu0  ;;  %v948_v22 = vpop.f32.mrb[43].mxu1 }
 0x16d   : > { %v1959_v25 = vpack.c.bf16 %v2450_v13, %v2448_v5 }
 0x16e   : > { %1995 = vst [vmem:[%s2368_s4 + $0x50] sm:$0xff] %v1879_v17   ;;  %v1463_v26 = vadd.f32 %v1462_v15, %v1400_v20 }
 0x16f   : > { %2011 = vst [vmem:[%s2368_s4 + $0xd0] sm:$0xff] %v1959_v25  }
 0x171   : > { %v823_v27 = vpop.f32.mrb[44].mxu0  ;;  %v2456_v29 = vpop.f32.mrb[44].mxu1 }
 0x172   : > { %v1331_v30 = vadd.f32 %v1330_v19, %v823_v27  ;;  %v1401_v31 = vmul.f32 %v823_v27, %v823_v27  ;;  %v825_v33 = vpop.f32.mrb[45].mxu0  ;;  %v953_v34 = vpop.f32.mrb[45].mxu1 }
 0x173   : > { %v826_v37 = vpop.f32.mrb[46].mxu0  ;;  %v2458_v39 = vpop.f32.mrb[46].mxu1 }
 0x174   : > { %v1464_v40 = vadd.f32 %v1463_v26, %v1401_v31  ;;  %v1884_v41 = vpack.c.bf16 %v826_v37, %v823_v27  ;;  %v1332_v43 = vadd.f32 %v1331_v30, %v826_v37  ;;  %v1402_v44 = vmul.f32 %v826_v37, %v826_v37  ;;  %v828_v45 = vpop.f32.mrb[47].mxu0  ;;  %v956_v46 = vpop.f32.mrb[47].mxu1 }
 0x175   : > { %v1964_v47 = vpack.c.bf16 %v2458_v39, %v2456_v29 }
 0x176   : > { %1996 = vst [vmem:[%s2368_s4 + $0x58] sm:$0xff] %v1884_v41   ;;  %v1465_v50 = vadd.f32 %v1464_v40, %v1402_v44 }
 0x177   : > { %2012 = vst [vmem:[%s2368_s4 + $0xd8] sm:$0xff] %v1964_v47  }
 0x179   : > { %v831_v51 = vpop.f32.mrb[48].mxu0  ;;  %v2464_v52 = vpop.f32.mrb[48].mxu1 }
 0x17a   : > { %v1333_v55 = vadd.f32 %v1332_v43, %v831_v51  ;;  %v1403_v56 = vmul.f32 %v831_v51, %v831_v51  ;;  %v833_v58 = vpop.f32.mrb[49].mxu0  ;;  %v961_v59 = vpop.f32.mrb[49].mxu1 }
 0x17b   : > { %v834_v61 = vpop.f32.mrb[50].mxu0  ;;  %v2466_v62 = vpop.f32.mrb[50].mxu1 }
 0x17c   : > { %v1466_v63 = vadd.f32 %v1465_v50, %v1403_v56  ;;  %v1889_v1 = vpack.c.bf16 %v834_v61, %v831_v51  ;;  %v1334_v2 = vadd.f32 %v1333_v55, %v834_v61  ;;  %v1404_v3 = vmul.f32 %v834_v61, %v834_v61  ;;  %v836_v4 = vpop.f32.mrb[51].mxu0  ;;  %v964_v7 = vpop.f32.mrb[51].mxu1 }
 0x17d   : > { %v1969_v9 = vpack.c.bf16 %v2466_v62, %v2464_v52 }
 0x17e   : > { %1997 = vst [vmem:[%s2368_s4 + $0x60] sm:$0xff] %v1889_v1   ;;  %v1467_v10 = vadd.f32 %v1466_v63, %v1404_v3 }
 0x17f   : > { %2013 = vst [vmem:[%s2368_s4 + $0xe0] sm:$0xff] %v1969_v9  }
 0x181   : > { %v839_v11 = vpop.f32.mrb[52].mxu0  ;;  %v2472_v12 = vpop.f32.mrb[52].mxu1 }
 0x182   : > { %v1335_v15 = vadd.f32 %v1334_v2, %v839_v11  ;;  %v1405_v17 = vmul.f32 %v839_v11, %v839_v11  ;;  %v841_v19 = vpop.f32.mrb[53].mxu0  ;;  %v969_v20 = vpop.f32.mrb[53].mxu1 }
 0x183   : > { %v842_v21 = vpop.f32.mrb[54].mxu0  ;;  %v2474_v22 = vpop.f32.mrb[54].mxu1 }
 0x184   : > { %v1468_v25 = vadd.f32 %v1467_v10, %v1405_v17  ;;  %v1894_v26 = vpack.c.bf16 %v842_v21, %v839_v11  ;;  %v1336_v27 = vadd.f32 %v1335_v15, %v842_v21  ;;  %v1406_v30 = vmul.f32 %v842_v21, %v842_v21  ;;  %v844_v31 = vpop.f32.mrb[55].mxu0  ;;  %v972_v33 = vpop.f32.mrb[55].mxu1 }
 0x185   : > { %v1974_v34 = vpack.c.bf16 %v2474_v22, %v2472_v12 }
 0x186   : > { %1998 = vst [vmem:[%s2368_s4 + $0x68] sm:$0xff] %v1894_v26   ;;  %v1469_v37 = vadd.f32 %v1468_v25, %v1406_v30  ;;  %v1411_v30 = vmul.f32 %v2363_v18, %v2363_v18 }
 0x187   : > { %2014 = vst [vmem:[%s2368_s4 + $0xe8] sm:$0xff] %v1974_v34   ;;  %v1412_v34 = vmul.f32 %v2370_v23, %v2370_v23 }
 0x189   : > { %v847_v40 = vpop.f32.mrb[56].mxu0  ;;  %v2480_v41 = vpop.f32.mrb[56].mxu1 }
 0x18a   : > { %v1337_v43 = vadd.f32 %v1336_v27, %v847_v40  ;;  %v1407_v44 = vmul.f32 %v847_v40, %v847_v40  ;;  %v849_v45 = vpop.f32.mrb[57].mxu0  ;;  %v977_v46 = vpop.f32.mrb[57].mxu1 }
 0x18b   : > { %v850_v47 = vpop.f32.mrb[58].mxu0  ;;  %v2482_v50 = vpop.f32.mrb[58].mxu1  ;;  %v1414_v46 = vmul.f32 %v2378_v38, %v2378_v38 }
 0x18c   : > { %v1470_v51 = vadd.f32 %v1469_v37, %v1407_v44  ;;  %v1899_v55 = vpack.c.bf16 %v850_v47, %v847_v40  ;;  %v1338_v56 = vadd.f32 %v1337_v43, %v850_v47  ;;  %v1408_v58 = vmul.f32 %v850_v47, %v850_v47  ;;  %v852_v59 = vpop.f32.mrb[59].mxu0  ;;  %v980_v61 = vpop.f32.mrb[59].mxu1 }
 0x18d   : > { %v1979_v63 = vpack.c.bf16 %v2482_v50, %v2480_v41  ;;  %v1413_v43 = vmul.f32 %v2376_v32, %v2376_v32 }
 0x18e   : > { %1999 = vst [vmem:[%s2368_s4 + $0x70] sm:$0xff] %v1899_v55   ;;  %v1471_v1 = vadd.f32 %v1470_v51, %v1408_v58  ;;  %v1415_v51 = vmul.f32 %v2384_v48, %v2384_v48 }
 0x18f   : > { %2015 = vst [vmem:[%s2368_s4 + $0xf0] sm:$0xff] %v1979_v63  }
 0x191   : > { %v855_v2 = vpop.f32.mrb[60].mxu0  ;;  %v2488_v3 = vpop.f32.mrb[60].mxu1 }
 0x192   : > { %v1339_v4 = vadd.f32 %v1338_v56, %v855_v2  ;;  %v1409_v7 = vmul.f32 %v855_v2, %v855_v2  ;;  %v857_v9 = vpop.f32.mrb[61].mxu0  ;;  %v985_v10 = vpop.f32.mrb[61].mxu1 }
 0x193   : > { %v858_v11 = vpop.f32.mrb[62].mxu0  ;;  %v2490_v15 = vpop.f32.mrb[62].mxu1 }
 0x194   : > { %v1472_v17 = vadd.f32 %v1471_v1, %v1409_v7  ;;  %v1904_v19 = vpack.c.bf16 %v858_v11, %v855_v2  ;;  %v1340_v20 = vadd.f32 %v1339_v4, %v858_v11  ;;  %v1410_v21 = vmul.f32 %v858_v11, %v858_v11  ;;  %v860_v25 = vpop.f32.mrb[63].mxu0  ;;  %v988_v26 = vpop.f32.mrb[63].mxu1 }
 0x195   : > { %v1984_v27 = vpack.c.bf16 %v2490_v15, %v2488_v3 }
 0x196   : > { %2000 = vst [vmem:[%s2368_s4 + $0x78] sm:$0xff] %v1904_v19   ;;  %v1341_v31 = vadd.f32 %v1340_v20, %v2363_v18  ;;  %v1473_v33 = vadd.f32 %v1472_v17, %v1410_v21 }
 0x197   : > { %2016 = vst [vmem:[%s2368_s4 + $0xf8] sm:$0xff] %v1984_v27  }
 0x198   : > { %v1342_v37 = vadd.f32 %v1341_v31, %v2370_v23  ;;  %v1474_v40 = vadd.f32 %v1473_v33, %v1411_v30  ;;  %v1416_v23 = vmul.f32 %v2386_v54, %v2386_v54 }
 0x19a   : > { %v1343_v44 = vadd.f32 %v1342_v37, %v2376_v32  ;;  %v1475_v45 = vadd.f32 %v1474_v40, %v1412_v34  ;;  %v1417_v32 = vmul.f32 %v2392_v0, %v2392_v0  ;;  %v1427_v37 = vmul.f32 %v2432_v28, %v2432_v28 }
 0x19c   : > { %v1344_v47 = vadd.f32 %v1343_v44, %v2378_v38  ;;  %v1476_v18 = vadd.f32 %v1475_v45, %v1413_v43  ;;  %v1418_v38 = vmul.f32 %v2394_v6, %v2394_v6  ;;  %v1428_v44 = vmul.f32 %v2434_v36, %v2434_v36 }
 0x19e   : > { %v1345_v55 = vadd.f32 %v1344_v47, %v2384_v48  ;;  %v1477_v56 = vadd.f32 %v1476_v18, %v1414_v46  ;;  %v1419_v48 = vmul.f32 %v2400_v16, %v2400_v16  ;;  %v1429_v46 = vmul.f32 %v2440_v49, %v2440_v49 }
 0x19f   : > { %v1430_v18 = vmul.f32 %v2442_v57, %v2442_v57 }
 0x1a0   : > { %v1346_v58 = vadd.f32 %v1345_v55, %v2386_v54  ;;  %v1478_v59 = vadd.f32 %v1477_v56, %v1415_v51  ;;  %v1420_v54 = vmul.f32 %v2402_v24, %v2402_v24  ;;  %v1431_v55 = vmul.f32 %v2448_v5, %v2448_v5 }
 0x1a2   : > { %v1347_v61 = vadd.f32 %v1346_v58, %v2392_v0  ;;  %v1479_v63 = vadd.f32 %v1478_v59, %v1416_v23  ;;  %v1421_v0 = vmul.f32 %v2408_v35, %v2408_v35  ;;  %v1432_v23 = vmul.f32 %v2450_v13, %v2450_v13 }
 0x1a3   : > { %v1433_v59 = vmul.f32 %v2456_v29, %v2456_v29 }
 0x1a4   : > { %v1348_v1 = vadd.f32 %v1347_v61, %v2394_v6  ;;  %v1480_v2 = vadd.f32 %v1479_v63, %v1417_v32  ;;  %v1422_v6 = vmul.f32 %v2410_v42, %v2410_v42  ;;  %v1434_v61 = vmul.f32 %v2458_v39, %v2458_v39 }
 0x1a6   : > { %v1481_v4 = vadd.f32 %v1480_v2, %v1418_v38  ;;  %v1349_v7 = vadd.f32 %v1348_v1, %v2400_v16  ;;  %v1423_v16 = vmul.f32 %v2416_v53, %v2416_v53  ;;  %v1435_v38 = vmul.f32 %v2464_v52, %v2464_v52 }
 0x1a7   : > { %v1436_v2 = vmul.f32 %v2466_v62, %v2466_v62 }
 0x1a8   : > { %v1350_v9 = vadd.f32 %v1349_v7, %v2402_v24  ;;  %v1482_v10 = vadd.f32 %v1481_v4, %v1419_v48  ;;  %v1424_v24 = vmul.f32 %v2418_v60, %v2418_v60  ;;  %v1437_v4 = vmul.f32 %v2472_v12, %v2472_v12 }
 0x1aa   : > { %v1351_v11 = vadd.f32 %v1350_v9, %v2408_v35  ;;  %v1483_v17 = vadd.f32 %v1482_v10, %v1420_v54  ;;  %v1425_v35 = vmul.f32 %v2424_v8, %v2424_v8  ;;  %v1438_v54 = vmul.f32 %v2474_v22, %v2474_v22 }
 0x1ab   : > { %v1439_v10 = vmul.f32 %v2480_v41, %v2480_v41 }
 0x1ac   : > { %v1352_v19 = vadd.f32 %v1351_v11, %v2410_v42  ;;  %v1484_v20 = vadd.f32 %v1483_v17, %v1421_v0  ;;  %v1426_v42 = vmul.f32 %v2426_v14, %v2426_v14  ;;  %v1441_v11 = vmul.f32 %v2488_v3, %v2488_v3 }
 0x1ae   : > { %v1353_v21 = vadd.f32 %v1352_v19, %v2416_v53  ;;  %v1485_v25 = vadd.f32 %v1484_v20, %v1422_v6  ;;  %v1442_v20 = vmul.f32 %v2490_v15, %v2490_v15 }
 0x1b0   : > { %v1354_v26 = vadd.f32 %v1353_v21, %v2418_v60  ;;  %v1486_v27 = vadd.f32 %v1485_v25, %v1423_v16 }
 0x1b2   : > { %v1355_v30 = vadd.f32 %v1354_v26, %v2424_v8  ;;  %v1487_v31 = vadd.f32 %v1486_v27, %v1424_v24 }
 0x1b4   : > { %v1356_v33 = vadd.f32 %v1355_v30, %v2426_v14  ;;  %v1488_v34 = vadd.f32 %v1487_v31, %v1425_v35 }
 0x1b6   : > { %v1357_v53 = vadd.f32 %v1356_v33, %v2432_v28  ;;  %v1489_v40 = vadd.f32 %v1488_v34, %v1426_v42 }
 0x1b8   : > { %v1490_v60 = vadd.f32 %v1489_v40, %v1427_v37  ;;  %v1358_v43 = vadd.f32 %v1357_v53, %v2434_v36 }
 0x1ba   : > { %v1491_v8 = vadd.f32 %v1490_v60, %v1428_v44  ;;  %v1359_v45 = vadd.f32 %v1358_v43, %v2440_v49 }
 0x1bc   : > { %v1492_v14 = vadd.f32 %v1491_v8, %v1429_v46  ;;  %v1360_v47 = vadd.f32 %v1359_v45, %v2442_v57 }
 0x1be   : > { %v1493_v28 = vadd.f32 %v1492_v14, %v1430_v18  ;;  %v1361_v51 = vadd.f32 %v1360_v47, %v2448_v5 }
 0x1c0   : > { %v1494_v56 = vadd.f32 %v1493_v28, %v1431_v55  ;;  %v1362_v36 = vadd.f32 %v1361_v51, %v2450_v13 }
 0x1c2   : > { %v1495_v58 = vadd.f32 %v1494_v56, %v1432_v23  ;;  %v1363_v49 = vadd.f32 %v1362_v36, %v2456_v29 }
 0x1c4   : > { %v1496_v32 = vadd.f32 %v1495_v58, %v1433_v59  ;;  %v1364_v57 = vadd.f32 %v1363_v49, %v2458_v39 }
 0x1c6   : > { %v1497_v63 = vadd.f32 %v1496_v32, %v1434_v61  ;;  %v1365_v5 = vadd.f32 %v1364_v57, %v2464_v52 }
 0x1c8   : > { %v1498_v1 = vadd.f32 %v1497_v63, %v1435_v38  ;;  %v1366_v13 = vadd.f32 %v1365_v5, %v2466_v62 }
 0x1ca   : > { %v1499_v48 = vadd.f32 %v1498_v1, %v1436_v2  ;;  %v1367_v29 = vadd.f32 %v1366_v13, %v2472_v12  ;;  %v1440_v12 = vmul.f32 %v2482_v50, %v2482_v50 }
 0x1cc   : > { %v1500_v7 = vadd.f32 %v1499_v48, %v1437_v4  ;;  %v1368_v39 = vadd.f32 %v1367_v29, %v2474_v22 }
 0x1ce   : > { %v1501_v52 = vadd.f32 %v1500_v7, %v1438_v54  ;;  %v1369_v9 = vadd.f32 %v1368_v39, %v2480_v41 }
 0x1d0   : > { %v1502_v62 = vadd.f32 %v1501_v52, %v1439_v10  ;;  %v1370_v0 = vadd.f32 %v1369_v9, %v2482_v50 }
 0x1d2   : > { %v1503_v17 = vadd.f32 %v1502_v62, %v1440_v12  ;;  %v1371_v6 = vadd.f32 %v1370_v0, %v2488_v3 }
 0x1d4   : > { %v1504_v22 = vadd.f32 %v1503_v17, %v1441_v11  ;;  %v1372_v19 = vadd.f32 %v1371_v6, %v2490_v15 }
 0x1d6   : > { %v1373_v41 = vrot.slane %v1372_v19, 4  ;;  %v1505_v16 = vadd.f32 %v1504_v22, %v1442_v20 }
 0x1d8   : > { %v1374_v21 = vadd.f32 %v1373_v41, %v1372_v19  ;;  %v1506_v25 = vrot.slane %v1505_v16, 4 }
 0x1da   : > { %v1375_v24 = vrot.slane %v1374_v21, 2  ;;  %v1507_v26 = vadd.f32 %v1506_v25, %v1505_v16 }
 0x1dc   : > { %v1376_v50 = vadd.f32 %v1375_v24, %v1374_v21  ;;  %v1508_v27 = vrot.slane %v1507_v26, 2 }
 0x1de   : > { %v1377_v35 = vrot.slane %v1376_v50, 1  ;;  %v1509_v30 = vadd.f32 %v1508_v27, %v1507_v26 }
 0x1e0   : > { %v1510_v3 = vrot.slane %v1509_v30, 1  ;;  %v1378_v31 = vadd.f32 %v1377_v35, %v1376_v50 }
 0x1e2   : > { %v1511_v42 = vadd.f32 %v1510_v3, %v1509_v30 }
 0x1e4   : > { %v1513_v15 = vsel %vm1512_vm0, %v1378_v31, %v1511_v42 }
 0x1e5   : > { %v1515_v33 = vsel %vm1514_vm1, %v1513_v15, 0.0 }
 0x1e6   : > { %1516 = vst [vmem:[%s187_s6] sm:$0xff] %v1515_v33 }
 0x1e7 PF: > { %s14_s12 = sadd.s32 1, %s2176_s12  }
 0x1e8   : > { %p11_p5 = scmp.ge.s32.totalorder %s14_s12, 6  }
 0x1ea   :  { %13 = sbr.rel (!%p11_p5) target bundleno = 1 (0x1), region = 70 }

// kernel: generator_forward.16
= control target key start
LH: loop header
LB: loop body
LE: loop exit
PB: predicated region body
PF: predicated region fallthrough
CT: control target
= control target key end

     0   :  { %s1411_s12 = smov 0   ;;  %s1641_s0 = inlined_call_operand.vmem [shape: bf16[2048,128], index: 0, kind: input, shape index: {}]   ;;  %s1642_s1 = inlined_call_operand.vmem [shape: f32[1,128], index: 1, kind: input, shape index: {}]   ;;  %s1643_s2 = inlined_call_operand.vmem [shape: f32[1,128], index: 2, kind: input, shape index: {}]   ;;  %s1644_s3 = inlined_call_operand.vmem [shape: bf16[2048,128], index: 3, kind: output, shape index: {}]  }
   0x1 LB: > { %s884_s13 = sadd.s32 4294967295, %s1389_s12   ;;  %p888_p0 = scmp.ge.s32.totalorder %s1389_s12, 1  ;;  %s1389_s12 = sphi %s1411_s12, %s13_s12  }
   0x2   : > { %p138_p1 = scmp.lt.s32.totalorder %s1389_s12, 5 }
   0x4   : > { %p139_p2 = pnand %p888_p0, %p138_p1 }
   0x5   : > { %s889_s14 = sshll.u32 (!%p139_p2), %s884_s13, 6  ;;  %v1432_v0 = vld [vmem:[%s1642_s1] ss:$0 sm:$0xff] (!%p139_p2) }
   0x6   : > { %142 = sbr.rel (%p139_p2) target bundleno = 95 (0x5f), region = 32  ;;  %p163_p3 = scmp.lt.s32.totalorder (!%p139_p2), %s889_s14, 255  ;;  %v1441_v9 = vld [vmem:[%s1643_s2] ss:$0 sm:$0xff] (!%p139_p2) }
   0xd   : > { %s1646_s14 = smov (!%p163_p3, %s889_s14), 255 }
   0xe   : > { %s890_s15 = sshll.u32 %s1646_s14, 2 }
   0xf   : > { %s1427_s18 = scalar_lea.vmem %s1641_s0, %s890_s15  ;;  %s1466_s25 = scalar_lea.vmem %s1644_s3, %s890_s15 }
  0x10   : > { %v1026_v1 = vld [vmem:[%s1427_s18] sm:$0xff]   ;;  %v1313_v2 = vld [vmem:[%s1427_s18 + $0x8] sm:$0xff]   ;;  %v1314_v3 = vld [vmem:[%s1427_s18 + $0x10] sm:$0xff]  }
  0x11   : > { %v1027_v4 = vunpack.c.l.bf16 %v1026_v1  ;;  %v1028_v5 = vunpack.c.h.bf16 %v1026_v1  ;;  %v1031_v6 = vunpack.c.l.bf16 %v1313_v2  ;;  %v1032_v7 = vunpack.c.h.bf16 %v1313_v2  ;;  %v1315_v8 = vld [vmem:[%s1427_s18 + $0x18] sm:$0xff]   ;;  %v1316_v30 = vld [vmem:[%s1427_s18 + $0x20] sm:$0xff]   ;;  %v1317_v35 = vld [vmem:[%s1427_s18 + $0x28] sm:$0xff]  }
  0x12   : > { %v1035_v10 = vunpack.c.l.bf16 %v1314_v3  ;;  %v1036_v11 = vunpack.c.h.bf16 %v1314_v3  ;;  %v1039_v12 = vunpack.c.l.bf16 %v1315_v8  ;;  %v1040_v13 = vunpack.c.h.bf16 %v1315_v8  ;;  %v1318_v40 = vld [vmem:[%s1427_s18 + $0x30] sm:$0xff]   ;;  %v1319_v45 = vld [vmem:[%s1427_s18 + $0x38] sm:$0xff]   ;;  %v1320_v3 = vld [vmem:[%s1427_s18 + $0x40] sm:$0xff]  }
  0x13   : > { %v309_v14 = vmul.f32 %v1027_v4, %v1432_v0  ;;  %v310_v15 = vmul.f32 %v1028_v5, %v1432_v0  ;;  %v311_v16 = vmul.f32 %v1031_v6, %v1432_v0  ;;  %v312_v17 = vmul.f32 %v1032_v7, %v1432_v0 }
  0x14   : > { %v313_v18 = vmul.f32 %v1035_v10, %v1432_v0  ;;  %v314_v19 = vmul.f32 %v1036_v11, %v1432_v0  ;;  %v315_v20 = vmul.f32 %v1039_v12, %v1432_v0  ;;  %v316_v21 = vmul.f32 %v1040_v13, %v1432_v0  ;;  %v1321_v13 = vld [vmem:[%s1427_s18 + $0x48] sm:$0xff]  }
  0x15   : > { %v380_v22 = vadd.f32 %v1441_v9, %v309_v14  ;;  %v381_v23 = vadd.f32 %v1441_v9, %v310_v15  ;;  %v382_v24 = vadd.f32 %v1441_v9, %v311_v16  ;;  %v383_v25 = vadd.f32 %v1441_v9, %v312_v17 }
  0x16   : > { %v384_v26 = vadd.f32 %v1441_v9, %v313_v18  ;;  %v385_v27 = vadd.f32 %v1441_v9, %v314_v19  ;;  %v386_v28 = vadd.f32 %v1441_v9, %v315_v20  ;;  %v387_v29 = vadd.f32 %v1441_v9, %v316_v21  ;;  %v1322_v18 = vld [vmem:[%s1427_s18 + $0x50] sm:$0xff]  }
  0x17   : > { %v444_v31 = vmax.f32 %v380_v22, 0.0  ;;  %v445_v32 = vmax.f32 %v381_v23, 0.0  ;;  %v446_v33 = vmax.f32 %v382_v24, 0.0  ;;  %v447_v34 = vmax.f32 %v383_v25, 0.0  ;;  %v1323_v23 = vld [vmem:[%s1427_s18 + $0x58] sm:$0xff]  }
  0x18   : > { %v448_v36 = vmax.f32 %v384_v26, 0.0  ;;  %v449_v37 = vmax.f32 %v385_v27, 0.0  ;;  %v450_v38 = vmax.f32 %v386_v28, 0.0  ;;  %v451_v39 = vmax.f32 %v387_v29, 0.0 }
  0x19   : > { %v1156_v41 = vpack.c.bf16 %v445_v32, %v444_v31  ;;  %v1161_v42 = vpack.c.bf16 %v447_v34, %v446_v33  ;;  %v1043_v43 = vunpack.c.l.bf16 %v1316_v30  ;;  %v1044_v44 = vunpack.c.h.bf16 %v1316_v30 }
  0x1a   : > { %v1166_v46 = vpack.c.bf16 %v449_v37, %v448_v36  ;;  %v1171_v47 = vpack.c.bf16 %v451_v39, %v450_v38  ;;  %v1047_v48 = vunpack.c.l.bf16 %v1317_v35  ;;  %v1048_v49 = vunpack.c.h.bf16 %v1317_v35 }
  0x1b   : > { %1157 = vst [vmem:[%s1466_s25] sm:$0xff] %v1156_v41   ;;  %1344 = vst [vmem:[%s1466_s25 + $0x8] sm:$0xff] %v1161_v42   ;;  %v317_v50 = vmul.f32 %v1043_v43, %v1432_v0  ;;  %v318_v51 = vmul.f32 %v1044_v44, %v1432_v0  ;;  %v1051_v52 = vunpack.c.l.bf16 %v1318_v40  ;;  %v1052_v53 = vunpack.c.h.bf16 %v1318_v40  ;;  %v1324_v40 = vld [vmem:[%s1427_s18 + $0x60] sm:$0xff]  }
  0x1c   : > { %1345 = vst [vmem:[%s1466_s25 + $0x10] sm:$0xff] %v1166_v46   ;;  %1346 = vst [vmem:[%s1466_s25 + $0x18] sm:$0xff] %v1171_v47   ;;  %v319_v54 = vmul.f32 %v1047_v48, %v1432_v0  ;;  %v320_v55 = vmul.f32 %v1048_v49, %v1432_v0  ;;  %v1055_v56 = vunpack.c.l.bf16 %v1319_v45  ;;  %v1056_v57 = vunpack.c.h.bf16 %v1319_v45 }
  0x1d   : > { %v388_v58 = vadd.f32 %v1441_v9, %v317_v50  ;;  %v389_v59 = vadd.f32 %v1441_v9, %v318_v51  ;;  %v321_v60 = vmul.f32 %v1051_v52, %v1432_v0  ;;  %v322_v61 = vmul.f32 %v1052_v53, %v1432_v0  ;;  %v1325_v53 = vld [vmem:[%s1427_s18 + $0x68] sm:$0xff]  }
  0x1e   : > { %v390_v62 = vadd.f32 %v1441_v9, %v319_v54  ;;  %v391_v63 = vadd.f32 %v1441_v9, %v320_v55  ;;  %v323_v1 = vmul.f32 %v1055_v56, %v1432_v0  ;;  %v324_v2 = vmul.f32 %v1056_v57, %v1432_v0 }
  0x1f   : > { %v452_v4 = vmax.f32 %v388_v58, 0.0  ;;  %v453_v5 = vmax.f32 %v389_v59, 0.0  ;;  %v392_v6 = vadd.f32 %v1441_v9, %v321_v60  ;;  %v393_v7 = vadd.f32 %v1441_v9, %v322_v61  ;;  %v1326_v58 = vld [vmem:[%s1427_s18 + $0x70] sm:$0xff]  }
  0x20   : > { %v454_v8 = vmax.f32 %v390_v62, 0.0  ;;  %v455_v10 = vmax.f32 %v391_v63, 0.0  ;;  %v394_v11 = vadd.f32 %v1441_v9, %v323_v1  ;;  %v395_v12 = vadd.f32 %v1441_v9, %v324_v2  ;;  %v1327_v63 = vld [vmem:[%s1427_s18 + $0x78] sm:$0xff]  }
  0x21   : > { %v1176_v14 = vpack.c.bf16 %v453_v5, %v452_v4  ;;  %v456_v15 = vmax.f32 %v392_v6, 0.0  ;;  %v457_v16 = vmax.f32 %v393_v7, 0.0  ;;  %v1059_v17 = vunpack.c.l.bf16 %v1320_v3 }
  0x22   : > { %v1181_v19 = vpack.c.bf16 %v455_v10, %v454_v8  ;;  %v458_v20 = vmax.f32 %v394_v11, 0.0  ;;  %v459_v21 = vmax.f32 %v395_v12, 0.0  ;;  %v1060_v22 = vunpack.c.h.bf16 %v1320_v3 }
  0x23   : > { %1347 = vst [vmem:[%s1466_s25 + $0x20] sm:$0xff] %v1176_v14   ;;  %v1186_v24 = vpack.c.bf16 %v457_v16, %v456_v15  ;;  %v325_v25 = vmul.f32 %v1059_v17, %v1432_v0  ;;  %v1063_v26 = vunpack.c.l.bf16 %v1321_v13  ;;  %v1064_v27 = vunpack.c.h.bf16 %v1321_v13  ;;  %v1328_v14 = vld [vmem:[%s1427_s18 + $0x80] sm:$0xff]  }
  0x24   : > { %1348 = vst [vmem:[%s1466_s25 + $0x28] sm:$0xff] %v1181_v19   ;;  %v1191_v28 = vpack.c.bf16 %v459_v21, %v458_v20  ;;  %v326_v29 = vmul.f32 %v1060_v22, %v1432_v0  ;;  %v1067_v30 = vunpack.c.l.bf16 %v1322_v18  ;;  %v1068_v31 = vunpack.c.h.bf16 %v1322_v18 }
  0x25   : > { %1349 = vst [vmem:[%s1466_s25 + $0x30] sm:$0xff] %v1186_v24   ;;  %v396_v32 = vadd.f32 %v1441_v9, %v325_v25  ;;  %v327_v33 = vmul.f32 %v1063_v26, %v1432_v0  ;;  %v328_v34 = vmul.f32 %v1064_v27, %v1432_v0  ;;  %v1071_v35 = vunpack.c.l.bf16 %v1323_v23 }
  0x26   : > { %1350 = vst [vmem:[%s1466_s25 + $0x38] sm:$0xff] %v1191_v28   ;;  %v397_v36 = vadd.f32 %v1441_v9, %v326_v29  ;;  %v329_v37 = vmul.f32 %v1067_v30, %v1432_v0  ;;  %v330_v38 = vmul.f32 %v1068_v31, %v1432_v0  ;;  %v1072_v39 = vunpack.c.h.bf16 %v1323_v23  ;;  %v1329_v31 = vld [vmem:[%s1427_s18 + $0x88] sm:$0xff]  }
  0x27   : > { %v460_v41 = vmax.f32 %v396_v32, 0.0  ;;  %v398_v42 = vadd.f32 %v1441_v9, %v327_v33  ;;  %v399_v43 = vadd.f32 %v1441_v9, %v328_v34  ;;  %v331_v44 = vmul.f32 %v1071_v35, %v1432_v0 }
  0x28   : > { %v461_v45 = vmax.f32 %v397_v36, 0.0  ;;  %v400_v46 = vadd.f32 %v1441_v9, %v329_v37  ;;  %v401_v47 = vadd.f32 %v1441_v9, %v330_v38  ;;  %v332_v48 = vmul.f32 %v1072_v39, %v1432_v0  ;;  %v1330_v36 = vld [vmem:[%s1427_s18 + $0x90] sm:$0xff]  }
  0x29   : > { %v462_v49 = vmax.f32 %v398_v42, 0.0  ;;  %v463_v50 = vmax.f32 %v399_v43, 0.0  ;;  %v402_v51 = vadd.f32 %v1441_v9, %v331_v44  ;;  %v1075_v52 = vunpack.c.l.bf16 %v1324_v40 }
  0x2a   : > { %v1196_v54 = vpack.c.bf16 %v461_v45, %v460_v41  ;;  %v464_v55 = vmax.f32 %v400_v46, 0.0  ;;  %v465_v56 = vmax.f32 %v401_v47, 0.0  ;;  %v403_v57 = vadd.f32 %v1441_v9, %v332_v48  ;;  %v1331_v41 = vld [vmem:[%s1427_s18 + $0x98] sm:$0xff]  }
  0x2b   : > { %v1201_v59 = vpack.c.bf16 %v463_v50, %v462_v49  ;;  %v466_v60 = vmax.f32 %v402_v51, 0.0  ;;  %v1076_v61 = vunpack.c.h.bf16 %v1324_v40  ;;  %v333_v62 = vmul.f32 %v1075_v52, %v1432_v0 }
  0x2c   : > { %1351 = vst [vmem:[%s1466_s25 + $0x40] sm:$0xff] %v1196_v54   ;;  %v1206_v1 = vpack.c.bf16 %v465_v56, %v464_v55  ;;  %v467_v2 = vmax.f32 %v403_v57, 0.0  ;;  %v1079_v3 = vunpack.c.l.bf16 %v1325_v53  ;;  %v1080_v4 = vunpack.c.h.bf16 %v1325_v53  ;;  %v1332_v54 = vld [vmem:[%s1427_s18 + $0xa0] sm:$0xff]  }
  0x2d   : > { %1352 = vst [vmem:[%s1466_s25 + $0x48] sm:$0xff] %v1201_v59   ;;  %v334_v5 = vmul.f32 %v1076_v61, %v1432_v0  ;;  %v404_v6 = vadd.f32 %v1441_v9, %v333_v62  ;;  %v1083_v7 = vunpack.c.l.bf16 %v1326_v58  ;;  %v1084_v8 = vunpack.c.h.bf16 %v1326_v58 }
  0x2e   : > { %1353 = vst [vmem:[%s1466_s25 + $0x50] sm:$0xff] %v1206_v1   ;;  %v1211_v10 = vpack.c.bf16 %v467_v2, %v466_v60  ;;  %v335_v11 = vmul.f32 %v1079_v3, %v1432_v0  ;;  %v336_v12 = vmul.f32 %v1080_v4, %v1432_v0  ;;  %v1087_v13 = vunpack.c.l.bf16 %v1327_v63  ;;  %v1333_v4 = vld [vmem:[%s1427_s18 + $0xa8] sm:$0xff]  }
  0x2f   : > { %v405_v15 = vadd.f32 %v1441_v9, %v334_v5  ;;  %v468_v16 = vmax.f32 %v404_v6, 0.0  ;;  %v337_v17 = vmul.f32 %v1083_v7, %v1432_v0  ;;  %v338_v18 = vmul.f32 %v1084_v8, %v1432_v0 }
  0x30   : > { %1354 = vst [vmem:[%s1466_s25 + $0x58] sm:$0xff] %v1211_v10   ;;  %v406_v19 = vadd.f32 %v1441_v9, %v335_v11  ;;  %v407_v20 = vadd.f32 %v1441_v9, %v336_v12  ;;  %v1088_v21 = vunpack.c.h.bf16 %v1327_v63  ;;  %v339_v22 = vmul.f32 %v1087_v13, %v1432_v0 }
  0x31   : > { %v469_v23 = vmax.f32 %v405_v15, 0.0  ;;  %v408_v24 = vadd.f32 %v1441_v9, %v337_v17  ;;  %v409_v25 = vadd.f32 %v1441_v9, %v338_v18  ;;  %v1091_v26 = vunpack.c.l.bf16 %v1328_v14 }
  0x32   : > { %v470_v27 = vmax.f32 %v406_v19, 0.0  ;;  %v471_v28 = vmax.f32 %v407_v20, 0.0  ;;  %v340_v29 = vmul.f32 %v1088_v21, %v1432_v0  ;;  %v410_v30 = vadd.f32 %v1441_v9, %v339_v22  ;;  %v1335_v19 = vld [vmem:[%s1427_s18 + $0xb8] sm:$0xff]  }
  0x33   : > { %v1216_v32 = vpack.c.bf16 %v469_v23, %v468_v16  ;;  %v472_v33 = vmax.f32 %v408_v24, 0.0  ;;  %v473_v34 = vmax.f32 %v409_v25, 0.0  ;;  %v1092_v35 = vunpack.c.h.bf16 %v1328_v14  ;;  %v1334_v14 = vld [vmem:[%s1427_s18 + $0xb0] sm:$0xff]  }
  0x34   : > { %v1221_v37 = vpack.c.bf16 %v471_v28, %v470_v27  ;;  %v411_v38 = vadd.f32 %v1441_v9, %v340_v29  ;;  %v474_v39 = vmax.f32 %v410_v30, 0.0  ;;  %v341_v40 = vmul.f32 %v1091_v26, %v1432_v0 }
  0x35   : > { %1355 = vst [vmem:[%s1466_s25 + $0x60] sm:$0xff] %v1216_v32   ;;  %v1226_v42 = vpack.c.bf16 %v473_v34, %v472_v33  ;;  %v342_v43 = vmul.f32 %v1092_v35, %v1432_v0  ;;  %v1095_v44 = vunpack.c.l.bf16 %v1329_v31  ;;  %v1096_v45 = vunpack.c.h.bf16 %v1329_v31  ;;  %v1336_v32 = vld [vmem:[%s1427_s18 + $0xc0] sm:$0xff]  }
  0x36   : > { %1356 = vst [vmem:[%s1466_s25 + $0x68] sm:$0xff] %v1221_v37   ;;  %v475_v46 = vmax.f32 %v411_v38, 0.0  ;;  %v412_v47 = vadd.f32 %v1441_v9, %v341_v40  ;;  %v1099_v48 = vunpack.c.l.bf16 %v1330_v36  ;;  %v1100_v49 = vunpack.c.h.bf16 %v1330_v36 }
  0x37   : > { %1357 = vst [vmem:[%s1466_s25 + $0x70] sm:$0xff] %v1226_v42   ;;  %v413_v50 = vadd.f32 %v1441_v9, %v342_v43  ;;  %v343_v51 = vmul.f32 %v1095_v44, %v1432_v0  ;;  %v344_v52 = vmul.f32 %v1096_v45, %v1432_v0  ;;  %v1103_v53 = vunpack.c.l.bf16 %v1331_v41  ;;  %v1337_v45 = vld [vmem:[%s1427_s18 + $0xc8] sm:$0xff]  }
  0x38   : > { %v1231_v55 = vpack.c.bf16 %v475_v46, %v474_v39  ;;  %v476_v56 = vmax.f32 %v412_v47, 0.0  ;;  %v345_v57 = vmul.f32 %v1099_v48, %v1432_v0  ;;  %v346_v58 = vmul.f32 %v1100_v49, %v1432_v0 }
  0x39   : > { %v477_v59 = vmax.f32 %v413_v50, 0.0  ;;  %v414_v60 = vadd.f32 %v1441_v9, %v343_v51  ;;  %v415_v61 = vadd.f32 %v1441_v9, %v344_v52  ;;  %v1104_v62 = vunpack.c.h.bf16 %v1331_v41 }
  0x3a   : > { %1358 = vst [vmem:[%s1466_s25 + $0x78] sm:$0xff] %v1231_v55   ;;  %v416_v63 = vadd.f32 %v1441_v9, %v345_v57  ;;  %v417_v1 = vadd.f32 %v1441_v9, %v346_v58  ;;  %v347_v2 = vmul.f32 %v1103_v53, %v1432_v0  ;;  %v1107_v3 = vunpack.c.l.bf16 %v1332_v54 }
  0x3b   : > { %v1236_v5 = vpack.c.bf16 %v477_v59, %v476_v56  ;;  %v478_v6 = vmax.f32 %v414_v60, 0.0  ;;  %v479_v7 = vmax.f32 %v415_v61, 0.0  ;;  %v348_v8 = vmul.f32 %v1104_v62, %v1432_v0 }
  0x3c   : > { %v480_v10 = vmax.f32 %v416_v63, 0.0  ;;  %v481_v11 = vmax.f32 %v417_v1, 0.0  ;;  %v418_v12 = vadd.f32 %v1441_v9, %v347_v2  ;;  %v1108_v13 = vunpack.c.h.bf16 %v1332_v54  ;;  %v1338_v54 = vld [vmem:[%s1427_s18 + $0xd0] sm:$0xff]   ;;  %v1339_v63 = vld [vmem:[%s1427_s18 + $0xd8] sm:$0xff]  }
  0x3d   : > { %1359 = vst [vmem:[%s1466_s25 + $0x80] sm:$0xff] %v1236_v5   ;;  %v1241_v15 = vpack.c.bf16 %v479_v7, %v478_v6  ;;  %v419_v16 = vadd.f32 %v1441_v9, %v348_v8  ;;  %v349_v17 = vmul.f32 %v1107_v3, %v1432_v0  ;;  %v1111_v18 = vunpack.c.l.bf16 %v1333_v4 }
  0x3e   : > { %v1246_v20 = vpack.c.bf16 %v481_v11, %v480_v10  ;;  %v482_v21 = vmax.f32 %v418_v12, 0.0  ;;  %v350_v22 = vmul.f32 %v1108_v13, %v1432_v0  ;;  %v1112_v23 = vunpack.c.h.bf16 %v1333_v4  ;;  %v1340_v10 = vld [vmem:[%s1427_s18 + $0xe0] sm:$0xff]  }
  0x3f   : > { %1360 = vst [vmem:[%s1466_s25 + $0x88] sm:$0xff] %v1241_v15   ;;  %v483_v24 = vmax.f32 %v419_v16, 0.0  ;;  %v420_v25 = vadd.f32 %v1441_v9, %v349_v17  ;;  %v351_v26 = vmul.f32 %v1111_v18, %v1432_v0  ;;  %v1115_v27 = vunpack.c.l.bf16 %v1334_v14 }
  0x40   : > { %1361 = vst [vmem:[%s1466_s25 + $0x90] sm:$0xff] %v1246_v20   ;;  %v421_v28 = vadd.f32 %v1441_v9, %v350_v22  ;;  %v352_v29 = vmul.f32 %v1112_v23, %v1432_v0  ;;  %v1116_v30 = vunpack.c.h.bf16 %v1334_v14  ;;  %v1119_v31 = vunpack.c.l.bf16 %v1335_v19  ;;  %v1341_v23 = vld [vmem:[%s1427_s18 + $0xe8] sm:$0xff]  }
  0x41   : > { %v1251_v33 = vpack.c.bf16 %v483_v24, %v482_v21  ;;  %v484_v34 = vmax.f32 %v420_v25, 0.0  ;;  %v422_v35 = vadd.f32 %v1441_v9, %v351_v26  ;;  %v353_v36 = vmul.f32 %v1115_v27, %v1432_v0 }
  0x42   : > { %v485_v37 = vmax.f32 %v421_v28, 0.0  ;;  %v423_v38 = vadd.f32 %v1441_v9, %v352_v29  ;;  %v354_v39 = vmul.f32 %v1116_v30, %v1432_v0  ;;  %v1120_v40 = vunpack.c.h.bf16 %v1335_v19 }
  0x43   : > { %1362 = vst [vmem:[%s1466_s25 + $0x98] sm:$0xff] %v1251_v33   ;;  %v486_v41 = vmax.f32 %v422_v35, 0.0  ;;  %v424_v42 = vadd.f32 %v1441_v9, %v353_v36  ;;  %v355_v43 = vmul.f32 %v1119_v31, %v1432_v0  ;;  %v1123_v44 = vunpack.c.l.bf16 %v1336_v32 }
  0x44   : > { %v1256_v46 = vpack.c.bf16 %v485_v37, %v484_v34  ;;  %v487_v47 = vmax.f32 %v423_v38, 0.0  ;;  %v425_v48 = vadd.f32 %v1441_v9, %v354_v39  ;;  %v356_v49 = vmul.f32 %v1120_v40, %v1432_v0 }
  0x45   : > { %v488_v50 = vmax.f32 %v424_v42, 0.0  ;;  %v426_v51 = vadd.f32 %v1441_v9, %v355_v43  ;;  %v1124_v52 = vunpack.c.h.bf16 %v1336_v32  ;;  %v357_v53 = vmul.f32 %v1123_v44, %v1432_v0  ;;  %v1342_v32 = vld [vmem:[%s1427_s18 + $0xf0] sm:$0xff]  }
  0x46   : > { %1363 = vst [vmem:[%s1466_s25 + $0xa0] sm:$0xff] %v1256_v46   ;;  %v1261_v55 = vpack.c.bf16 %v487_v47, %v486_v41  ;;  %v489_v56 = vmax.f32 %v425_v48, 0.0  ;;  %v427_v57 = vadd.f32 %v1441_v9, %v356_v49  ;;  %v1127_v58 = vunpack.c.l.bf16 %v1337_v45  ;;  %v1343_v41 = vld [vmem:[%s1427_s18 + $0xf8] sm:$0xff]  }
  0x47   : > { %v490_v59 = vmax.f32 %v426_v51, 0.0  ;;  %v358_v60 = vmul.f32 %v1124_v52, %v1432_v0  ;;  %v428_v61 = vadd.f32 %v1441_v9, %v357_v53  ;;  %v1128_v62 = vunpack.c.h.bf16 %v1337_v45 }
  0x48   : > { %1364 = vst [vmem:[%s1466_s25 + $0xa8] sm:$0xff] %v1261_v55   ;;  %v1266_v1 = vpack.c.bf16 %v489_v56, %v488_v50  ;;  %v491_v2 = vmax.f32 %v427_v57, 0.0  ;;  %v359_v3 = vmul.f32 %v1127_v58, %v1432_v0  ;;  %v1131_v4 = vunpack.c.l.bf16 %v1338_v54 }
  0x49   : > { %v429_v5 = vadd.f32 %v1441_v9, %v358_v60  ;;  %v492_v6 = vmax.f32 %v428_v61, 0.0  ;;  %v360_v7 = vmul.f32 %v1128_v62, %v1432_v0  ;;  %v1132_v8 = vunpack.c.h.bf16 %v1338_v54 }
  0x4a   : > { %1365 = vst [vmem:[%s1466_s25 + $0xb0] sm:$0xff] %v1266_v1   ;;  %v1271_v11 = vpack.c.bf16 %v491_v2, %v490_v59  ;;  %v430_v12 = vadd.f32 %v1441_v9, %v359_v3  ;;  %v361_v13 = vmul.f32 %v1131_v4, %v1432_v0  ;;  %v1135_v14 = vunpack.c.l.bf16 %v1339_v63 }
  0x4b   : > { %v493_v15 = vmax.f32 %v429_v5, 0.0  ;;  %v431_v16 = vadd.f32 %v1441_v9, %v360_v7  ;;  %v362_v17 = vmul.f32 %v1132_v8, %v1432_v0  ;;  %v1136_v18 = vunpack.c.h.bf16 %v1339_v63 }
  0x4c   : > { %1366 = vst [vmem:[%s1466_s25 + $0xb8] sm:$0xff] %v1271_v11   ;;  %v494_v19 = vmax.f32 %v430_v12, 0.0  ;;  %v432_v20 = vadd.f32 %v1441_v9, %v361_v13  ;;  %v363_v21 = vmul.f32 %v1135_v14, %v1432_v0  ;;  %v1139_v22 = vunpack.c.l.bf16 %v1340_v10 }
  0x4d   : > { %v1276_v24 = vpack.c.bf16 %v493_v15, %v492_v6  ;;  %v495_v25 = vmax.f32 %v431_v16, 0.0  ;;  %v433_v26 = vadd.f32 %v1441_v9, %v362_v17  ;;  %v364_v27 = vmul.f32 %v1136_v18, %v1432_v0 }
  0x4e   : > { %v496_v28 = vmax.f32 %v432_v20, 0.0  ;;  %v434_v29 = vadd.f32 %v1441_v9, %v363_v21  ;;  %v1140_v30 = vunpack.c.h.bf16 %v1340_v10  ;;  %v365_v31 = vmul.f32 %v1139_v22, %v1432_v0 }
  0x4f   : > { %1367 = vst [vmem:[%s1466_s25 + $0xc0] sm:$0xff] %v1276_v24   ;;  %v1281_v33 = vpack.c.bf16 %v495_v25, %v494_v19  ;;  %v497_v34 = vmax.f32 %v433_v26, 0.0  ;;  %v435_v35 = vadd.f32 %v1441_v9, %v364_v27  ;;  %v1143_v36 = vunpack.c.l.bf16 %v1341_v23 }
  0x50   : > { %v498_v37 = vmax.f32 %v434_v29, 0.0  ;;  %v366_v38 = vmul.f32 %v1140_v30, %v1432_v0  ;;  %v436_v39 = vadd.f32 %v1441_v9, %v365_v31  ;;  %v1144_v40 = vunpack.c.h.bf16 %v1341_v23 }
  0x51   : > { %1368 = vst [vmem:[%s1466_s25 + $0xc8] sm:$0xff] %v1281_v33   ;;  %v1286_v42 = vpack.c.bf16 %v497_v34, %v496_v28  ;;  %v499_v43 = vmax.f32 %v435_v35, 0.0  ;;  %v367_v44 = vmul.f32 %v1143_v36, %v1432_v0  ;;  %v1147_v45 = vunpack.c.l.bf16 %v1342_v32 }
  0x52   : > { %v437_v46 = vadd.f32 %v1441_v9, %v366_v38  ;;  %v500_v47 = vmax.f32 %v436_v39, 0.0  ;;  %v368_v48 = vmul.f32 %v1144_v40, %v1432_v0  ;;  %v1148_v49 = vunpack.c.h.bf16 %v1342_v32 }
  0x53   : > { %1369 = vst [vmem:[%s1466_s25 + $0xd0] sm:$0xff] %v1286_v42   ;;  %v1291_v50 = vpack.c.bf16 %v499_v43, %v498_v37  ;;  %v438_v51 = vadd.f32 %v1441_v9, %v367_v44  ;;  %v369_v52 = vmul.f32 %v1147_v45, %v1432_v0  ;;  %v1151_v53 = vunpack.c.l.bf16 %v1343_v41 }
  0x54   : > { %v501_v54 = vmax.f32 %v437_v46, 0.0  ;;  %v439_v55 = vadd.f32 %v1441_v9, %v368_v48  ;;  %v370_v56 = vmul.f32 %v1148_v49, %v1432_v0  ;;  %v1152_v57 = vunpack.c.h.bf16 %v1343_v41 }
  0x55   : > { %1370 = vst [vmem:[%s1466_s25 + $0xd8] sm:$0xff] %v1291_v50   ;;  %v502_v58 = vmax.f32 %v438_v51, 0.0  ;;  %v440_v59 = vadd.f32 %v1441_v9, %v369_v52  ;;  %v371_v60 = vmul.f32 %v1151_v53, %v1432_v0 }
  0x56   : > { %v1296_v61 = vpack.c.bf16 %v501_v54, %v500_v47  ;;  %v503_v62 = vmax.f32 %v439_v55, 0.0  ;;  %v441_v63 = vadd.f32 %v1441_v9, %v370_v56  ;;  %v372_v1 = vmul.f32 %v1152_v57, %v1432_v0 }
  0x57   : > { %v504_v2 = vmax.f32 %v440_v59, 0.0  ;;  %v442_v3 = vadd.f32 %v1441_v9, %v371_v60 }
  0x58   : > { %1371 = vst [vmem:[%s1466_s25 + $0xe0] sm:$0xff] %v1296_v61   ;;  %v1301_v4 = vpack.c.bf16 %v503_v62, %v502_v58  ;;  %v505_v5 = vmax.f32 %v441_v63, 0.0  ;;  %v443_v6 = vadd.f32 %v1441_v9, %v372_v1 }
  0x59   : > { %v506_v7 = vmax.f32 %v442_v3, 0.0 }
  0x5a   : > { %1372 = vst [vmem:[%s1466_s25 + $0xe8] sm:$0xff] %v1301_v4   ;;  %v1306_v8 = vpack.c.bf16 %v505_v5, %v504_v2  ;;  %v507_v10 = vmax.f32 %v443_v6, 0.0 }
  0x5c   : > { %1373 = vst [vmem:[%s1466_s25 + $0xf0] sm:$0xff] %v1306_v8   ;;  %v1311_v11 = vpack.c.bf16 %v507_v10, %v506_v7 }
  0x5e   : > { %1374 = vst [vmem:[%s1466_s25 + $0xf8] sm:$0xff] %v1311_v11  }
  0x5f PF: > { %s13_s12 = sadd.s32 1, %s1389_s12  }
  0x60   : > { %p10_p4 = scmp.ge.s32.totalorder %s13_s12, 6  }
  0x62   :  { %12 = sbr.rel (!%p10_p4) target bundleno = 1 (0x1), region = 62 }

// kernel: generator_forward.17
= control target key start
LH: loop header
LB: loop body
LE: loop exit
PB: predicated region body
PF: predicated region fallthrough
CT: control target
= control target key end

     0   :  { %s1535_s15 = smov 0   ;;  %s1818_s0 = inlined_call_operand.vmem [shape: bf16[8192,128], index: 0, kind: input, shape index: {}]   ;;  %s1819_s1 = inlined_call_operand.vmem [shape: bf16[128,128], index: 1, kind: input, shape index: {}]   ;;  %s1820_s2 = inlined_call_operand.vmem [shape: f32[1,128], index: 2, kind: input, shape index: {}]   ;;  %s1821_s3 = inlined_call_operand.vmem [shape: f32[1,128], index: 3, kind: input, shape index: {}]   ;;  %s1822_s4 = inlined_call_operand.vmem [shape: f32[8192,128], index: 4, kind: output, shape index: {}]  }
   0x1 LB: > { %s1137_s16 = sadd.s32 4294967295, %s1508_s15   ;;  %p1141_p0 = scmp.ge.s32.totalorder %s1508_s15, 1  ;;  %s1508_s15 = sphi %s1535_s15, %s14_s15  }
   0x2   : > { %p163_p1 = scmp.lt.s32.totalorder %s1508_s15, 17 }
   0x4   : > { %p164_p2 = pnand %p1141_p0, %p163_p1 }
   0x5   : > { %v1334_v0 = vld [vmem:[%s1819_s1] sm:$0xff] (!%p164_p2)   ;;  %s1142_s19 = sshll.u32 (!%p164_p2), %s1137_s16, 6  ;;  %v1335_v1 = vld [vmem:[%s1819_s1 + $0x8] sm:$0xff] (!%p164_p2)   ;;  %v1336_v2 = vld [vmem:[%s1819_s1 + $0x10] sm:$0xff] (!%p164_p2)  }
   0x6   : > { %167 = sbr.rel (%p164_p2) target bundleno = 332 (0x14c), region = 36  ;;  %p190_p3 = scmp.lt.s32.totalorder (!%p164_p2), %s1142_s19, 1023  ;;  %1230 = vmatprep.subr.bf16.mxu0 (!%p164_p2), %v1334_v0  ;;  %1310 = vmatprep.subr.bf16.mxu1 (!%p164_p2), %v1334_v0  ;;  %v1337_v3 = vld [vmem:[%s1819_s1 + $0x18] sm:$0xff] (!%p164_p2)   ;;  %v1338_v6 = vld [vmem:[%s1819_s1 + $0x20] sm:$0xff] (!%p164_p2)   ;;  %v1339_v7 = vld [vmem:[%s1819_s1 + $0x28] sm:$0xff] (!%p164_p2)  }
   0x7   : > { %1231 = vmatpush3.bf16.msra.mxu0 (!%p164_p2), %v1334_v0  ;;  %1318 = vmatpush3.bf16.msra.mxu1 (!%p164_p2), %v1334_v0  ;;  %v1340_v8 = vld [vmem:[%s1819_s1 + $0x30] sm:$0xff] (!%p164_p2)   ;;  %v1341_v9 = vld [vmem:[%s1819_s1 + $0x38] sm:$0xff] (!%p164_p2)   ;;  %v1610_v40 = vld [vmem:[%s1820_s2] ss:$0 sm:$0xff] (!%p164_p2) }
   0x8   : > { %1232 = vmatprep.subr.bf16.mxu0 (!%p164_p2), %v1335_v1  ;;  %1311 = vmatprep.subr.bf16.mxu1 (!%p164_p2), %v1335_v1  ;;  %v1615_v42 = vld [vmem:[%s1821_s3] ss:$0 sm:$0xff] (!%p164_p2) }
   0xb   : > { %1233 = vmatpush3.bf16.msra.mxu0 (!%p164_p2), %v1335_v1  ;;  %1319 = vmatpush3.bf16.msra.mxu1 (!%p164_p2), %v1335_v1 }
   0xc   : > { %1234 = vmatprep.subr.bf16.mxu0 (!%p164_p2), %v1336_v2  ;;  %1312 = vmatprep.subr.bf16.mxu1 (!%p164_p2), %v1336_v2 }
   0xd   : > { %s1824_s19 = smov (!%p190_p3, %s1142_s19), 1023 }
   0xe   : > { %s1143_s24 = sshll.u32 %s1824_s19, 2  ;;  %s1145_s17 = sshll.u32 %s1824_s19, 3 }
   0xf   : > { %s1558_s27 = scalar_lea.vmem %s1818_s0, %s1143_s24  ;;  %1235 = vmatpush3.bf16.msra.mxu0 %v1336_v2  ;;  %1320 = vmatpush3.bf16.msra.mxu1 %v1336_v2  ;;  %s1647_s20 = scalar_lea.vmem %s1822_s4, %s1145_s17 }
  0x10   : > { %v1342_v4 = vld [vmem:[%s1558_s27] sm:$0xff]   ;;  %1236 = vmatprep.subr.bf16.mxu0 %v1337_v3  ;;  %1313 = vmatprep.subr.bf16.mxu1 %v1337_v3  ;;  %v1344_v10 = vld [vmem:[%s1558_s27 + $0x8] sm:$0xff]   ;;  %v1346_v12 = vld [vmem:[%s1558_s27 + $0x10] sm:$0xff]  }
  0x11   : > { %v1343_v5 = vld [vmem:[%s1558_s27 + $0x80] sm:$0xff]   ;;  %1246 = vmatprep.mubr.bf16.mxu0 %v1342_v4  ;;  %v1345_v11 = vld [vmem:[%s1558_s27 + $0x88] sm:$0xff]   ;;  %v1347_v13 = vld [vmem:[%s1558_s27 + $0x90] sm:$0xff]  }
  0x12   : > { %1278 = vmatprep.mubr.bf16.mxu1 %v1343_v5  ;;  %v1348_v14 = vld [vmem:[%s1558_s27 + $0x18] sm:$0xff]   ;;  %v1350_v16 = vld [vmem:[%s1558_s27 + $0x20] sm:$0xff]   ;;  %v1352_v18 = vld [vmem:[%s1558_s27 + $0x28] sm:$0xff]  }
  0x13   : > { %1237 = vmatpush3.bf16.msra.mxu0 %v1337_v3  ;;  %1321 = vmatpush3.bf16.msra.mxu1 %v1337_v3  ;;  %v1349_v15 = vld [vmem:[%s1558_s27 + $0x98] sm:$0xff]   ;;  %v1351_v17 = vld [vmem:[%s1558_s27 + $0xa0] sm:$0xff]   ;;  %v1353_v19 = vld [vmem:[%s1558_s27 + $0xa8] sm:$0xff]  }
  0x14   : > { %1238 = vmatprep.subr.bf16.mxu0 %v1338_v6  ;;  %1314 = vmatprep.subr.bf16.mxu1 %v1338_v6  ;;  %v1354_v20 = vld [vmem:[%s1558_s27 + $0x30] sm:$0xff]   ;;  %v1356_v22 = vld [vmem:[%s1558_s27 + $0x38] sm:$0xff]   ;;  %v1358_v24 = vld [vmem:[%s1558_s27 + $0x40] sm:$0xff]  }
  0x15   : > { %v1355_v21 = vld [vmem:[%s1558_s27 + $0xb0] sm:$0xff]   ;;  %v1357_v23 = vld [vmem:[%s1558_s27 + $0xb8] sm:$0xff]   ;;  %v1359_v25 = vld [vmem:[%s1558_s27 + $0xc0] sm:$0xff]  }
  0x16   : > { %v1360_v26 = vld [vmem:[%s1558_s27 + $0x48] sm:$0xff]   ;;  %v1362_v28 = vld [vmem:[%s1558_s27 + $0x50] sm:$0xff]   ;;  %v1364_v30 = vld [vmem:[%s1558_s27 + $0x58] sm:$0xff]  }
  0x17   : > { %1239 = vmatpush3.bf16.msra.mxu0 %v1338_v6  ;;  %1322 = vmatpush3.bf16.msra.mxu1 %v1338_v6  ;;  %v1361_v27 = vld [vmem:[%s1558_s27 + $0xc8] sm:$0xff]   ;;  %v1363_v29 = vld [vmem:[%s1558_s27 + $0xd0] sm:$0xff]   ;;  %v1365_v31 = vld [vmem:[%s1558_s27 + $0xd8] sm:$0xff]  }
  0x18   : > { %1240 = vmatprep.subr.bf16.mxu0 %v1339_v7  ;;  %1315 = vmatprep.subr.bf16.mxu1 %v1339_v7  ;;  %v1366_v32 = vld [vmem:[%s1558_s27 + $0x60] sm:$0xff]   ;;  %v1368_v34 = vld [vmem:[%s1558_s27 + $0x68] sm:$0xff]   ;;  %v1370_v36 = vld [vmem:[%s1558_s27 + $0x70] sm:$0xff]  }
  0x19   : > { %v1367_v33 = vld [vmem:[%s1558_s27 + $0xe0] sm:$0xff]   ;;  %v1369_v35 = vld [vmem:[%s1558_s27 + $0xe8] sm:$0xff]   ;;  %v1371_v37 = vld [vmem:[%s1558_s27 + $0xf0] sm:$0xff]  }
  0x1a   : > { %v1372_v38 = vld [vmem:[%s1558_s27 + $0x78] sm:$0xff]  }
  0x1b   : > { %1241 = vmatpush3.bf16.msra.mxu0 %v1339_v7  ;;  %1323 = vmatpush3.bf16.msra.mxu1 %v1339_v7  ;;  %v1373_v39 = vld [vmem:[%s1558_s27 + $0xf8] sm:$0xff]  }
  0x1c   : > { %1242 = vmatprep.subr.bf16.mxu0 %v1340_v8  ;;  %1316 = vmatprep.subr.bf16.mxu1 %v1340_v8 }
  0x1f   : > { %1243 = vmatpush3.bf16.msra.mxu0 %v1340_v8  ;;  %1324 = vmatpush3.bf16.msra.mxu1 %v1340_v8 }
  0x20   : > { %1244 = vmatprep.subr.bf16.mxu0 %v1341_v9  ;;  %1317 = vmatprep.subr.bf16.mxu1 %v1341_v9 }
  0x23   : > { %1245 = vmatpush3.bf16.msra.mxu0 %v1341_v9  ;;  %1325 = vmatpush3.bf16.msra.mxu1 %v1341_v9 }
  0x26   : > { %1247 = vmatmul.mubr.bf16.vlgmr.msra.gmra.mrb[0].mxu0 %v1344_v10  ;;  %1279 = vmatmul.mubr.bf16.vlgmr.msra.gmra.mrb[0].mxu1 %v1345_v11 }
  0x27   : > { %1250 = vmatprep.mubr.bf16.mxu0 %v1346_v12  ;;  %1282 = vmatprep.mubr.bf16.mxu1 %v1347_v13 }
  0x2e   : > { %1251 = vmatmul.mubr.bf16.gmra.mrb[4].mxu0 %v1348_v14  ;;  %1283 = vmatmul.mubr.bf16.gmra.mrb[4].mxu1 %v1349_v15 }
  0x2f   : > { %1254 = vmatprep.mubr.bf16.mxu0 %v1350_v16  ;;  %1286 = vmatprep.mubr.bf16.mxu1 %v1351_v17 }
  0x36   : > { %1255 = vmatmul.mubr.bf16.gmra.mrb[8].mxu0 %v1352_v18  ;;  %1287 = vmatmul.mubr.bf16.gmra.mrb[8].mxu1 %v1353_v19 }
  0x37   : > { %1258 = vmatprep.mubr.bf16.mxu0 %v1354_v20  ;;  %1290 = vmatprep.mubr.bf16.mxu1 %v1355_v21 }
  0x3e   : > { %1259 = vmatmul.mubr.bf16.gmra.mrb[12].mxu0 %v1356_v22  ;;  %1291 = vmatmul.mubr.bf16.gmra.mrb[12].mxu1 %v1357_v23 }
  0x3f   : > { %1262 = vmatprep.mubr.bf16.mxu0 %v1358_v24  ;;  %1294 = vmatprep.mubr.bf16.mxu1 %v1359_v25 }
  0x46   : > { %1263 = vmatmul.mubr.bf16.gmra.mrb[16].mxu0 %v1360_v26  ;;  %1295 = vmatmul.mubr.bf16.gmra.mrb[16].mxu1 %v1361_v27 }
  0x47   : > { %1266 = vmatprep.mubr.bf16.mxu0 %v1362_v28  ;;  %1298 = vmatprep.mubr.bf16.mxu1 %v1363_v29 }
  0x4e   : > { %1267 = vmatmul.mubr.bf16.gmra.mrb[20].mxu0 %v1364_v30  ;;  %1299 = vmatmul.mubr.bf16.gmra.mrb[20].mxu1 %v1365_v31 }
  0x4f   : > { %1270 = vmatprep.mubr.bf16.mxu0 %v1366_v32  ;;  %1302 = vmatprep.mubr.bf16.mxu1 %v1367_v33 }
  0x56   : > { %1271 = vmatmul.mubr.bf16.gmra.mrb[24].mxu0 %v1368_v34  ;;  %1303 = vmatmul.mubr.bf16.gmra.mrb[24].mxu1 %v1369_v35 }
  0x57   : > { %1274 = vmatprep.mubr.bf16.mxu0 %v1370_v36  ;;  %1306 = vmatprep.mubr.bf16.mxu1 %v1371_v37 }
  0x5e   : > { %1275 = vmatmul.mubr.bf16.gmra.mrb[28].mxu0 %v1372_v38  ;;  %1307 = vmatmul.mubr.bf16.gmra.mrb[28].mxu1 %v1373_v39 }
  0xf9   : > { %v1248_v41 = vpop.f32.mrb[0].mxu0  ;;  %v1280_v43 = vpop.f32.mrb[0].mxu1 }
  0xfa   : > { %v820_v44 = vmul.f32 %v1248_v41, %v1610_v40  ;;  %v852_v45 = vmul.f32 %v1280_v43, %v1610_v40  ;;  %v556_v46 = vpop.f32.mrb[1].mxu0  ;;  %v684_v47 = vpop.f32.mrb[1].mxu1 }
  0xfb   : > { %v818_v48 = vmul.f32 %v1610_v40, %v556_v46  ;;  %v850_v49 = vmul.f32 %v1610_v40, %v684_v47  ;;  %v1249_v50 = vpop.f32.mrb[2].mxu0  ;;  %v1281_v51 = vpop.f32.mrb[2].mxu1 }
  0xfc   : > { %v891_v52 = vadd.f32 %v1615_v42, %v820_v44  ;;  %v923_v53 = vadd.f32 %v1615_v42, %v852_v45  ;;  %v821_v54 = vmul.f32 %v1249_v50, %v1610_v40  ;;  %v853_v55 = vmul.f32 %v1281_v51, %v1610_v40  ;;  %v559_v56 = vpop.f32.mrb[3].mxu0  ;;  %v687_v57 = vpop.f32.mrb[3].mxu1 }
  0xfd   : > { %v889_v58 = vadd.f32 %v1615_v42, %v818_v48  ;;  %v921_v59 = vadd.f32 %v1615_v42, %v850_v49  ;;  %v819_v60 = vmul.f32 %v1610_v40, %v559_v56  ;;  %v851_v61 = vmul.f32 %v1610_v40, %v687_v57 }
  0xfe   : > { %1374 = vtanh.f32 %v891_v52  ;;  %v892_v62 = vadd.f32 %v1615_v42, %v821_v54  ;;  %v924_v63 = vadd.f32 %v1615_v42, %v853_v55 }
  0xff   : > { %1376 = vtanh.f32 %v923_v53  ;;  %v890_v0 = vadd.f32 %v1615_v42, %v819_v60  ;;  %v922_v1 = vadd.f32 %v1615_v42, %v851_v61 }
 0x100   : > { %1378 = vtanh.f32 %v889_v58 }
 0x101   : > { %1380 = vtanh.f32 %v921_v59  ;;  %v1252_v2 = vpop.f32.mrb[4].mxu0  ;;  %v1284_v3 = vpop.f32.mrb[4].mxu1 }
 0x102   : > { %1382 = vtanh.f32 %v892_v62  ;;  %v824_v4 = vmul.f32 %v1252_v2, %v1610_v40  ;;  %v856_v5 = vmul.f32 %v1284_v3, %v1610_v40  ;;  %v572_v6 = vpop.f32.mrb[5].mxu0  ;;  %v700_v7 = vpop.f32.mrb[5].mxu1 }
 0x103   : > { %1384 = vtanh.f32 %v924_v63  ;;  %v822_v8 = vmul.f32 %v1610_v40, %v572_v6  ;;  %v854_v9 = vmul.f32 %v1610_v40, %v700_v7  ;;  %v1253_v10 = vpop.f32.mrb[6].mxu0  ;;  %v1285_v11 = vpop.f32.mrb[6].mxu1 }
 0x104   : > { %1386 = vtanh.f32 %v890_v0  ;;  %v895_v12 = vadd.f32 %v1615_v42, %v824_v4  ;;  %v927_v13 = vadd.f32 %v1615_v42, %v856_v5  ;;  %v825_v14 = vmul.f32 %v1253_v10, %v1610_v40  ;;  %v575_v15 = vpop.f32.mrb[7].mxu0  ;;  %v703_v16 = vpop.f32.mrb[7].mxu1 }
 0x105   : > { %1388 = vtanh.f32 %v922_v1  ;;  %v893_v17 = vadd.f32 %v1615_v42, %v822_v8  ;;  %v925_v18 = vadd.f32 %v1615_v42, %v854_v9  ;;  %v857_v19 = vmul.f32 %v1285_v11, %v1610_v40 }
 0x106   : > { %1390 = vtanh.f32 %v895_v12  ;;  %v896_v20 = vadd.f32 %v1615_v42, %v825_v14  ;;  %v823_v21 = vmul.f32 %v1610_v40, %v575_v15  ;;  %v855_v22 = vmul.f32 %v1610_v40, %v703_v16 }
 0x107   : > { %1392 = vtanh.f32 %v927_v13  ;;  %v928_v23 = vadd.f32 %v1615_v42, %v857_v19 }
 0x108   : > { %v1375_v24 = vpop.eup %1374  ;;  %1394 = vtanh.f32 %v893_v17  ;;  %v894_v25 = vadd.f32 %v1615_v42, %v823_v21  ;;  %v926_v27 = vadd.f32 %v1615_v42, %v855_v22 }
 0x109   : > { %v1377_v26 = vpop.eup %1376  ;;  %1019 = vst [vmem:[%s1647_s20 + $0x10] sm:$0xff] %v1375_v24  ;;  %1396 = vtanh.f32 %v925_v18  ;;  %v1256_v28 = vpop.f32.mrb[8].mxu0 }
 0x10a   : > { %v1288_v29 = vpop.f32.mrb[8].mxu1  ;;  %v1379_v30 = vpop.eup %1378  ;;  %1051 = vst [vmem:[%s1647_s20 + $0x110] sm:$0xff] %v1377_v26  ;;  %1398 = vtanh.f32 %v896_v20  ;;  %v828_v31 = vmul.f32 %v1256_v28, %v1610_v40 }
 0x10b   : > { %v860_v32 = vmul.f32 %v1288_v29, %v1610_v40  ;;  %v588_v33 = vpop.f32.mrb[9].mxu0  ;;  %v716_v34 = vpop.f32.mrb[9].mxu1  ;;  %1017 = vst [vmem:[%s1647_s20] sm:$0xff] %v1379_v30  ;;  %1400 = vtanh.f32 %v928_v23 }
 0x10c   : > { %v1381_v35 = vpop.eup %1380  ;;  %v826_v36 = vmul.f32 %v1610_v40, %v588_v33  ;;  %v858_v37 = vmul.f32 %v1610_v40, %v716_v34  ;;  %v1257_v38 = vpop.f32.mrb[10].mxu0  ;;  %1402 = vtanh.f32 %v894_v25  ;;  %v899_v43 = vadd.f32 %v1615_v42, %v828_v31 }
 0x10d   : > { %v1289_v39 = vpop.f32.mrb[10].mxu1  ;;  %v1383_v41 = vpop.eup %1382  ;;  %1049 = vst [vmem:[%s1647_s20 + $0x100] sm:$0xff] %v1381_v35  ;;  %v931_v44 = vadd.f32 %v1615_v42, %v860_v32  ;;  %v829_v45 = vmul.f32 %v1257_v38, %v1610_v40  ;;  %1404 = vtanh.f32 %v926_v27 }
 0x10e   : > { %v591_v46 = vpop.f32.mrb[11].mxu0  ;;  %v719_v47 = vpop.f32.mrb[11].mxu1  ;;  %1020 = vst [vmem:[%s1647_s20 + $0x18] sm:$0xff] %v1383_v41  ;;  %v897_v49 = vadd.f32 %v1615_v42, %v826_v36  ;;  %v929_v50 = vadd.f32 %v1615_v42, %v858_v37  ;;  %v861_v51 = vmul.f32 %v1289_v39, %v1610_v40  ;;  %1406 = vtanh.f32 %v899_v43 }
 0x10f   : > { %v1385_v48 = vpop.eup %1384  ;;  %v900_v53 = vadd.f32 %v1615_v42, %v829_v45  ;;  %v827_v54 = vmul.f32 %v1610_v40, %v591_v46  ;;  %v859_v55 = vmul.f32 %v1610_v40, %v719_v47  ;;  %1408 = vtanh.f32 %v931_v44 }
 0x110   : > { %v1387_v52 = vpop.eup %1386  ;;  %1052 = vst [vmem:[%s1647_s20 + $0x118] sm:$0xff] %v1385_v48  ;;  %v932_v57 = vadd.f32 %v1615_v42, %v861_v51  ;;  %1410 = vtanh.f32 %v897_v49 }
 0x111   : > { %v1389_v56 = vpop.eup %1388  ;;  %1018 = vst [vmem:[%s1647_s20 + $0x8] sm:$0xff] %v1387_v52  ;;  %v898_v59 = vadd.f32 %v1615_v42, %v827_v54  ;;  %1412 = vtanh.f32 %v929_v50  ;;  %v930_v61 = vadd.f32 %v1615_v42, %v859_v55  ;;  %v1260_v62 = vpop.f32.mrb[12].mxu0 }
 0x112   : > { %v1391_v58 = vpop.eup %1390  ;;  %1050 = vst [vmem:[%s1647_s20 + $0x108] sm:$0xff] %v1389_v56  ;;  %v1292_v63 = vpop.f32.mrb[12].mxu1  ;;  %1414 = vtanh.f32 %v900_v53  ;;  %v832_v1 = vmul.f32 %v1260_v62, %v1610_v40 }
 0x113   : > { %v1393_v60 = vpop.eup %1392  ;;  %1023 = vst [vmem:[%s1647_s20 + $0x30] sm:$0xff] %v1391_v58  ;;  %v864_v2 = vmul.f32 %v1292_v63, %v1610_v40  ;;  %v604_v3 = vpop.f32.mrb[13].mxu0  ;;  %1416 = vtanh.f32 %v932_v57 }
 0x114   : > { %v1395_v0 = vpop.eup %1394  ;;  %1055 = vst [vmem:[%s1647_s20 + $0x130] sm:$0xff] %v1393_v60  ;;  %v732_v4 = vpop.f32.mrb[13].mxu1  ;;  %v830_v6 = vmul.f32 %v1610_v40, %v604_v3  ;;  %1418 = vtanh.f32 %v898_v59  ;;  %v903_v11 = vadd.f32 %v1615_v42, %v832_v1 }
 0x115   : > { %v1397_v5 = vpop.eup %1396  ;;  %1021 = vst [vmem:[%s1647_s20 + $0x20] sm:$0xff] %v1395_v0  ;;  %v862_v7 = vmul.f32 %v1610_v40, %v732_v4  ;;  %v1261_v8 = vpop.f32.mrb[14].mxu0  ;;  %v935_v12 = vadd.f32 %v1615_v42, %v864_v2  ;;  %1420 = vtanh.f32 %v930_v61 }
 0x116   : > { %v1293_v9 = vpop.f32.mrb[14].mxu1  ;;  %v1399_v10 = vpop.eup %1398  ;;  %1053 = vst [vmem:[%s1647_s20 + $0x120] sm:$0xff] %v1397_v5  ;;  %v833_v13 = vmul.f32 %v1261_v8, %v1610_v40  ;;  %v901_v17 = vadd.f32 %v1615_v42, %v830_v6  ;;  %1422 = vtanh.f32 %v903_v11 }
 0x117   : > { %v607_v14 = vpop.f32.mrb[15].mxu0  ;;  %v735_v15 = vpop.f32.mrb[15].mxu1  ;;  %1024 = vst [vmem:[%s1647_s20 + $0x38] sm:$0xff] %v1399_v10  ;;  %v933_v18 = vadd.f32 %v1615_v42, %v862_v7  ;;  %v865_v19 = vmul.f32 %v1293_v9, %v1610_v40  ;;  %1424 = vtanh.f32 %v935_v12 }
 0x118   : > { %v1401_v16 = vpop.eup %1400  ;;  %v904_v21 = vadd.f32 %v1615_v42, %v833_v13  ;;  %v831_v22 = vmul.f32 %v1610_v40, %v607_v14  ;;  %v863_v23 = vmul.f32 %v1610_v40, %v735_v15  ;;  %1426 = vtanh.f32 %v901_v17 }
 0x119   : > { %v1403_v20 = vpop.eup %1402  ;;  %1056 = vst [vmem:[%s1647_s20 + $0x138] sm:$0xff] %v1401_v16  ;;  %v936_v25 = vadd.f32 %v1615_v42, %v865_v19  ;;  %1428 = vtanh.f32 %v933_v18  ;;  %v1264_v30 = vpop.f32.mrb[16].mxu0 }
 0x11a   : > { %v1405_v24 = vpop.eup %1404  ;;  %1022 = vst [vmem:[%s1647_s20 + $0x28] sm:$0xff] %v1403_v20  ;;  %v902_v27 = vadd.f32 %v1615_v42, %v831_v22  ;;  %v934_v29 = vadd.f32 %v1615_v42, %v863_v23  ;;  %v1296_v31 = vpop.f32.mrb[16].mxu1  ;;  %1430 = vtanh.f32 %v904_v21  ;;  %v836_v33 = vmul.f32 %v1264_v30, %v1610_v40 }
 0x11b   : > { %v1407_v26 = vpop.eup %1406  ;;  %1054 = vst [vmem:[%s1647_s20 + $0x128] sm:$0xff] %v1405_v24  ;;  %v868_v34 = vmul.f32 %v1296_v31, %v1610_v40  ;;  %v620_v35 = vpop.f32.mrb[17].mxu0  ;;  %1432 = vtanh.f32 %v936_v25 }
 0x11c   : > { %v1409_v28 = vpop.eup %1408  ;;  %1027 = vst [vmem:[%s1647_s20 + $0x50] sm:$0xff] %v1407_v26  ;;  %v748_v36 = vpop.f32.mrb[17].mxu1  ;;  %v834_v38 = vmul.f32 %v1610_v40, %v620_v35  ;;  %1434 = vtanh.f32 %v902_v27  ;;  %v907_v45 = vadd.f32 %v1615_v42, %v836_v33 }
 0x11d   : > { %v1411_v32 = vpop.eup %1410  ;;  %1059 = vst [vmem:[%s1647_s20 + $0x150] sm:$0xff] %v1409_v28  ;;  %v866_v39 = vmul.f32 %v1610_v40, %v748_v36  ;;  %v1265_v41 = vpop.f32.mrb[18].mxu0  ;;  %v939_v46 = vadd.f32 %v1615_v42, %v868_v34  ;;  %1436 = vtanh.f32 %v934_v29 }
 0x11e   : > { %v1413_v37 = vpop.eup %1412  ;;  %1025 = vst [vmem:[%s1647_s20 + $0x40] sm:$0xff] %v1411_v32  ;;  %v1297_v43 = vpop.f32.mrb[18].mxu1  ;;  %v837_v47 = vmul.f32 %v1265_v41, %v1610_v40  ;;  %v905_v51 = vadd.f32 %v1615_v42, %v834_v38  ;;  %1438 = vtanh.f32 %v907_v45 }
 0x11f   : > { %v1415_v44 = vpop.eup %1414  ;;  %1057 = vst [vmem:[%s1647_s20 + $0x140] sm:$0xff] %v1413_v37  ;;  %v623_v48 = vpop.f32.mrb[19].mxu0  ;;  %v937_v52 = vadd.f32 %v1615_v42, %v866_v39  ;;  %v869_v53 = vmul.f32 %v1297_v43, %v1610_v40  ;;  %1440 = vtanh.f32 %v939_v46 }
 0x120   : > { %v751_v49 = vpop.f32.mrb[19].mxu1  ;;  %v1417_v50 = vpop.eup %1416  ;;  %1028 = vst [vmem:[%s1647_s20 + $0x58] sm:$0xff] %v1415_v44  ;;  %v908_v55 = vadd.f32 %v1615_v42, %v837_v47  ;;  %v835_v56 = vmul.f32 %v1610_v40, %v623_v48  ;;  %1442 = vtanh.f32 %v905_v51 }
 0x121   : > { %v1419_v54 = vpop.eup %1418  ;;  %1060 = vst [vmem:[%s1647_s20 + $0x158] sm:$0xff] %v1417_v50  ;;  %v867_v57 = vmul.f32 %v1610_v40, %v751_v49  ;;  %v940_v59 = vadd.f32 %v1615_v42, %v869_v53  ;;  %1444 = vtanh.f32 %v937_v52  ;;  %v1268_v0 = vpop.f32.mrb[20].mxu0 }
 0x122   : > { %v1421_v58 = vpop.eup %1420  ;;  %1026 = vst [vmem:[%s1647_s20 + $0x48] sm:$0xff] %v1419_v54  ;;  %v906_v61 = vadd.f32 %v1615_v42, %v835_v56  ;;  %v1300_v1 = vpop.f32.mrb[20].mxu1  ;;  %1446 = vtanh.f32 %v908_v55  ;;  %v840_v3 = vmul.f32 %v1268_v0, %v1610_v40 }
 0x123   : > { %v1423_v60 = vpop.eup %1422  ;;  %1058 = vst [vmem:[%s1647_s20 + $0x148] sm:$0xff] %v1421_v58  ;;  %v938_v63 = vadd.f32 %v1615_v42, %v867_v57  ;;  %v872_v4 = vmul.f32 %v1300_v1, %v1610_v40  ;;  %v636_v5 = vpop.f32.mrb[21].mxu0  ;;  %1448 = vtanh.f32 %v940_v59 }
 0x124   : > { %v1425_v62 = vpop.eup %1424  ;;  %1031 = vst [vmem:[%s1647_s20 + $0x70] sm:$0xff] %v1423_v60  ;;  %v764_v6 = vpop.f32.mrb[21].mxu1  ;;  %v838_v8 = vmul.f32 %v1610_v40, %v636_v5  ;;  %1450 = vtanh.f32 %v906_v61  ;;  %v911_v13 = vadd.f32 %v1615_v42, %v840_v3 }
 0x125   : > { %v1427_v2 = vpop.eup %1426  ;;  %1063 = vst [vmem:[%s1647_s20 + $0x170] sm:$0xff] %v1425_v62  ;;  %v870_v9 = vmul.f32 %v1610_v40, %v764_v6  ;;  %v1269_v10 = vpop.f32.mrb[22].mxu0  ;;  %v943_v14 = vadd.f32 %v1615_v42, %v872_v4  ;;  %1452 = vtanh.f32 %v938_v63 }
 0x126   : > { %v1429_v7 = vpop.eup %1428  ;;  %1029 = vst [vmem:[%s1647_s20 + $0x60] sm:$0xff] %v1427_v2  ;;  %v1301_v11 = vpop.f32.mrb[22].mxu1  ;;  %v841_v15 = vmul.f32 %v1269_v10, %v1610_v40  ;;  %v909_v19 = vadd.f32 %v1615_v42, %v838_v8  ;;  %1454 = vtanh.f32 %v911_v13 }
 0x127   : > { %v1431_v12 = vpop.eup %1430  ;;  %1061 = vst [vmem:[%s1647_s20 + $0x160] sm:$0xff] %v1429_v7  ;;  %v639_v16 = vpop.f32.mrb[23].mxu0  ;;  %v941_v20 = vadd.f32 %v1615_v42, %v870_v9  ;;  %v873_v21 = vmul.f32 %v1301_v11, %v1610_v40  ;;  %1456 = vtanh.f32 %v943_v14 }
 0x128   : > { %v767_v17 = vpop.f32.mrb[23].mxu1  ;;  %v1433_v18 = vpop.eup %1432  ;;  %1032 = vst [vmem:[%s1647_s20 + $0x78] sm:$0xff] %v1431_v12  ;;  %v912_v23 = vadd.f32 %v1615_v42, %v841_v15  ;;  %v839_v24 = vmul.f32 %v1610_v40, %v639_v16  ;;  %1458 = vtanh.f32 %v909_v19 }
 0x129   : > { %v1435_v22 = vpop.eup %1434  ;;  %1064 = vst [vmem:[%s1647_s20 + $0x178] sm:$0xff] %v1433_v18  ;;  %v871_v25 = vmul.f32 %v1610_v40, %v767_v17  ;;  %v944_v27 = vadd.f32 %v1615_v42, %v873_v21  ;;  %1460 = vtanh.f32 %v941_v20  ;;  %v1272_v32 = vpop.f32.mrb[24].mxu0 }
 0x12a   : > { %v1437_v26 = vpop.eup %1436  ;;  %1030 = vst [vmem:[%s1647_s20 + $0x68] sm:$0xff] %v1435_v22  ;;  %v910_v29 = vadd.f32 %v1615_v42, %v839_v24  ;;  %v1304_v33 = vpop.f32.mrb[24].mxu1  ;;  %1462 = vtanh.f32 %v912_v23  ;;  %v844_v35 = vmul.f32 %v1272_v32, %v1610_v40 }
 0x12b   : > { %v1439_v28 = vpop.eup %1438  ;;  %1062 = vst [vmem:[%s1647_s20 + $0x168] sm:$0xff] %v1437_v26  ;;  %v942_v31 = vadd.f32 %v1615_v42, %v871_v25  ;;  %v876_v36 = vmul.f32 %v1304_v33, %v1610_v40  ;;  %v652_v37 = vpop.f32.mrb[25].mxu0  ;;  %1464 = vtanh.f32 %v944_v27 }
 0x12c   : > { %v1441_v30 = vpop.eup %1440  ;;  %1035 = vst [vmem:[%s1647_s20 + $0x90] sm:$0xff] %v1439_v28  ;;  %v780_v38 = vpop.f32.mrb[25].mxu1  ;;  %v842_v41 = vmul.f32 %v1610_v40, %v652_v37  ;;  %1466 = vtanh.f32 %v910_v29  ;;  %v915_v47 = vadd.f32 %v1615_v42, %v844_v35 }
 0x12d   : > { %v1443_v34 = vpop.eup %1442  ;;  %1067 = vst [vmem:[%s1647_s20 + $0x190] sm:$0xff] %v1441_v30  ;;  %v874_v43 = vmul.f32 %v1610_v40, %v780_v38  ;;  %v1273_v44 = vpop.f32.mrb[26].mxu0  ;;  %v947_v48 = vadd.f32 %v1615_v42, %v876_v36  ;;  %1468 = vtanh.f32 %v942_v31 }
 0x12e   : > { %v1445_v39 = vpop.eup %1444  ;;  %1033 = vst [vmem:[%s1647_s20 + $0x80] sm:$0xff] %v1443_v34  ;;  %v1305_v45 = vpop.f32.mrb[26].mxu1  ;;  %v845_v49 = vmul.f32 %v1273_v44, %v1610_v40  ;;  %v913_v53 = vadd.f32 %v1615_v42, %v842_v41  ;;  %1470 = vtanh.f32 %v915_v47 }
 0x12f   : > { %v1447_v46 = vpop.eup %1446  ;;  %1065 = vst [vmem:[%s1647_s20 + $0x180] sm:$0xff] %v1445_v39  ;;  %v655_v50 = vpop.f32.mrb[27].mxu0  ;;  %v945_v54 = vadd.f32 %v1615_v42, %v874_v43  ;;  %v877_v55 = vmul.f32 %v1305_v45, %v1610_v40  ;;  %1472 = vtanh.f32 %v947_v48 }
 0x130   : > { %v783_v51 = vpop.f32.mrb[27].mxu1  ;;  %v1449_v52 = vpop.eup %1448  ;;  %1036 = vst [vmem:[%s1647_s20 + $0x98] sm:$0xff] %v1447_v46  ;;  %v916_v57 = vadd.f32 %v1615_v42, %v845_v49  ;;  %v843_v58 = vmul.f32 %v1610_v40, %v655_v50  ;;  %1474 = vtanh.f32 %v913_v53 }
 0x131   : > { %v1451_v56 = vpop.eup %1450  ;;  %1068 = vst [vmem:[%s1647_s20 + $0x198] sm:$0xff] %v1449_v52  ;;  %v875_v59 = vmul.f32 %v1610_v40, %v783_v51  ;;  %v948_v61 = vadd.f32 %v1615_v42, %v877_v55  ;;  %1476 = vtanh.f32 %v945_v54  ;;  %v1276_v2 = vpop.f32.mrb[28].mxu0 }
 0x132   : > { %v1453_v60 = vpop.eup %1452  ;;  %1034 = vst [vmem:[%s1647_s20 + $0x88] sm:$0xff] %v1451_v56  ;;  %v914_v63 = vadd.f32 %v1615_v42, %v843_v58  ;;  %v1308_v3 = vpop.f32.mrb[28].mxu1  ;;  %1478 = vtanh.f32 %v916_v57  ;;  %v848_v5 = vmul.f32 %v1276_v2, %v1610_v40 }
 0x133   : > { %v1455_v62 = vpop.eup %1454  ;;  %1066 = vst [vmem:[%s1647_s20 + $0x188] sm:$0xff] %v1453_v60  ;;  %v946_v1 = vadd.f32 %v1615_v42, %v875_v59  ;;  %v880_v6 = vmul.f32 %v1308_v3, %v1610_v40  ;;  %v668_v7 = vpop.f32.mrb[29].mxu0  ;;  %1480 = vtanh.f32 %v948_v61 }
 0x134   : > { %v1457_v0 = vpop.eup %1456  ;;  %1039 = vst [vmem:[%s1647_s20 + $0xb0] sm:$0xff] %v1455_v62  ;;  %v796_v8 = vpop.f32.mrb[29].mxu1  ;;  %v846_v10 = vmul.f32 %v1610_v40, %v668_v7  ;;  %1482 = vtanh.f32 %v914_v63  ;;  %v919_v15 = vadd.f32 %v1615_v42, %v848_v5 }
 0x135   : > { %v1459_v4 = vpop.eup %1458  ;;  %1071 = vst [vmem:[%s1647_s20 + $0x1b0] sm:$0xff] %v1457_v0  ;;  %v878_v11 = vmul.f32 %v1610_v40, %v796_v8  ;;  %v1277_v12 = vpop.f32.mrb[30].mxu0  ;;  %v951_v16 = vadd.f32 %v1615_v42, %v880_v6  ;;  %1484 = vtanh.f32 %v946_v1 }
 0x136   : > { %v1461_v9 = vpop.eup %1460  ;;  %1037 = vst [vmem:[%s1647_s20 + $0xa0] sm:$0xff] %v1459_v4  ;;  %v1309_v13 = vpop.f32.mrb[30].mxu1  ;;  %v849_v17 = vmul.f32 %v1277_v12, %v1610_v40  ;;  %v917_v21 = vadd.f32 %v1615_v42, %v846_v10  ;;  %1486 = vtanh.f32 %v919_v15 }
 0x137   : > { %v1463_v14 = vpop.eup %1462  ;;  %1069 = vst [vmem:[%s1647_s20 + $0x1a0] sm:$0xff] %v1461_v9  ;;  %v671_v18 = vpop.f32.mrb[31].mxu0  ;;  %v949_v22 = vadd.f32 %v1615_v42, %v878_v11  ;;  %v881_v23 = vmul.f32 %v1309_v13, %v1610_v40  ;;  %1488 = vtanh.f32 %v951_v16 }
 0x138   : > { %v799_v19 = vpop.f32.mrb[31].mxu1  ;;  %v1465_v20 = vpop.eup %1464  ;;  %1040 = vst [vmem:[%s1647_s20 + $0xb8] sm:$0xff] %v1463_v14  ;;  %v920_v25 = vadd.f32 %v1615_v42, %v849_v17  ;;  %v847_v26 = vmul.f32 %v1610_v40, %v671_v18  ;;  %1490 = vtanh.f32 %v917_v21 }
 0x139   : > { %v1467_v24 = vpop.eup %1466  ;;  %1072 = vst [vmem:[%s1647_s20 + $0x1b8] sm:$0xff] %v1465_v20  ;;  %v879_v27 = vmul.f32 %v1610_v40, %v799_v19  ;;  %v952_v29 = vadd.f32 %v1615_v42, %v881_v23  ;;  %1492 = vtanh.f32 %v949_v22 }
 0x13a   : > { %v1469_v28 = vpop.eup %1468  ;;  %1038 = vst [vmem:[%s1647_s20 + $0xa8] sm:$0xff] %v1467_v24  ;;  %v918_v31 = vadd.f32 %v1615_v42, %v847_v26  ;;  %1494 = vtanh.f32 %v920_v25 }
 0x13b   : > { %v1471_v30 = vpop.eup %1470  ;;  %1070 = vst [vmem:[%s1647_s20 + $0x1a8] sm:$0xff] %v1469_v28  ;;  %v950_v33 = vadd.f32 %v1615_v42, %v879_v27  ;;  %1496 = vtanh.f32 %v952_v29 }
 0x13c   : > { %v1473_v32 = vpop.eup %1472  ;;  %1043 = vst [vmem:[%s1647_s20 + $0xd0] sm:$0xff] %v1471_v30  ;;  %1498 = vtanh.f32 %v918_v31 }
 0x13d   : > { %v1475_v40 = vpop.eup %1474  ;;  %1075 = vst [vmem:[%s1647_s20 + $0x1d0] sm:$0xff] %v1473_v32  ;;  %1500 = vtanh.f32 %v950_v33 }
 0x13e   : > { %v1477_v34 = vpop.eup %1476  ;;  %1041 = vst [vmem:[%s1647_s20 + $0xc0] sm:$0xff] %v1475_v40 }
 0x13f   : > { %v1479_v35 = vpop.eup %1478  ;;  %1073 = vst [vmem:[%s1647_s20 + $0x1c0] sm:$0xff] %v1477_v34 }
 0x140   : > { %v1481_v36 = vpop.eup %1480  ;;  %1044 = vst [vmem:[%s1647_s20 + $0xd8] sm:$0xff] %v1479_v35 }
 0x141   : > { %v1483_v42 = vpop.eup %1482  ;;  %1076 = vst [vmem:[%s1647_s20 + $0x1d8] sm:$0xff] %v1481_v36 }
 0x142   : > { %v1485_v37 = vpop.eup %1484  ;;  %1042 = vst [vmem:[%s1647_s20 + $0xc8] sm:$0xff] %v1483_v42 }
 0x143   : > { %v1487_v38 = vpop.eup %1486  ;;  %1074 = vst [vmem:[%s1647_s20 + $0x1c8] sm:$0xff] %v1485_v37 }
 0x144   : > { %v1489_v39 = vpop.eup %1488  ;;  %1047 = vst [vmem:[%s1647_s20 + $0xf0] sm:$0xff] %v1487_v38 }
 0x145   : > { %v1491_v41 = vpop.eup %1490  ;;  %1079 = vst [vmem:[%s1647_s20 + $0x1f0] sm:$0xff] %v1489_v39 }
 0x146   : > { %v1493_v43 = vpop.eup %1492  ;;  %1045 = vst [vmem:[%s1647_s20 + $0xe0] sm:$0xff] %v1491_v41 }
 0x147   : > { %v1495_v44 = vpop.eup %1494  ;;  %1077 = vst [vmem:[%s1647_s20 + $0x1e0] sm:$0xff] %v1493_v43 }
 0x148   : > { %v1497_v45 = vpop.eup %1496  ;;  %1048 = vst [vmem:[%s1647_s20 + $0xf8] sm:$0xff] %v1495_v44 }
 0x149   : > { %v1499_v46 = vpop.eup %1498  ;;  %1080 = vst [vmem:[%s1647_s20 + $0x1f8] sm:$0xff] %v1497_v45 }
 0x14a   : > { %v1501_v47 = vpop.eup %1500  ;;  %1046 = vst [vmem:[%s1647_s20 + $0xe8] sm:$0xff] %v1499_v46 }
 0x14b   : > { %1078 = vst [vmem:[%s1647_s20 + $0x1e8] sm:$0xff] %v1501_v47 }
 0x14c PF: > { %s14_s15 = sadd.s32 1, %s1508_s15  }
 0x14d   : > { %p11_p4 = scmp.ge.s32.totalorder %s14_s15, 18  }
 0x14f   :  { %13 = sbr.rel (!%p11_p4) target bundleno = 1 (0x1), region = 66 }

</bundles_post_ra>
